<compile_context>
chip_gen: v7x
topology: tpu7x:2x2x1
jax: 0.10.0
libtpu: 0.0.40
codegen_flags: <defaults>
</compile_context>

<pallas_src>
import math

import jax
import jax.numpy as jnp
from jax.experimental import pallas as pl
from jax.experimental.pallas import tpu as pltpu


_LRELU_SLOPE = 0.2
_INV_SQRT2 = 1.0 / math.sqrt(2.0)


def _lrelu(v):
    return jnp.where(v >= 0, v, _LRELU_SLOPE * v)


def _round_up(v, m):
    return -(-v // m) * m


def _pick_row_tile(H, W, Cin, Cout, *, need_even, vmem_budget=8 * 1024 * 1024, max_th=8):
    """Largest row tile (divisor of H, <= max_th) whose working set fits the VMEM budget."""
    cands = [th for th in range(min(H, max_th), 0, -1)
             if H % th == 0 and (not need_even or th % 2 == 0)]
    wp = _round_up(W, 8)
    for th in cands:
        est = (2 * (th + 2) * (wp + 2) * Cin * 4      # double-buffered input tile + halo (f32)
               + 9 * Cin * Cout * 2                   # 3x3 conv weights (bf16)
               + 2 * th * wp * Cout * 4               # accumulator + output tile (f32)
               + th * wp * max(Cin, Cout) * 4)        # shortcut / pooled-x temporaries
        if est <= vmem_budget:
            return th
    return cands[-1]


def _pool_matrix(TH, W):
    """(TH//2*W//2, TH*W) matrix that averages 2x2 windows of a row-major (TH, W) tile."""
    ho, wo = TH // 2, W // 2
    oi = jnp.arange(ho * wo) // wo
    oj = jnp.arange(ho * wo) % wo
    ii = jnp.arange(TH * W) // W
    ij = jnp.arange(TH * W) % W
    hit = (ii[None, :] // 2 == oi[:, None]) & (ij[None, :] // 2 == oj[:, None])
    return 0.25 * hit.astype(jnp.float32)


# -----------------------------------------------------------------------------
# Fused 3x3-conv kernel (pre-activation / pooling / shortcut variants)
# -----------------------------------------------------------------------------
def _make_conv_kernel(*, TH, W, WP, Cin, Cout, nrt, pre_act, pool,
                      has_shortcut, learned_sc, out_scale):
    def kernel(*refs):
        it = iter(refs)
        xm_ref = next(it)                                   # (1, TH, W, Cin)
        xt_ref = next(it)                                   # (1, 1,  W, Cin)  row above tile
        xb_ref = next(it)                                   # (1, 1,  W, Cin)  row below tile
        w_ref = next(it)                                    # (3, 3, Cin, Cout)  bf16
        b_ref = next(it)                                    # (1, Cout)          f32
        p_ref = next(it) if pool else None                  # (TH*W//4, TH*W)    f32
        xs_ref = next(it) if has_shortcut else None         # (1, TH, W, Csc)    f32
        ws_ref = next(it) if (has_shortcut and learned_sc) else None
        o_ref = next(it)
        ox_ref = next(it) if pool else None

        i = pl.program_id(1)
        x = xm_ref[...]
        # Halo rows from neighbouring tiles; zero them at the true image boundary.
        top = jnp.where(i == 0, 0.0, xt_ref[...])
        bot = jnp.where(i == nrt - 1, 0.0, xb_ref[...])
        win = jnp.concatenate([top, x, bot], axis=1)        # (1, TH+2, W, Cin)
        if pre_act:
            win = _lrelu(win)
        # Zero-pad width to WP+2 (left pad 1, right pad 1 + lane alignment padding).
        zl = jnp.zeros((1, TH + 2, 1, Cin), jnp.float32)
        zr = jnp.zeros((1, TH + 2, 1 + WP - W, Cin), jnp.float32)
        win = jnp.concatenate([zl, win, zr], axis=2)[0]     # (TH+2, WP+2, Cin)

        w = w_ref[...]
        acc = jnp.zeros((TH * WP, Cout), jnp.float32)
        for dy in range(3):                                  # 9 shifted MXU matmuls, f32 acc
            for dx in range(3):
                patch = win[dy:dy + TH, dx:dx + WP, :].reshape(TH * WP, Cin)
                acc = acc + jnp.dot(patch.astype(jnp.bfloat16), w[dy, dx],
                                    preferred_element_type=jnp.float32)
        acc = acc + b_ref[...]

        if pool:
            # Fused 2x2 average pooling via a precomputed pooling matrix (pure MXU work),
            # plus avg-pool(x) emitted for the shortcut branch of the ResBlk.
            pm = p_ref[...]
            o_ref[...] = jnp.dot(pm, acc,
                                 preferred_element_type=jnp.float32).reshape(o_ref.shape)
            ox_ref[...] = jnp.dot(pm, x[0].reshape(TH * W, Cin),
                                  preferred_element_type=jnp.float32).reshape(ox_ref.shape)
        else:
            if has_shortcut:
                xs = xs_ref[0]                               # (TH, W, Csc)
                if WP != W:
                    xs = jnp.concatenate(
                        [xs, jnp.zeros((TH, WP - W, xs.shape[-1]), jnp.float32)], axis=1)
                xs = xs.reshape(TH * WP, xs.shape[-1])
                if learned_sc:
                    acc = acc + jnp.dot(xs.astype(jnp.bfloat16), ws_ref[...],
                                        preferred_element_type=jnp.float32)
                else:
                    acc = acc + xs                            # identity shortcut: plain add
            out = (acc * out_scale).reshape(TH, WP, Cout)
            if WP != W:
                out = out[:, :W, :]
            o_ref[...] = out.reshape(o_ref.shape)

    return kernel


def conv3x3_block(x, w, b, *, pre_act, pool, shortcut=None, sc_w=None, out_scale=1.0):
    B, H, W, Cin = x.shape
    Cout = w.shape[-1]
    has_shortcut = shortcut is not None
    learned_sc = sc_w is not None
    if pool and (W % 8 != 0 or H % 2 != 0 or W % 2 != 0):
        raise ValueError("pooled conv tiles assume W % 8 == 0 and even H, W")
    TH = _pick_row_tile(H, W, Cin, Cout, need_even=pool)
    nrt = H // TH
    WP = _round_up(W, 8)

    in_specs = [
        pl.BlockSpec((1, TH, W, Cin), lambda bb, i: (bb, i, 0, 0)),
        pl.BlockSpec((1, 1, W, Cin),
                     lambda bb, i: (bb, jnp.maximum(i * TH - 1, 0), 0, 0)),
        pl.BlockSpec((1, 1, W, Cin),
                     lambda bb, i: (bb, jnp.minimum(i * TH + TH, H - 1), 0, 0)),
        pl.BlockSpec((3, 3, Cin, Cout), lambda bb, i: (0, 0, 0, 0)),
        pl.BlockSpec((1, Cout), lambda bb, i: (0, 0)),
    ]
    args = [x, x, x, w, b]

    if pool:
        P = _pool_matrix(TH, W)
        in_specs.append(pl.BlockSpec(P.shape, lambda bb, i: (0, 0)))
        args.append(P)
    if has_shortcut:
        Csc = shortcut.shape[-1]
        in_specs.append(pl.BlockSpec((1, TH, W, Csc), lambda bb, i: (bb, i, 0, 0)))
        args.append(shortcut)
        if learned_sc:
            in_specs.append(pl.BlockSpec((Csc, Cout), lambda bb, i: (0, 0)))
            args.append(sc_w)

    if pool:
        rows_out = (TH // 2) * (W // 2)
        out_shape = (
            jax.ShapeDtypeStruct((B, (H // 2) * (W // 2), Cout), jnp.float32),
            jax.ShapeDtypeStruct((B, (H // 2) * (W // 2), Cin), jnp.float32),
        )
        out_specs = (
            pl.BlockSpec((1, rows_out, Cout), lambda bb, i: (bb, i, 0)),
            pl.BlockSpec((1, rows_out, Cin), lambda bb, i: (bb, i, 0)),
        )
    else:
        out_shape = jax.ShapeDtypeStruct((B, H, W, Cout), jnp.float32)
        out_specs = pl.BlockSpec((1, TH, W, Cout), lambda bb, i: (bb, i, 0, 0))

    kernel = _make_conv_kernel(TH=TH, W=W, WP=WP, Cin=Cin, Cout=Cout, nrt=nrt,
                               pre_act=pre_act, pool=pool,
                               has_shortcut=has_shortcut, learned_sc=learned_sc,
                               out_scale=out_scale)
    return pl.pallas_call(
        kernel,
        out_shape=out_shape,
        grid=(B, nrt),
        in_specs=in_specs,
        out_specs=out_specs,
        compiler_params=pltpu.CompilerParams(
            dimension_semantics=("parallel", "parallel"),
            vmem_limit_bytes=32 * 1024 * 1024),
    )(*args)


# -----------------------------------------------------------------------------
# Head kernel: LeakyReLU -> 4x4 valid conv -> LeakyReLU -> domain-selected Linear
# -----------------------------------------------------------------------------
def _head_kernel(y_ref, h_ref, w4_ref, b4_ref, wl_ref, bl_ref, o_ref):
    del y_ref  # only consumed by the index_maps (per-sample domain gather)
    h = _lrelu(h_ref[0])                                        # (1, 16*C)
    t = jnp.dot(h.astype(jnp.bfloat16), w4_ref[...],
                preferred_element_type=jnp.float32) + b4_ref[...]
    t = _lrelu(t)                                               # (1, C)
    s = jnp.dot(t.astype(jnp.bfloat16), wl_ref[0],
                preferred_element_type=jnp.float32) + bl_ref[0]
    o_ref[...] = s.reshape(o_ref.shape)


def style_head(h_flat, y, w4, b4, wl, bl):
    B, _, K = h_flat.shape
    C = w4.shape[-1]
    _, _, S = wl.shape
    y = y.astype(jnp.int32)

    grid_spec = pltpu.PrefetchScalarGridSpec(
        num_scalar_prefetch=1,
        grid=(B,),
        in_specs=[
            pl.BlockSpec((1, 1, K), lambda b, y_ref: (b, 0, 0)),
            pl.BlockSpec((K, C), lambda b, y_ref: (0, 0)),
            pl.BlockSpec((1, C), lambda b, y_ref: (0, 0)),
            pl.BlockSpec((1, C, S), lambda b, y_ref: (y_ref[b], 0, 0)),
            pl.BlockSpec((1, 1, S), lambda b, y_ref: (y_ref[b], 0, 0)),
        ],
        out_specs=pl.BlockSpec((1, 1, S), lambda b, y_ref: (b, 0, 0)),
    )
    out = pl.pallas_call(
        _head_kernel,
        out_shape=jax.ShapeDtypeStruct((B, 1, S), jnp.float32),
        grid_spec=grid_spec,
        compiler_params=pltpu.CompilerParams(
            dimension_semantics=("arbitrary",),
            vmem_limit_bytes=32 * 1024 * 1024),
    )(y, h_flat, w4, b4, wl, bl)
    return out.reshape(B, S)


# -----------------------------------------------------------------------------
# Parameters (deterministic synthetic init, PyTorch-equivalent topology)
# -----------------------------------------------------------------------------
def init_params(key, *, img_size=16, style_dim=64, num_domains=2,
                max_conv_dim=64, base_dim=None):
    # PyTorch: dim_in = 2 ** 14 // img_size.  `base_dim` overrides it so the demo stays
    # small while keeping the exact StyleEncoder topology.
    dim_in = base_dim if base_dim is not None else 2 ** 14 // img_size
    repeat_num = int(math.log2(img_size)) - 2
    ks = iter(jax.random.split(key, 8 + 6 * repeat_num))

    def nrm(shape, scale=0.1):
        return scale * jax.random.normal(next(ks), shape, jnp.float32)

    params = {
        "stem_w": nrm((3, 3, 3, dim_in)).astype(jnp.bfloat16),   # (kh, kw, Cin, Cout)
        "stem_b": nrm((1, dim_in)),
        "blocks": [],
    }
    d_in = dim_in
    d_out = dim_in
    for _ in range(repeat_num):
        d_out = min(d_in * 2, max_conv_dim)
        blk = {
            "conv1_w": nrm((3, 3, d_in, d_in)).astype(jnp.bfloat16),
            "conv1_b": nrm((1, d_in)),
            "conv2_w": nrm((3, 3, d_in, d_out)).astype(jnp.bfloat16),
            "conv2_b": nrm((1, d_out)),
            "sc_w": (nrm((d_in, d_out)).astype(jnp.bfloat16) if d_in != d_out else None),
        }
        params["blocks"].append(blk)
        d_in = d_out
    params["conv4_w"] = nrm((4 * 4 * d_out, d_out)).astype(jnp.bfloat16)  # (kh,kw,Cin)->Cout
    params["conv4_b"] = nrm((1, d_out))
    params["lin_w"] = nrm((num_domains, d_out, style_dim)).astype(jnp.bfloat16)
    params["lin_b"] = nrm((num_domains, 1, style_dim))
    return params


# -----------------------------------------------------------------------------
# Full StyleEncoder forward (matches PyTorch StyleEncoder.forward)
# -----------------------------------------------------------------------------
def style_encoder_forward(x_nchw, y, params):
    x = jnp.transpose(x_nchw, (0, 2, 3, 1)).astype(jnp.float32)   # NCHW -> NHWC

    # stem: Conv2d(3, dim_in, 3, 1, 1)
    h = conv3x3_block(x, params["stem_w"], params["stem_b"], pre_act=False, pool=False)

    # ResBlk(dim_in, dim_out, downsample=True) x repeat_num
    for blk in params["blocks"]:
        B, H, W, Cin = h.shape
        c1, xs_flat = conv3x3_block(h, blk["conv1_w"], blk["conv1_b"],
                                    pre_act=True, pool=True)
        c1out = blk["conv1_w"].shape[-1]
        h1 = c1.reshape(B, H // 2, W // 2, c1out)                 # avg_pool(conv1(lrelu(h)))
        xs = xs_flat.reshape(B, H // 2, W // 2, Cin)              # avg_pool(h) for the shortcut
        h = conv3x3_block(h1, blk["conv2_w"], blk["conv2_b"],
                          pre_act=True, pool=False,
                          shortcut=xs, sc_w=blk["sc_w"],
                          out_scale=_INV_SQRT2)

    # LeakyReLU -> Conv2d(d, d, 4, 1, 0) -> LeakyReLU -> domain-selected Linear
    B = h.shape[0]
    feat = h.shape[1] * h.shape[2] * h.shape[3]                   # 4*4*dim_out
    h_flat = h.reshape(B, 1, feat)
    s = style_head(h_flat, y, params["conv4_w"], params["conv4_b"],
                   params["lin_w"], params["lin_b"])
    return s


if __name__ == "__main__":
    IMG, BASE_DIM, STYLE_DIM, NUM_DOMAINS, MAX_DIM, BATCH = 16, 16, 64, 2, 64, 2

    key = jax.random.PRNGKey(0)
    kx, ky, kp = jax.random.split(key, 3)
    x = jax.random.normal(kx, (BATCH, 3, IMG, IMG), jnp.float32)  # NCHW, like PyTorch
    y = jax.random.randint(ky, (BATCH,), 0, NUM_DOMAINS, dtype=jnp.int32)
    params = init_params(kp, img_size=IMG, style_dim=STYLE_DIM,
                         num_domains=NUM_DOMAINS, max_conv_dim=MAX_DIM,
                         base_dim=BASE_DIM)

    fwd = jax.jit(style_encoder_forward)
    s = jax.block_until_ready(fwd(x, y, params))
    assert s.shape == (BATCH, STYLE_DIM), s.shape
    assert bool(jnp.all(jnp.isfinite(s)))
    print("KERNEL_OK")
</pallas_src>

<mosaic_0001>
module attributes {stable_mosaic.version = 11 : i64} {
  func.func @kernel(%arg0: i32, %arg1: i32, %arg2: memref<1x8x16x3xf32, #tpu.memory_space<vmem>>, %arg3: memref<1x1x16x3xf32, #tpu.memory_space<vmem>>, %arg4: memref<1x1x16x3xf32, #tpu.memory_space<vmem>>, %arg5: memref<3x3x3x16xbf16, #tpu.memory_space<vmem>>, %arg6: memref<1x16xf32, #tpu.memory_space<vmem>>, %arg7: memref<1x8x16x16xf32, #tpu.memory_space<vmem>>) attributes {dimension_semantics = [#tpu.dimension_semantics<parallel>, #tpu.dimension_semantics<parallel>], iteration_bounds = array<i64: 2, 2>, scalar_prefetch = 0 : i64, scratch_operands = 0 : i64, tpu.core_type = #tpu.core_type<tc>, window_params = [{transform_indices = @transform_0, window_bounds = array<i64: 1, 8, 16, 3>}, {transform_indices = @transform_1, window_bounds = array<i64: 1, 1, 16, 3>}, {transform_indices = @transform_2, window_bounds = array<i64: 1, 1, 16, 3>}, {pipeline_mode = #tpu.pipeline_mode<synchronous>, transform_indices = @transform_3, window_bounds = array<i64: 3, 3, 3, 16>}, {pipeline_mode = #tpu.pipeline_mode<synchronous>, transform_indices = @transform_4, window_bounds = array<i64: 1, 16>}, {transform_indices = @transform_5, window_bounds = array<i64: 1, 8, 16, 16>}]} {
    %c0 = arith.constant 0 : index
    %c0_0 = arith.constant 0 : index
    %c0_1 = arith.constant 0 : index
    %c0_2 = arith.constant 0 : index
    %0 = vector.load %arg2[%c0, %c0_0, %c0_1, %c0_2] : memref<1x8x16x3xf32, #tpu.memory_space<vmem>>, vector<1x8x16x3xf32>
    %c0_i32 = arith.constant 0 : i32
    %1 = arith.cmpi eq, %arg1, %c0_i32 : i32
    %c0_3 = arith.constant 0 : index
    %c0_4 = arith.constant 0 : index
    %c0_5 = arith.constant 0 : index
    %c0_6 = arith.constant 0 : index
    %2 = vector.load %arg3[%c0_3, %c0_4, %c0_5, %c0_6] : memref<1x1x16x3xf32, #tpu.memory_space<vmem>>, vector<1x1x16x3xf32>
    %cst = arith.constant 0.000000e+00 : f32
    %3 = vector.broadcast %cst : f32 to vector<1x1x16x3xf32>
    %4 = arith.select %1, %3, %2 : vector<1x1x16x3xf32>
    %c1_i32 = arith.constant 1 : i32
    %5 = arith.cmpi eq, %arg1, %c1_i32 : i32
    %c0_7 = arith.constant 0 : index
    %c0_8 = arith.constant 0 : index
    %c0_9 = arith.constant 0 : index
    %c0_10 = arith.constant 0 : index
    %6 = vector.load %arg4[%c0_7, %c0_8, %c0_9, %c0_10] : memref<1x1x16x3xf32, #tpu.memory_space<vmem>>, vector<1x1x16x3xf32>
    %cst_11 = arith.constant 0.000000e+00 : f32
    %7 = vector.broadcast %cst_11 : f32 to vector<1x1x16x3xf32>
    %8 = arith.select %5, %7, %6 : vector<1x1x16x3xf32>
    %9 = tpu.concatenate %4, %0, %8 in 1 : vector<1x1x16x3xf32>, vector<1x8x16x3xf32>, vector<1x1x16x3xf32> -> vector<1x10x16x3xf32>
    %cst_12 = arith.constant 0.000000e+00 : f32
    %10 = vector.broadcast %cst_12 : f32 to vector<1x10x1x3xf32>
    %cst_13 = arith.constant 0.000000e+00 : f32
    %11 = vector.broadcast %cst_13 : f32 to vector<1x10x1x3xf32>
    %12 = tpu.concatenate %10, %9, %11 in 2 : vector<1x10x1x3xf32>, vector<1x10x16x3xf32>, vector<1x10x1x3xf32> -> vector<1x10x18x3xf32>
    %13 = vector.shape_cast %12 : vector<1x10x18x3xf32> to vector<10x18x3xf32>
    %c0_14 = arith.constant 0 : index
    %c0_15 = arith.constant 0 : index
    %c0_16 = arith.constant 0 : index
    %c0_17 = arith.constant 0 : index
    %14 = vector.load %arg5[%c0_14, %c0_15, %c0_16, %c0_17] : memref<3x3x3x16xbf16, #tpu.memory_space<vmem>>, vector<3x3x3x16xbf16>
    %cst_18 = arith.constant 0.000000e+00 : f32
    %15 = vector.broadcast %cst_18 : f32 to vector<128x16xf32>
    %16 = vector.extract_strided_slice %13 {offsets = [0, 0, 0], sizes = [8, 16, 3], strides = [1, 1, 1]} : vector<10x18x3xf32> to vector<8x16x3xf32>
    %17 = vector.shape_cast %16 : vector<8x16x3xf32> to vector<128x3xf32>
    %18 = arith.truncf %17 : vector<128x3xf32> to vector<128x3xbf16>
    %19 = vector.extract_strided_slice %14 {offsets = [0, 0, 0, 0], sizes = [1, 1, 3, 16], strides = [1, 1, 1, 1]} : vector<3x3x3x16xbf16> to vector<1x1x3x16xbf16>
    %20 = vector.shape_cast %19 : vector<1x1x3x16xbf16> to vector<3x16xbf16>
    %cst_19 = arith.constant dense<0.000000e+00> : vector<128x16xf32>
    %21 = tpu.matmul %18, %20, %cst_19 {dimension_numbers = #tpu.dot_dimension_numbers<[1], [0], [0], [1], [0, 0, 1, 1], [], []>} : vector<128x3xbf16>, vector<3x16xbf16>, vector<128x16xf32> -> vector<128x16xf32>
    %22 = arith.addf %15, %21 : vector<128x16xf32>
    %23 = vector.extract_strided_slice %13 {offsets = [0, 1, 0], sizes = [8, 16, 3], strides = [1, 1, 1]} : vector<10x18x3xf32> to vector<8x16x3xf32>
    %24 = vector.shape_cast %23 : vector<8x16x3xf32> to vector<128x3xf32>
    %25 = arith.truncf %24 : vector<128x3xf32> to vector<128x3xbf16>
    %26 = vector.extract_strided_slice %14 {offsets = [0, 1, 0, 0], sizes = [1, 1, 3, 16], strides = [1, 1, 1, 1]} : vector<3x3x3x16xbf16> to vector<1x1x3x16xbf16>
    %27 = vector.shape_cast %26 : vector<1x1x3x16xbf16> to vector<3x16xbf16>
    %cst_20 = arith.constant dense<0.000000e+00> : vector<128x16xf32>
    %28 = tpu.matmul %25, %27, %cst_20 {dimension_numbers = #tpu.dot_dimension_numbers<[1], [0], [0], [1], [0, 0, 1, 1], [], []>} : vector<128x3xbf16>, vector<3x16xbf16>, vector<128x16xf32> -> vector<128x16xf32>
    %29 = arith.addf %22, %28 : vector<128x16xf32>
    %30 = vector.extract_strided_slice %13 {offsets = [0, 2, 0], sizes = [8, 16, 3], strides = [1, 1, 1]} : vector<10x18x3xf32> to vector<8x16x3xf32>
    %31 = vector.shape_cast %30 : vector<8x16x3xf32> to vector<128x3xf32>
    %32 = arith.truncf %31 : vector<128x3xf32> to vector<128x3xbf16>
    %33 = vector.extract_strided_slice %14 {offsets = [0, 2, 0, 0], sizes = [1, 1, 3, 16], strides = [1, 1, 1, 1]} : vector<3x3x3x16xbf16> to vector<1x1x3x16xbf16>
    %34 = vector.shape_cast %33 : vector<1x1x3x16xbf16> to vector<3x16xbf16>
    %cst_21 = arith.constant dense<0.000000e+00> : vector<128x16xf32>
    %35 = tpu.matmul %32, %34, %cst_21 {dimension_numbers = #tpu.dot_dimension_numbers<[1], [0], [0], [1], [0, 0, 1, 1], [], []>} : vector<128x3xbf16>, vector<3x16xbf16>, vector<128x16xf32> -> vector<128x16xf32>
    %36 = arith.addf %29, %35 : vector<128x16xf32>
    %37 = vector.extract_strided_slice %13 {offsets = [1, 0, 0], sizes = [8, 16, 3], strides = [1, 1, 1]} : vector<10x18x3xf32> to vector<8x16x3xf32>
    %38 = vector.shape_cast %37 : vector<8x16x3xf32> to vector<128x3xf32>
    %39 = arith.truncf %38 : vector<128x3xf32> to vector<128x3xbf16>
    %40 = vector.extract_strided_slice %14 {offsets = [1, 0, 0, 0], sizes = [1, 1, 3, 16], strides = [1, 1, 1, 1]} : vector<3x3x3x16xbf16> to vector<1x1x3x16xbf16>
    %41 = vector.shape_cast %40 : vector<1x1x3x16xbf16> to vector<3x16xbf16>
    %cst_22 = arith.constant dense<0.000000e+00> : vector<128x16xf32>
    %42 = tpu.matmul %39, %41, %cst_22 {dimension_numbers = #tpu.dot_dimension_numbers<[1], [0], [0], [1], [0, 0, 1, 1], [], []>} : vector<128x3xbf16>, vector<3x16xbf16>, vector<128x16xf32> -> vector<128x16xf32>
    %43 = arith.addf %36, %42 : vector<128x16xf32>
    %44 = vector.extract_strided_slice %13 {offsets = [1, 1, 0], sizes = [8, 16, 3], strides = [1, 1, 1]} : vector<10x18x3xf32> to vector<8x16x3xf32>
    %45 = vector.shape_cast %44 : vector<8x16x3xf32> to vector<128x3xf32>
    %46 = arith.truncf %45 : vector<128x3xf32> to vector<128x3xbf16>
    %47 = vector.extract_strided_slice %14 {offsets = [1, 1, 0, 0], sizes = [1, 1, 3, 16], strides = [1, 1, 1, 1]} : vector<3x3x3x16xbf16> to vector<1x1x3x16xbf16>
    %48 = vector.shape_cast %47 : vector<1x1x3x16xbf16> to vector<3x16xbf16>
    %cst_23 = arith.constant dense<0.000000e+00> : vector<128x16xf32>
    %49 = tpu.matmul %46, %48, %cst_23 {dimension_numbers = #tpu.dot_dimension_numbers<[1], [0], [0], [1], [0, 0, 1, 1], [], []>} : vector<128x3xbf16>, vector<3x16xbf16>, vector<128x16xf32> -> vector<128x16xf32>
    %50 = arith.addf %43, %49 : vector<128x16xf32>
    %51 = vector.extract_strided_slice %13 {offsets = [1, 2, 0], sizes = [8, 16, 3], strides = [1, 1, 1]} : vector<10x18x3xf32> to vector<8x16x3xf32>
    %52 = vector.shape_cast %51 : vector<8x16x3xf32> to vector<128x3xf32>
    %53 = arith.truncf %52 : vector<128x3xf32> to vector<128x3xbf16>
    %54 = vector.extract_strided_slice %14 {offsets = [1, 2, 0, 0], sizes = [1, 1, 3, 16], strides = [1, 1, 1, 1]} : vector<3x3x3x16xbf16> to vector<1x1x3x16xbf16>
    %55 = vector.shape_cast %54 : vector<1x1x3x16xbf16> to vector<3x16xbf16>
    %cst_24 = arith.constant dense<0.000000e+00> : vector<128x16xf32>
    %56 = tpu.matmul %53, %55, %cst_24 {dimension_numbers = #tpu.dot_dimension_numbers<[1], [0], [0], [1], [0, 0, 1, 1], [], []>} : vector<128x3xbf16>, vector<3x16xbf16>, vector<128x16xf32> -> vector<128x16xf32>
    %57 = arith.addf %50, %56 : vector<128x16xf32>
    %58 = vector.extract_strided_slice %13 {offsets = [2, 0, 0], sizes = [8, 16, 3], strides = [1, 1, 1]} : vector<10x18x3xf32> to vector<8x16x3xf32>
    %59 = vector.shape_cast %58 : vector<8x16x3xf32> to vector<128x3xf32>
    %60 = arith.truncf %59 : vector<128x3xf32> to vector<128x3xbf16>
    %61 = vector.extract_strided_slice %14 {offsets = [2, 0, 0, 0], sizes = [1, 1, 3, 16], strides = [1, 1, 1, 1]} : vector<3x3x3x16xbf16> to vector<1x1x3x16xbf16>
    %62 = vector.shape_cast %61 : vector<1x1x3x16xbf16> to vector<3x16xbf16>
    %cst_25 = arith.constant dense<0.000000e+00> : vector<128x16xf32>
    %63 = tpu.matmul %60, %62, %cst_25 {dimension_numbers = #tpu.dot_dimension_numbers<[1], [0], [0], [1], [0, 0, 1, 1], [], []>} : vector<128x3xbf16>, vector<3x16xbf16>, vector<128x16xf32> -> vector<128x16xf32>
    %64 = arith.addf %57, %63 : vector<128x16xf32>
    %65 = vector.extract_strided_slice %13 {offsets = [2, 1, 0], sizes = [8, 16, 3], strides = [1, 1, 1]} : vector<10x18x3xf32> to vector<8x16x3xf32>
    %66 = vector.shape_cast %65 : vector<8x16x3xf32> to vector<128x3xf32>
    %67 = arith.truncf %66 : vector<128x3xf32> to vector<128x3xbf16>
    %68 = vector.extract_strided_slice %14 {offsets = [2, 1, 0, 0], sizes = [1, 1, 3, 16], strides = [1, 1, 1, 1]} : vector<3x3x3x16xbf16> to vector<1x1x3x16xbf16>
    %69 = vector.shape_cast %68 : vector<1x1x3x16xbf16> to vector<3x16xbf16>
    %cst_26 = arith.constant dense<0.000000e+00> : vector<128x16xf32>
    %70 = tpu.matmul %67, %69, %cst_26 {dimension_numbers = #tpu.dot_dimension_numbers<[1], [0], [0], [1], [0, 0, 1, 1], [], []>} : vector<128x3xbf16>, vector<3x16xbf16>, vector<128x16xf32> -> vector<128x16xf32>
    %71 = arith.addf %64, %70 : vector<128x16xf32>
    %72 = vector.extract_strided_slice %13 {offsets = [2, 2, 0], sizes = [8, 16, 3], strides = [1, 1, 1]} : vector<10x18x3xf32> to vector<8x16x3xf32>
    %73 = vector.shape_cast %72 : vector<8x16x3xf32> to vector<128x3xf32>
    %74 = arith.truncf %73 : vector<128x3xf32> to vector<128x3xbf16>
    %75 = vector.extract_strided_slice %14 {offsets = [2, 2, 0, 0], sizes = [1, 1, 3, 16], strides = [1, 1, 1, 1]} : vector<3x3x3x16xbf16> to vector<1x1x3x16xbf16>
    %76 = vector.shape_cast %75 : vector<1x1x3x16xbf16> to vector<3x16xbf16>
    %cst_27 = arith.constant dense<0.000000e+00> : vector<128x16xf32>
    %77 = tpu.matmul %74, %76, %cst_27 {dimension_numbers = #tpu.dot_dimension_numbers<[1], [0], [0], [1], [0, 0, 1, 1], [], []>} : vector<128x3xbf16>, vector<3x16xbf16>, vector<128x16xf32> -> vector<128x16xf32>
    %78 = arith.addf %71, %77 : vector<128x16xf32>
    %c0_28 = arith.constant 0 : index
    %c0_29 = arith.constant 0 : index
    %79 = vector.load %arg6[%c0_28, %c0_29] : memref<1x16xf32, #tpu.memory_space<vmem>>, vector<1x16xf32>
    %80 = vector.broadcast %79 : vector<1x16xf32> to vector<128x16xf32>
    %81 = arith.addf %78, %80 : vector<128x16xf32>
    %cst_30 = arith.constant 1.000000e+00 : f32
    %82 = vector.broadcast %cst_30 : f32 to vector<128x16xf32>
    %83 = arith.mulf %81, %82 : vector<128x16xf32>
    %84 = vector.shape_cast %83 : vector<128x16xf32> to vector<8x16x16xf32>
    %85 = vector.shape_cast %84 : vector<8x16x16xf32> to vector<1x8x16x16xf32>
    %c0_31 = arith.constant 0 : index
    %c0_32 = arith.constant 0 : index
    %c0_33 = arith.constant 0 : index
    %c0_34 = arith.constant 0 : index
    %86 = vector.load %arg7[%c0_31, %c0_32, %c0_33, %c0_34] : memref<1x8x16x16xf32, #tpu.memory_space<vmem>>, vector<1x8x16x16xf32>
    tpu.vector_store %arg7[%c0_31, %c0_32, %c0_33, %c0_34], %85 {strides = array<i32>} : memref<1x8x16x16xf32, #tpu.memory_space<vmem>>, vector<1x8x16x16xf32>,
    return
  }
  func.func @transform_0(%arg0: i32, %arg1: i32) -> (i32, i32, i32, i32) {
    %c0_i32 = arith.constant 0 : i32
    %c0_i32_0 = arith.constant 0 : i32
    %c0_i32_1 = arith.constant 0 : i32
    return %arg0, %arg1, %c0_i32, %c0_i32_0 : i32, i32, i32, i32
  }
  func.func @transform_1(%arg0: i32, %arg1: i32) -> (i32, i32, i32, i32) {
    %c8_i32 = arith.constant 8 : i32
    %0 = arith.muli %arg1, %c8_i32 : i32
    %c1_i32 = arith.constant 1 : i32
    %1 = arith.subi %0, %c1_i32 : i32
    %c0_i32 = arith.constant 0 : i32
    %2 = arith.maxsi %1, %c0_i32 : i32
    %c0_i32_0 = arith.constant 0 : i32
    %c0_i32_1 = arith.constant 0 : i32
    %c0_i32_2 = arith.constant 0 : i32
    return %arg0, %2, %c0_i32_0, %c0_i32_1 : i32, i32, i32, i32
  }
  func.func @transform_2(%arg0: i32, %arg1: i32) -> (i32, i32, i32, i32) {
    %c8_i32 = arith.constant 8 : i32
    %0 = arith.muli %arg1, %c8_i32 : i32
    %c8_i32_0 = arith.constant 8 : i32
    %1 = arith.addi %0, %c8_i32_0 : i32
    %c15_i32 = arith.constant 15 : i32
    %2 = arith.minsi %1, %c15_i32 : i32
    %c0_i32 = arith.constant 0 : i32
    %c0_i32_1 = arith.constant 0 : i32
    %c0_i32_2 = arith.constant 0 : i32
    return %arg0, %2, %c0_i32, %c0_i32_1 : i32, i32, i32, i32
  }
  func.func @transform_3(%arg0: i32, %arg1: i32) -> (i32, i32, i32, i32) {
    %c0_i32 = arith.constant 0 : i32
    %c0_i32_0 = arith.constant 0 : i32
    %c0_i32_1 = arith.constant 0 : i32
    %c0_i32_2 = arith.constant 0 : i32
    %c0_i32_3 = arith.constant 0 : i32
    return %c0_i32, %c0_i32_0, %c0_i32_1, %c0_i32_2 : i32, i32, i32, i32
  }
  func.func @transform_4(%arg0: i32, %arg1: i32) -> (i32, i32) {
    %c0_i32 = arith.constant 0 : i32
    %c0_i32_0 = arith.constant 0 : i32
    %c0_i32_1 = arith.constant 0 : i32
    return %c0_i32, %c0_i32_0 : i32, i32
  }
  func.func @transform_5(%arg0: i32, %arg1: i32) -> (i32, i32, i32, i32) {
    %c0_i32 = arith.constant 0 : i32
    %c0_i32_0 = arith.constant 0 : i32
    %c0_i32_1 = arith.constant 0 : i32
    return %arg0, %arg1, %c0_i32, %c0_i32_0 : i32, i32, i32, i32
  }
}

module attributes {stable_mosaic.version = 11 : i64} {
  func.func @kernel(%arg0: i32, %arg1: i32, %arg2: memref<1x8x16x16xf32, #tpu.memory_space<vmem>>, %arg3: memref<1x1x16x16xf32, #tpu.memory_space<vmem>>, %arg4: memref<1x1x16x16xf32, #tpu.memory_space<vmem>>, %arg5: memref<3x3x16x16xbf16, #tpu.memory_space<vmem>>, %arg6: memref<1x16xf32, #tpu.memory_space<vmem>>, %arg7: memref<32x128xf32, #tpu.memory_space<vmem>>, %arg8: memref<1x32x16xf32, #tpu.memory_space<vmem>>, %arg9: memref<1x32x16xf32, #tpu.memory_space<vmem>>) attributes {dimension_semantics = [#tpu.dimension_semantics<parallel>, #tpu.dimension_semantics<parallel>], iteration_bounds = array<i64: 2, 2>, scalar_prefetch = 0 : i64, scratch_operands = 0 : i64, tpu.core_type = #tpu.core_type<tc>, window_params = [{transform_indices = @transform_0, window_bounds = array<i64: 1, 8, 16, 16>}, {transform_indices = @transform_1, window_bounds = array<i64: 1, 1, 16, 16>}, {transform_indices = @transform_2, window_bounds = array<i64: 1, 1, 16, 16>}, {pipeline_mode = #tpu.pipeline_mode<synchronous>, transform_indices = @transform_3, window_bounds = array<i64: 3, 3, 16, 16>}, {pipeline_mode = #tpu.pipeline_mode<synchronous>, transform_indices = @transform_4, window_bounds = array<i64: 1, 16>}, {pipeline_mode = #tpu.pipeline_mode<synchronous>, transform_indices = @transform_5, window_bounds = array<i64: 32, 128>}, {transform_indices = @transform_6, window_bounds = array<i64: 1, 32, 16>}, {transform_indices = @transform_7, window_bounds = array<i64: 1, 32, 16>}]} {
    %c0 = arith.constant 0 : index
    %c0_0 = arith.constant 0 : index
    %c0_1 = arith.constant 0 : index
    %c0_2 = arith.constant 0 : index
    %0 = vector.load %arg2[%c0, %c0_0, %c0_1, %c0_2] : memref<1x8x16x16xf32, #tpu.memory_space<vmem>>, vector<1x8x16x16xf32>
    %c0_i32 = arith.constant 0 : i32
    %1 = arith.cmpi eq, %arg1, %c0_i32 : i32
    %c0_3 = arith.constant 0 : index
    %c0_4 = arith.constant 0 : index
    %c0_5 = arith.constant 0 : index
    %c0_6 = arith.constant 0 : index
    %2 = vector.load %arg3[%c0_3, %c0_4, %c0_5, %c0_6] : memref<1x1x16x16xf32, #tpu.memory_space<vmem>>, vector<1x1x16x16xf32>
    %cst = arith.constant 0.000000e+00 : f32
    %3 = vector.broadcast %cst : f32 to vector<1x1x16x16xf32>
    %4 = arith.select %1, %3, %2 : vector<1x1x16x16xf32>
    %c1_i32 = arith.constant 1 : i32
    %5 = arith.cmpi eq, %arg1, %c1_i32 : i32
    %c0_7 = arith.constant 0 : index
    %c0_8 = arith.constant 0 : index
    %c0_9 = arith.constant 0 : index
    %c0_10 = arith.constant 0 : index
    %6 = vector.load %arg4[%c0_7, %c0_8, %c0_9, %c0_10] : memref<1x1x16x16xf32, #tpu.memory_space<vmem>>, vector<1x1x16x16xf32>
    %cst_11 = arith.constant 0.000000e+00 : f32
    %7 = vector.broadcast %cst_11 : f32 to vector<1x1x16x16xf32>
    %8 = arith.select %5, %7, %6 : vector<1x1x16x16xf32>
    %9 = tpu.concatenate %4, %0, %8 in 1 : vector<1x1x16x16xf32>, vector<1x8x16x16xf32>, vector<1x1x16x16xf32> -> vector<1x10x16x16xf32>
    %cst_12 = arith.constant 0.000000e+00 : f32
    %10 = vector.broadcast %cst_12 : f32 to vector<1x10x16x16xf32>
    %11 = arith.cmpf oge, %9, %10 : vector<1x10x16x16xf32>
    %cst_13 = arith.constant 2.000000e-01 : f32
    %12 = vector.broadcast %cst_13 : f32 to vector<1x10x16x16xf32>
    %13 = arith.mulf %12, %9 : vector<1x10x16x16xf32>
    %14 = arith.select %11, %9, %13 : vector<1x10x16x16xi1>, vector<1x10x16x16xf32>
    %cst_14 = arith.constant 0.000000e+00 : f32
    %15 = vector.broadcast %cst_14 : f32 to vector<1x10x1x16xf32>
    %cst_15 = arith.constant 0.000000e+00 : f32
    %16 = vector.broadcast %cst_15 : f32 to vector<1x10x1x16xf32>
    %17 = tpu.concatenate %15, %14, %16 in 2 : vector<1x10x1x16xf32>, vector<1x10x16x16xf32>, vector<1x10x1x16xf32> -> vector<1x10x18x16xf32>
    %18 = vector.shape_cast %17 : vector<1x10x18x16xf32> to vector<10x18x16xf32>
    %c0_16 = arith.constant 0 : index
    %c0_17 = arith.constant 0 : index
    %c0_18 = arith.constant 0 : index
    %c0_19 = arith.constant 0 : index
    %19 = vector.load %arg5[%c0_16, %c0_17, %c0_18, %c0_19] : memref<3x3x16x16xbf16, #tpu.memory_space<vmem>>, vector<3x3x16x16xbf16>
    %cst_20 = arith.constant 0.000000e+00 : f32
    %20 = vector.broadcast %cst_20 : f32 to vector<128x16xf32>
    %21 = vector.extract_strided_slice %18 {offsets = [0, 0, 0], sizes = [8, 16, 16], strides = [1, 1, 1]} : vector<10x18x16xf32> to vector<8x16x16xf32>
    %22 = vector.shape_cast %21 : vector<8x16x16xf32> to vector<128x16xf32>
    %23 = arith.truncf %22 : vector<128x16xf32> to vector<128x16xbf16>
    %24 = vector.extract_strided_slice %19 {offsets = [0, 0, 0, 0], sizes = [1, 1, 16, 16], strides = [1, 1, 1, 1]} : vector<3x3x16x16xbf16> to vector<1x1x16x16xbf16>
    %25 = vector.shape_cast %24 : vector<1x1x16x16xbf16> to vector<16x16xbf16>
    %cst_21 = arith.constant dense<0.000000e+00> : vector<128x16xf32>
    %26 = tpu.matmul %23, %25, %cst_21 {dimension_numbers = #tpu.dot_dimension_numbers<[1], [0], [0], [1], [0, 0, 1, 1], [], []>} : vector<128x16xbf16>, vector<16x16xbf16>, vector<128x16xf32> -> vector<128x16xf32>
    %27 = arith.addf %20, %26 : vector<128x16xf32>
    %28 = vector.extract_strided_slice %18 {offsets = [0, 1, 0], sizes = [8, 16, 16], strides = [1, 1, 1]} : vector<10x18x16xf32> to vector<8x16x16xf32>
    %29 = vector.shape_cast %28 : vector<8x16x16xf32> to vector<128x16xf32>
    %30 = arith.truncf %29 : vector<128x16xf32> to vector<128x16xbf16>
    %31 = vector.extract_strided_slice %19 {offsets = [0, 1, 0, 0], sizes = [1, 1, 16, 16], strides = [1, 1, 1, 1]} : vector<3x3x16x16xbf16> to vector<1x1x16x16xbf16>
    %32 = vector.shape_cast %31 : vector<1x1x16x16xbf16> to vector<16x16xbf16>
    %cst_22 = arith.constant dense<0.000000e+00> : vector<128x16xf32>
    %33 = tpu.matmul %30, %32, %cst_22 {dimension_numbers = #tpu.dot_dimension_numbers<[1], [0], [0], [1], [0, 0, 1, 1], [], []>} : vector<128x16xbf16>, vector<16x16xbf16>, vector<128x16xf32> -> vector<128x16xf32>
    %34 = arith.addf %27, %33 : vector<128x16xf32>
    %35 = vector.extract_strided_slice %18 {offsets = [0, 2, 0], sizes = [8, 16, 16], strides = [1, 1, 1]} : vector<10x18x16xf32> to vector<8x16x16xf32>
    %36 = vector.shape_cast %35 : vector<8x16x16xf32> to vector<128x16xf32>
    %37 = arith.truncf %36 : vector<128x16xf32> to vector<128x16xbf16>
    %38 = vector.extract_strided_slice %19 {offsets = [0, 2, 0, 0], sizes = [1, 1, 16, 16], strides = [1, 1, 1, 1]} : vector<3x3x16x16xbf16> to vector<1x1x16x16xbf16>
    %39 = vector.shape_cast %38 : vector<1x1x16x16xbf16> to vector<16x16xbf16>
    %cst_23 = arith.constant dense<0.000000e+00> : vector<128x16xf32>
    %40 = tpu.matmul %37, %39, %cst_23 {dimension_numbers = #tpu.dot_dimension_numbers<[1], [0], [0], [1], [0, 0, 1, 1], [], []>} : vector<128x16xbf16>, vector<16x16xbf16>, vector<128x16xf32> -> vector<128x16xf32>
    %41 = arith.addf %34, %40 : vector<128x16xf32>
    %42 = vector.extract_strided_slice %18 {offsets = [1, 0, 0], sizes = [8, 16, 16], strides = [1, 1, 1]} : vector<10x18x16xf32> to vector<8x16x16xf32>
    %43 = vector.shape_cast %42 : vector<8x16x16xf32> to vector<128x16xf32>
    %44 = arith.truncf %43 : vector<128x16xf32> to vector<128x16xbf16>
    %45 = vector.extract_strided_slice %19 {offsets = [1, 0, 0, 0], sizes = [1, 1, 16, 16], strides = [1, 1, 1, 1]} : vector<3x3x16x16xbf16> to vector<1x1x16x16xbf16>
    %46 = vector.shape_cast %45 : vector<1x1x16x16xbf16> to vector<16x16xbf16>
    %cst_24 = arith.constant dense<0.000000e+00> : vector<128x16xf32>
    %47 = tpu.matmul %44, %46, %cst_24 {dimension_numbers = #tpu.dot_dimension_numbers<[1], [0], [0], [1], [0, 0, 1, 1], [], []>} : vector<128x16xbf16>, vector<16x16xbf16>, vector<128x16xf32> -> vector<128x16xf32>
    %48 = arith.addf %41, %47 : vector<128x16xf32>
    %49 = vector.extract_strided_slice %18 {offsets = [1, 1, 0], sizes = [8, 16, 16], strides = [1, 1, 1]} : vector<10x18x16xf32> to vector<8x16x16xf32>
    %50 = vector.shape_cast %49 : vector<8x16x16xf32> to vector<128x16xf32>
    %51 = arith.truncf %50 : vector<128x16xf32> to vector<128x16xbf16>
    %52 = vector.extract_strided_slice %19 {offsets = [1, 1, 0, 0], sizes = [1, 1, 16, 16], strides = [1, 1, 1, 1]} : vector<3x3x16x16xbf16> to vector<1x1x16x16xbf16>
    %53 = vector.shape_cast %52 : vector<1x1x16x16xbf16> to vector<16x16xbf16>
    %cst_25 = arith.constant dense<0.000000e+00> : vector<128x16xf32>
    %54 = tpu.matmul %51, %53, %cst_25 {dimension_numbers = #tpu.dot_dimension_numbers<[1], [0], [0], [1], [0, 0, 1, 1], [], []>} : vector<128x16xbf16>, vector<16x16xbf16>, vector<128x16xf32> -> vector<128x16xf32>
    %55 = arith.addf %48, %54 : vector<128x16xf32>
    %56 = vector.extract_strided_slice %18 {offsets = [1, 2, 0], sizes = [8, 16, 16], strides = [1, 1, 1]} : vector<10x18x16xf32> to vector<8x16x16xf32>
    %57 = vector.shape_cast %56 : vector<8x16x16xf32> to vector<128x16xf32>
    %58 = arith.truncf %57 : vector<128x16xf32> to vector<128x16xbf16>
    %59 = vector.extract_strided_slice %19 {offsets = [1, 2, 0, 0], sizes = [1, 1, 16, 16], strides = [1, 1, 1, 1]} : vector<3x3x16x16xbf16> to vector<1x1x16x16xbf16>
    %60 = vector.shape_cast %59 : vector<1x1x16x16xbf16> to vector<16x16xbf16>
    %cst_26 = arith.constant dense<0.000000e+00> : vector<128x16xf32>
    %61 = tpu.matmul %58, %60, %cst_26 {dimension_numbers = #tpu.dot_dimension_numbers<[1], [0], [0], [1], [0, 0, 1, 1], [], []>} : vector<128x16xbf16>, vector<16x16xbf16>, vector<128x16xf32> -> vector<128x16xf32>
    %62 = arith.addf %55, %61 : vector<128x16xf32>
    %63 = vector.extract_strided_slice %18 {offsets = [2, 0, 0], sizes = [8, 16, 16], strides = [1, 1, 1]} : vector<10x18x16xf32> to vector<8x16x16xf32>
    %64 = vector.shape_cast %63 : vector<8x16x16xf32> to vector<128x16xf32>
    %65 = arith.truncf %64 : vector<128x16xf32> to vector<128x16xbf16>
    %66 = vector.extract_strided_slice %19 {offsets = [2, 0, 0, 0], sizes = [1, 1, 16, 16], strides = [1, 1, 1, 1]} : vector<3x3x16x16xbf16> to vector<1x1x16x16xbf16>
    %67 = vector.shape_cast %66 : vector<1x1x16x16xbf16> to vector<16x16xbf16>
    %cst_27 = arith.constant dense<0.000000e+00> : vector<128x16xf32>
    %68 = tpu.matmul %65, %67, %cst_27 {dimension_numbers = #tpu.dot_dimension_numbers<[1], [0], [0], [1], [0, 0, 1, 1], [], []>} : vector<128x16xbf16>, vector<16x16xbf16>, vector<128x16xf32> -> vector<128x16xf32>
    %69 = arith.addf %62, %68 : vector<128x16xf32>
    %70 = vector.extract_strided_slice %18 {offsets = [2, 1, 0], sizes = [8, 16, 16], strides = [1, 1, 1]} : vector<10x18x16xf32> to vector<8x16x16xf32>
    %71 = vector.shape_cast %70 : vector<8x16x16xf32> to vector<128x16xf32>
    %72 = arith.truncf %71 : vector<128x16xf32> to vector<128x16xbf16>
    %73 = vector.extract_strided_slice %19 {offsets = [2, 1, 0, 0], sizes = [1, 1, 16, 16], strides = [1, 1, 1, 1]} : vector<3x3x16x16xbf16> to vector<1x1x16x16xbf16>
    %74 = vector.shape_cast %73 : vector<1x1x16x16xbf16> to vector<16x16xbf16>
    %cst_28 = arith.constant dense<0.000000e+00> : vector<128x16xf32>
    %75 = tpu.matmul %72, %74, %cst_28 {dimension_numbers = #tpu.dot_dimension_numbers<[1], [0], [0], [1], [0, 0, 1, 1], [], []>} : vector<128x16xbf16>, vector<16x16xbf16>, vector<128x16xf32> -> vector<128x16xf32>
    %76 = arith.addf %69, %75 : vector<128x16xf32>
    %77 = vector.extract_strided_slice %18 {offsets = [2, 2, 0], sizes = [8, 16, 16], strides = [1, 1, 1]} : vector<10x18x16xf32> to vector<8x16x16xf32>
    %78 = vector.shape_cast %77 : vector<8x16x16xf32> to vector<128x16xf32>
    %79 = arith.truncf %78 : vector<128x16xf32> to vector<128x16xbf16>
    %80 = vector.extract_strided_slice %19 {offsets = [2, 2, 0, 0], sizes = [1, 1, 16, 16], strides = [1, 1, 1, 1]} : vector<3x3x16x16xbf16> to vector<1x1x16x16xbf16>
    %81 = vector.shape_cast %80 : vector<1x1x16x16xbf16> to vector<16x16xbf16>
    %cst_29 = arith.constant dense<0.000000e+00> : vector<128x16xf32>
    %82 = tpu.matmul %79, %81, %cst_29 {dimension_numbers = #tpu.dot_dimension_numbers<[1], [0], [0], [1], [0, 0, 1, 1], [], []>} : vector<128x16xbf16>, vector<16x16xbf16>, vector<128x16xf32> -> vector<128x16xf32>
    %83 = arith.addf %76, %82 : vector<128x16xf32>
    %c0_30 = arith.constant 0 : index
    %c0_31 = arith.constant 0 : index
    %84 = vector.load %arg6[%c0_30, %c0_31] : memref<1x16xf32, #tpu.memory_space<vmem>>, vector<1x16xf32>
    %85 = vector.broadcast %84 : vector<1x16xf32> to vector<128x16xf32>
    %86 = arith.addf %83, %85 : vector<128x16xf32>
    %c0_32 = arith.constant 0 : index
    %c0_33 = arith.constant 0 : index
    %87 = vector.load %arg7[%c0_32, %c0_33] : memref<32x128xf32, #tpu.memory_space<vmem>>, vector<32x128xf32>
    %cst_34 = arith.constant dense<0.000000e+00> : vector<32x16xf32>
    %88 = tpu.matmul %87, %86, %cst_34 {dimension_numbers = #tpu.dot_dimension_numbers<[1], [0], [0], [1], [0, 0, 1, 1], [], []>} : vector<32x128xf32>, vector<128x16xf32>, vector<32x16xf32> -> vector<32x16xf32>
    %89 = vector.shape_cast %88 : vector<32x16xf32> to vector<1x32x16xf32>
    %c0_35 = arith.constant 0 : index
    %c0_36 = arith.constant 0 : index
    %c0_37 = arith.constant 0 : index
    %90 = vector.load %arg8[%c0_35, %c0_36, %c0_37] : memref<1x32x16xf32, #tpu.memory_space<vmem>>, vector<1x32x16xf32>
    tpu.vector_store %arg8[%c0_35, %c0_36, %c0_37], %89 {strides = array<i32>} : memref<1x32x16xf32, #tpu.memory_space<vmem>>, vector<1x32x16xf32>,
    %91 = vector.shape_cast %0 : vector<1x8x16x16xf32> to vector<8x16x16xf32>
    %92 = vector.shape_cast %91 : vector<8x16x16xf32> to vector<128x16xf32>
    %cst_38 = arith.constant dense<0.000000e+00> : vector<32x16xf32>
    %93 = tpu.matmul %87, %92, %cst_38 {dimension_numbers = #tpu.dot_dimension_numbers<[1], [0], [0], [1], [0, 0, 1, 1], [], []>} : vector<32x128xf32>, vector<128x16xf32>, vector<32x16xf32> -> vector<32x16xf32>
    %94 = vector.shape_cast %93 : vector<32x16xf32> to vector<1x32x16xf32>
    %c0_39 = arith.constant 0 : index
    %c0_40 = arith.constant 0 : index
    %c0_41 = arith.constant 0 : index
    %95 = vector.load %arg9[%c0_39, %c0_40, %c0_41] : memref<1x32x16xf32, #tpu.memory_space<vmem>>, vector<1x32x16xf32>
    tpu.vector_store %arg9[%c0_39, %c0_40, %c0_41], %94 {strides = array<i32>} : memref<1x32x16xf32, #tpu.memory_space<vmem>>, vector<1x32x16xf32>,
    return
  }
  func.func @transform_0(%arg0: i32, %arg1: i32) -> (i32, i32, i32, i32) {
    %c0_i32 = arith.constant 0 : i32
    %c0_i32_0 = arith.constant 0 : i32
    %c0_i32_1 = arith.constant 0 : i32
    return %arg0, %arg1, %c0_i32, %c0_i32_0 : i32, i32, i32, i32
  }
  func.func @transform_1(%arg0: i32, %arg1: i32) -> (i32, i32, i32, i32) {
    %c8_i32 = arith.constant 8 : i32
    %0 = arith.muli %arg1, %c8_i32 : i32
    %c1_i32 = arith.constant 1 : i32
    %1 = arith.subi %0, %c1_i32 : i32
    %c0_i32 = arith.constant 0 : i32
    %2 = arith.maxsi %1, %c0_i32 : i32
    %c0_i32_0 = arith.constant 0 : i32
    %c0_i32_1 = arith.constant 0 : i32
    %c0_i32_2 = arith.constant 0 : i32
    return %arg0, %2, %c0_i32_0, %c0_i32_1 : i32, i32, i32, i32
  }
  func.func @transform_2(%arg0: i32, %arg1: i32) -> (i32, i32, i32, i32) {
    %c8_i32 = arith.constant 8 : i32
    %0 = arith.muli %arg1, %c8_i32 : i32
    %c8_i32_0 = arith.constant 8 : i32
    %1 = arith.addi %0, %c8_i32_0 : i32
    %c15_i32 = arith.constant 15 : i32
    %2 = arith.minsi %1, %c15_i32 : i32
    %c0_i32 = arith.constant 0 : i32
    %c0_i32_1 = arith.constant 0 : i32
    %c0_i32_2 = arith.constant 0 : i32
    return %arg0, %2, %c0_i32, %c0_i32_1 : i32, i32, i32, i32
  }
  func.func @transform_3(%arg0: i32, %arg1: i32) -> (i32, i32, i32, i32) {
    %c0_i32 = arith.constant 0 : i32
    %c0_i32_0 = arith.constant 0 : i32
    %c0_i32_1 = arith.constant 0 : i32
    %c0_i32_2 = arith.constant 0 : i32
    %c0_i32_3 = arith.constant 0 : i32
    return %c0_i32, %c0_i32_0, %c0_i32_1, %c0_i32_2 : i32, i32, i32, i32
  }
  func.func @transform_4(%arg0: i32, %arg1: i32) -> (i32, i32) {
    %c0_i32 = arith.constant 0 : i32
    %c0_i32_0 = arith.constant 0 : i32
    %c0_i32_1 = arith.constant 0 : i32
    return %c0_i32, %c0_i32_0 : i32, i32
  }
  func.func @transform_5(%arg0: i32, %arg1: i32) -> (i32, i32) {
    %c0_i32 = arith.constant 0 : i32
    %c0_i32_0 = arith.constant 0 : i32
    %c0_i32_1 = arith.constant 0 : i32
    return %c0_i32, %c0_i32_0 : i32, i32
  }
  func.func @transform_6(%arg0: i32, %arg1: i32) -> (i32, i32, i32) {
    %c0_i32 = arith.constant 0 : i32
    %c0_i32_0 = arith.constant 0 : i32
    return %arg0, %arg1, %c0_i32 : i32, i32, i32
  }
  func.func @transform_7(%arg0: i32, %arg1: i32) -> (i32, i32, i32) {
    %c0_i32 = arith.constant 0 : i32
    %c0_i32_0 = arith.constant 0 : i32
    return %arg0, %arg1, %c0_i32 : i32, i32, i32
  }
}

module attributes {stable_mosaic.version = 11 : i64} {
  func.func @kernel(%arg0: i32, %arg1: i32, %arg2: memref<1x8x8x16xf32, #tpu.memory_space<vmem>>, %arg3: memref<1x1x8x16xf32, #tpu.memory_space<vmem>>, %arg4: memref<1x1x8x16xf32, #tpu.memory_space<vmem>>, %arg5: memref<3x3x16x32xbf16, #tpu.memory_space<vmem>>, %arg6: memref<1x32xf32, #tpu.memory_space<vmem>>, %arg7: memref<1x8x8x16xf32, #tpu.memory_space<vmem>>, %arg8: memref<16x32xbf16, #tpu.memory_space<vmem>>, %arg9: memref<1x8x8x32xf32, #tpu.memory_space<vmem>>) attributes {dimension_semantics = [#tpu.dimension_semantics<parallel>, #tpu.dimension_semantics<parallel>], iteration_bounds = array<i64: 2, 1>, scalar_prefetch = 0 : i64, scratch_operands = 0 : i64, tpu.core_type = #tpu.core_type<tc>, window_params = [{transform_indices = @transform_0, window_bounds = array<i64: 1, 8, 8, 16>}, {transform_indices = @transform_1, window_bounds = array<i64: 1, 1, 8, 16>}, {transform_indices = @transform_2, window_bounds = array<i64: 1, 1, 8, 16>}, {pipeline_mode = #tpu.pipeline_mode<synchronous>, transform_indices = @transform_3, window_bounds = array<i64: 3, 3, 16, 32>}, {pipeline_mode = #tpu.pipeline_mode<synchronous>, transform_indices = @transform_4, window_bounds = array<i64: 1, 32>}, {transform_indices = @transform_5, window_bounds = array<i64: 1, 8, 8, 16>}, {pipeline_mode = #tpu.pipeline_mode<synchronous>, transform_indices = @transform_6, window_bounds = array<i64: 16, 32>}, {transform_indices = @transform_7, window_bounds = array<i64: 1, 8, 8, 32>}]} {
    %c0 = arith.constant 0 : index
    %c0_0 = arith.constant 0 : index
    %c0_1 = arith.constant 0 : index
    %c0_2 = arith.constant 0 : index
    %0 = vector.load %arg2[%c0, %c0_0, %c0_1, %c0_2] : memref<1x8x8x16xf32, #tpu.memory_space<vmem>>, vector<1x8x8x16xf32>
    %c0_i32 = arith.constant 0 : i32
    %1 = arith.cmpi eq, %arg1, %c0_i32 : i32
    %c0_3 = arith.constant 0 : index
    %c0_4 = arith.constant 0 : index
    %c0_5 = arith.constant 0 : index
    %c0_6 = arith.constant 0 : index
    %2 = vector.load %arg3[%c0_3, %c0_4, %c0_5, %c0_6] : memref<1x1x8x16xf32, #tpu.memory_space<vmem>>, vector<1x1x8x16xf32>
    %cst = arith.constant 0.000000e+00 : f32
    %3 = vector.broadcast %cst : f32 to vector<1x1x8x16xf32>
    %4 = arith.select %1, %3, %2 : vector<1x1x8x16xf32>
    %c0_i32_7 = arith.constant 0 : i32
    %5 = arith.cmpi eq, %arg1, %c0_i32_7 : i32
    %c0_8 = arith.constant 0 : index
    %c0_9 = arith.constant 0 : index
    %c0_10 = arith.constant 0 : index
    %c0_11 = arith.constant 0 : index
    %6 = vector.load %arg4[%c0_8, %c0_9, %c0_10, %c0_11] : memref<1x1x8x16xf32, #tpu.memory_space<vmem>>, vector<1x1x8x16xf32>
    %cst_12 = arith.constant 0.000000e+00 : f32
    %7 = vector.broadcast %cst_12 : f32 to vector<1x1x8x16xf32>
    %8 = arith.select %5, %7, %6 : vector<1x1x8x16xf32>
    %9 = tpu.concatenate %4, %0, %8 in 1 : vector<1x1x8x16xf32>, vector<1x8x8x16xf32>, vector<1x1x8x16xf32> -> vector<1x10x8x16xf32>
    %cst_13 = arith.constant 0.000000e+00 : f32
    %10 = vector.broadcast %cst_13 : f32 to vector<1x10x8x16xf32>
    %11 = arith.cmpf oge, %9, %10 : vector<1x10x8x16xf32>
    %cst_14 = arith.constant 2.000000e-01 : f32
    %12 = vector.broadcast %cst_14 : f32 to vector<1x10x8x16xf32>
    %13 = arith.mulf %12, %9 : vector<1x10x8x16xf32>
    %14 = arith.select %11, %9, %13 : vector<1x10x8x16xi1>, vector<1x10x8x16xf32>
    %cst_15 = arith.constant 0.000000e+00 : f32
    %15 = vector.broadcast %cst_15 : f32 to vector<1x10x1x16xf32>
    %cst_16 = arith.constant 0.000000e+00 : f32
    %16 = vector.broadcast %cst_16 : f32 to vector<1x10x1x16xf32>
    %17 = tpu.concatenate %15, %14, %16 in 2 : vector<1x10x1x16xf32>, vector<1x10x8x16xf32>, vector<1x10x1x16xf32> -> vector<1x10x10x16xf32>
    %18 = vector.shape_cast %17 : vector<1x10x10x16xf32> to vector<10x10x16xf32>
    %c0_17 = arith.constant 0 : index
    %c0_18 = arith.constant 0 : index
    %c0_19 = arith.constant 0 : index
    %c0_20 = arith.constant 0 : index
    %19 = vector.load %arg5[%c0_17, %c0_18, %c0_19, %c0_20] : memref<3x3x16x32xbf16, #tpu.memory_space<vmem>>, vector<3x3x16x32xbf16>
    %cst_21 = arith.constant 0.000000e+00 : f32
    %20 = vector.broadcast %cst_21 : f32 to vector<64x32xf32>
    %21 = vector.extract_strided_slice %18 {offsets = [0, 0, 0], sizes = [8, 8, 16], strides = [1, 1, 1]} : vector<10x10x16xf32> to vector<8x8x16xf32>
    %22 = vector.shape_cast %21 : vector<8x8x16xf32> to vector<64x16xf32>
    %23 = arith.truncf %22 : vector<64x16xf32> to vector<64x16xbf16>
    %24 = vector.extract_strided_slice %19 {offsets = [0, 0, 0, 0], sizes = [1, 1, 16, 32], strides = [1, 1, 1, 1]} : vector<3x3x16x32xbf16> to vector<1x1x16x32xbf16>
    %25 = vector.shape_cast %24 : vector<1x1x16x32xbf16> to vector<16x32xbf16>
    %cst_22 = arith.constant dense<0.000000e+00> : vector<64x32xf32>
    %26 = tpu.matmul %23, %25, %cst_22 {dimension_numbers = #tpu.dot_dimension_numbers<[1], [0], [0], [1], [0, 0, 1, 1], [], []>} : vector<64x16xbf16>, vector<16x32xbf16>, vector<64x32xf32> -> vector<64x32xf32>
    %27 = arith.addf %20, %26 : vector<64x32xf32>
    %28 = vector.extract_strided_slice %18 {offsets = [0, 1, 0], sizes = [8, 8, 16], strides = [1, 1, 1]} : vector<10x10x16xf32> to vector<8x8x16xf32>
    %29 = vector.shape_cast %28 : vector<8x8x16xf32> to vector<64x16xf32>
    %30 = arith.truncf %29 : vector<64x16xf32> to vector<64x16xbf16>
    %31 = vector.extract_strided_slice %19 {offsets = [0, 1, 0, 0], sizes = [1, 1, 16, 32], strides = [1, 1, 1, 1]} : vector<3x3x16x32xbf16> to vector<1x1x16x32xbf16>
    %32 = vector.shape_cast %31 : vector<1x1x16x32xbf16> to vector<16x32xbf16>
    %cst_23 = arith.constant dense<0.000000e+00> : vector<64x32xf32>
    %33 = tpu.matmul %30, %32, %cst_23 {dimension_numbers = #tpu.dot_dimension_numbers<[1], [0], [0], [1], [0, 0, 1, 1], [], []>} : vector<64x16xbf16>, vector<16x32xbf16>, vector<64x32xf32> -> vector<64x32xf32>
    %34 = arith.addf %27, %33 : vector<64x32xf32>
    %35 = vector.extract_strided_slice %18 {offsets = [0, 2, 0], sizes = [8, 8, 16], strides = [1, 1, 1]} : vector<10x10x16xf32> to vector<8x8x16xf32>
    %36 = vector.shape_cast %35 : vector<8x8x16xf32> to vector<64x16xf32>
    %37 = arith.truncf %36 : vector<64x16xf32> to vector<64x16xbf16>
    %38 = vector.extract_strided_slice %19 {offsets = [0, 2, 0, 0], sizes = [1, 1, 16, 32], strides = [1, 1, 1, 1]} : vector<3x3x16x32xbf16> to vector<1x1x16x32xbf16>
    %39 = vector.shape_cast %38 : vector<1x1x16x32xbf16> to vector<16x32xbf16>
    %cst_24 = arith.constant dense<0.000000e+00> : vector<64x32xf32>
    %40 = tpu.matmul %37, %39, %cst_24 {dimension_numbers = #tpu.dot_dimension_numbers<[1], [0], [0], [1], [0, 0, 1, 1], [], []>} : vector<64x16xbf16>, vector<16x32xbf16>, vector<64x32xf32> -> vector<64x32xf32>
    %41 = arith.addf %34, %40 : vector<64x32xf32>
    %42 = vector.extract_strided_slice %18 {offsets = [1, 0, 0], sizes = [8, 8, 16], strides = [1, 1, 1]} : vector<10x10x16xf32> to vector<8x8x16xf32>
    %43 = vector.shape_cast %42 : vector<8x8x16xf32> to vector<64x16xf32>
    %44 = arith.truncf %43 : vector<64x16xf32> to vector<64x16xbf16>
    %45 = vector.extract_strided_slice %19 {offsets = [1, 0, 0, 0], sizes = [1, 1, 16, 32], strides = [1, 1, 1, 1]} : vector<3x3x16x32xbf16> to vector<1x1x16x32xbf16>
    %46 = vector.shape_cast %45 : vector<1x1x16x32xbf16> to vector<16x32xbf16>
    %cst_25 = arith.constant dense<0.000000e+00> : vector<64x32xf32>
    %47 = tpu.matmul %44, %46, %cst_25 {dimension_numbers = #tpu.dot_dimension_numbers<[1], [0], [0], [1], [0, 0, 1, 1], [], []>} : vector<64x16xbf16>, vector<16x32xbf16>, vector<64x32xf32> -> vector<64x32xf32>
    %48 = arith.addf %41, %47 : vector<64x32xf32>
    %49 = vector.extract_strided_slice %18 {offsets = [1, 1, 0], sizes = [8, 8, 16], strides = [1, 1, 1]} : vector<10x10x16xf32> to vector<8x8x16xf32>
    %50 = vector.shape_cast %49 : vector<8x8x16xf32> to vector<64x16xf32>
    %51 = arith.truncf %50 : vector<64x16xf32> to vector<64x16xbf16>
    %52 = vector.extract_strided_slice %19 {offsets = [1, 1, 0, 0], sizes = [1, 1, 16, 32], strides = [1, 1, 1, 1]} : vector<3x3x16x32xbf16> to vector<1x1x16x32xbf16>
    %53 = vector.shape_cast %52 : vector<1x1x16x32xbf16> to vector<16x32xbf16>
    %cst_26 = arith.constant dense<0.000000e+00> : vector<64x32xf32>
    %54 = tpu.matmul %51, %53, %cst_26 {dimension_numbers = #tpu.dot_dimension_numbers<[1], [0], [0], [1], [0, 0, 1, 1], [], []>} : vector<64x16xbf16>, vector<16x32xbf16>, vector<64x32xf32> -> vector<64x32xf32>
    %55 = arith.addf %48, %54 : vector<64x32xf32>
    %56 = vector.extract_strided_slice %18 {offsets = [1, 2, 0], sizes = [8, 8, 16], strides = [1, 1, 1]} : vector<10x10x16xf32> to vector<8x8x16xf32>
    %57 = vector.shape_cast %56 : vector<8x8x16xf32> to vector<64x16xf32>
    %58 = arith.truncf %57 : vector<64x16xf32> to vector<64x16xbf16>
    %59 = vector.extract_strided_slice %19 {offsets = [1, 2, 0, 0], sizes = [1, 1, 16, 32], strides = [1, 1, 1, 1]} : vector<3x3x16x32xbf16> to vector<1x1x16x32xbf16>
    %60 = vector.shape_cast %59 : vector<1x1x16x32xbf16> to vector<16x32xbf16>
    %cst_27 = arith.constant dense<0.000000e+00> : vector<64x32xf32>
    %61 = tpu.matmul %58, %60, %cst_27 {dimension_numbers = #tpu.dot_dimension_numbers<[1], [0], [0], [1], [0, 0, 1, 1], [], []>} : vector<64x16xbf16>, vector<16x32xbf16>, vector<64x32xf32> -> vector<64x32xf32>
    %62 = arith.addf %55, %61 : vector<64x32xf32>
    %63 = vector.extract_strided_slice %18 {offsets = [2, 0, 0], sizes = [8, 8, 16], strides = [1, 1, 1]} : vector<10x10x16xf32> to vector<8x8x16xf32>
    %64 = vector.shape_cast %63 : vector<8x8x16xf32> to vector<64x16xf32>
    %65 = arith.truncf %64 : vector<64x16xf32> to vector<64x16xbf16>
    %66 = vector.extract_strided_slice %19 {offsets = [2, 0, 0, 0], sizes = [1, 1, 16, 32], strides = [1, 1, 1, 1]} : vector<3x3x16x32xbf16> to vector<1x1x16x32xbf16>
    %67 = vector.shape_cast %66 : vector<1x1x16x32xbf16> to vector<16x32xbf16>
    %cst_28 = arith.constant dense<0.000000e+00> : vector<64x32xf32>
    %68 = tpu.matmul %65, %67, %cst_28 {dimension_numbers = #tpu.dot_dimension_numbers<[1], [0], [0], [1], [0, 0, 1, 1], [], []>} : vector<64x16xbf16>, vector<16x32xbf16>, vector<64x32xf32> -> vector<64x32xf32>
    %69 = arith.addf %62, %68 : vector<64x32xf32>
    %70 = vector.extract_strided_slice %18 {offsets = [2, 1, 0], sizes = [8, 8, 16], strides = [1, 1, 1]} : vector<10x10x16xf32> to vector<8x8x16xf32>
    %71 = vector.shape_cast %70 : vector<8x8x16xf32> to vector<64x16xf32>
    %72 = arith.truncf %71 : vector<64x16xf32> to vector<64x16xbf16>
    %73 = vector.extract_strided_slice %19 {offsets = [2, 1, 0, 0], sizes = [1, 1, 16, 32], strides = [1, 1, 1, 1]} : vector<3x3x16x32xbf16> to vector<1x1x16x32xbf16>
    %74 = vector.shape_cast %73 : vector<1x1x16x32xbf16> to vector<16x32xbf16>
    %cst_29 = arith.constant dense<0.000000e+00> : vector<64x32xf32>
    %75 = tpu.matmul %72, %74, %cst_29 {dimension_numbers = #tpu.dot_dimension_numbers<[1], [0], [0], [1], [0, 0, 1, 1], [], []>} : vector<64x16xbf16>, vector<16x32xbf16>, vector<64x32xf32> -> vector<64x32xf32>
    %76 = arith.addf %69, %75 : vector<64x32xf32>
    %77 = vector.extract_strided_slice %18 {offsets = [2, 2, 0], sizes = [8, 8, 16], strides = [1, 1, 1]} : vector<10x10x16xf32> to vector<8x8x16xf32>
    %78 = vector.shape_cast %77 : vector<8x8x16xf32> to vector<64x16xf32>
    %79 = arith.truncf %78 : vector<64x16xf32> to vector<64x16xbf16>
    %80 = vector.extract_strided_slice %19 {offsets = [2, 2, 0, 0], sizes = [1, 1, 16, 32], strides = [1, 1, 1, 1]} : vector<3x3x16x32xbf16> to vector<1x1x16x32xbf16>
    %81 = vector.shape_cast %80 : vector<1x1x16x32xbf16> to vector<16x32xbf16>
    %cst_30 = arith.constant dense<0.000000e+00> : vector<64x32xf32>
    %82 = tpu.matmul %79, %81, %cst_30 {dimension_numbers = #tpu.dot_dimension_numbers<[1], [0], [0], [1], [0, 0, 1, 1], [], []>} : vector<64x16xbf16>, vector<16x32xbf16>, vector<64x32xf32> -> vector<64x32xf32>
    %83 = arith.addf %76, %82 : vector<64x32xf32>
    %c0_31 = arith.constant 0 : index
    %c0_32 = arith.constant 0 : index
    %84 = vector.load %arg6[%c0_31, %c0_32] : memref<1x32xf32, #tpu.memory_space<vmem>>, vector<1x32xf32>
    %85 = vector.broadcast %84 : vector<1x32xf32> to vector<64x32xf32>
    %86 = arith.addf %83, %85 : vector<64x32xf32>
    %c0_33 = arith.constant 0 : index
    %c0_34 = arith.constant 0 : index
    %c0_35 = arith.constant 0 : index
    %c0_36 = arith.constant 0 : index
    %87 = vector.load %arg7[%c0_33, %c0_34, %c0_35, %c0_36] : memref<1x8x8x16xf32, #tpu.memory_space<vmem>>, vector<1x8x8x16xf32>
    %88 = vector.shape_cast %87 : vector<1x8x8x16xf32> to vector<8x8x16xf32>
    %89 = vector.shape_cast %88 : vector<8x8x16xf32> to vector<64x16xf32>
    %90 = arith.truncf %89 : vector<64x16xf32> to vector<64x16xbf16>
    %c0_37 = arith.constant 0 : index
    %c0_38 = arith.constant 0 : index
    %91 = vector.load %arg8[%c0_37, %c0_38] : memref<16x32xbf16, #tpu.memory_space<vmem>>, vector<16x32xbf16>
    %cst_39 = arith.constant dense<0.000000e+00> : vector<64x32xf32>
    %92 = tpu.matmul %90, %91, %cst_39 {dimension_numbers = #tpu.dot_dimension_numbers<[1], [0], [0], [1], [0, 0, 1, 1], [], []>} : vector<64x16xbf16>, vector<16x32xbf16>, vector<64x32xf32> -> vector<64x32xf32>
    %93 = arith.addf %86, %92 : vector<64x32xf32>
    %cst_40 = arith.constant 0.707106769 : f32
    %94 = vector.broadcast %cst_40 : f32 to vector<64x32xf32>
    %95 = arith.mulf %93, %94 : vector<64x32xf32>
    %96 = vector.shape_cast %95 : vector<64x32xf32> to vector<8x8x32xf32>
    %97 = vector.shape_cast %96 : vector<8x8x32xf32> to vector<1x8x8x32xf32>
    %c0_41 = arith.constant 0 : index
    %c0_42 = arith.constant 0 : index
    %c0_43 = arith.constant 0 : index
    %c0_44 = arith.constant 0 : index
    %98 = vector.load %arg9[%c0_41, %c0_42, %c0_43, %c0_44] : memref<1x8x8x32xf32, #tpu.memory_space<vmem>>, vector<1x8x8x32xf32>
    tpu.vector_store %arg9[%c0_41, %c0_42, %c0_43, %c0_44], %97 {strides = array<i32>} : memref<1x8x8x32xf32, #tpu.memory_space<vmem>>, vector<1x8x8x32xf32>,
    return
  }
  func.func @transform_0(%arg0: i32, %arg1: i32) -> (i32, i32, i32, i32) {
    %c0_i32 = arith.constant 0 : i32
    %c0_i32_0 = arith.constant 0 : i32
    %c0_i32_1 = arith.constant 0 : i32
    return %arg0, %arg1, %c0_i32, %c0_i32_0 : i32, i32, i32, i32
  }
  func.func @transform_1(%arg0: i32, %arg1: i32) -> (i32, i32, i32, i32) {
    %c8_i32 = arith.constant 8 : i32
    %0 = arith.muli %arg1, %c8_i32 : i32
    %c1_i32 = arith.constant 1 : i32
    %1 = arith.subi %0, %c1_i32 : i32
    %c0_i32 = arith.constant 0 : i32
    %2 = arith.maxsi %1, %c0_i32 : i32
    %c0_i32_0 = arith.constant 0 : i32
    %c0_i32_1 = arith.constant 0 : i32
    %c0_i32_2 = arith.constant 0 : i32
    return %arg0, %2, %c0_i32_0, %c0_i32_1 : i32, i32, i32, i32
  }
  func.func @transform_2(%arg0: i32, %arg1: i32) -> (i32, i32, i32, i32) {
    %c8_i32 = arith.constant 8 : i32
    %0 = arith.muli %arg1, %c8_i32 : i32
    %c8_i32_0 = arith.constant 8 : i32
    %1 = arith.addi %0, %c8_i32_0 : i32
    %c7_i32 = arith.constant 7 : i32
    %2 = arith.minsi %1, %c7_i32 : i32
    %c0_i32 = arith.constant 0 : i32
    %c0_i32_1 = arith.constant 0 : i32
    %c0_i32_2 = arith.constant 0 : i32
    return %arg0, %2, %c0_i32, %c0_i32_1 : i32, i32, i32, i32
  }
  func.func @transform_3(%arg0: i32, %arg1: i32) -> (i32, i32, i32, i32) {
    %c0_i32 = arith.constant 0 : i32
    %c0_i32_0 = arith.constant 0 : i32
    %c0_i32_1 = arith.constant 0 : i32
    %c0_i32_2 = arith.constant 0 : i32
    %c0_i32_3 = arith.constant 0 : i32
    return %c0_i32, %c0_i32_0, %c0_i32_1, %c0_i32_2 : i32, i32, i32, i32
  }
  func.func @transform_4(%arg0: i32, %arg1: i32) -> (i32, i32) {
    %c0_i32 = arith.constant 0 : i32
    %c0_i32_0 = arith.constant 0 : i32
    %c0_i32_1 = arith.constant 0 : i32
    return %c0_i32, %c0_i32_0 : i32, i32
  }
  func.func @transform_5(%arg0: i32, %arg1: i32) -> (i32, i32, i32, i32) {
    %c0_i32 = arith.constant 0 : i32
    %c0_i32_0 = arith.constant 0 : i32
    %c0_i32_1 = arith.constant 0 : i32
    return %arg0, %arg1, %c0_i32, %c0_i32_0 : i32, i32, i32, i32
  }
  func.func @transform_6(%arg0: i32, %arg1: i32) -> (i32, i32) {
    %c0_i32 = arith.constant 0 : i32
    %c0_i32_0 = arith.constant 0 : i32
    %c0_i32_1 = arith.constant 0 : i32
    return %c0_i32, %c0_i32_0 : i32, i32
  }
  func.func @transform_7(%arg0: i32, %arg1: i32) -> (i32, i32, i32, i32) {
    %c0_i32 = arith.constant 0 : i32
    %c0_i32_0 = arith.constant 0 : i32
    %c0_i32_1 = arith.constant 0 : i32
    return %arg0, %arg1, %c0_i32, %c0_i32_0 : i32, i32, i32, i32
  }
}

module attributes {stable_mosaic.version = 11 : i64} {
  func.func @kernel(%arg0: i32, %arg1: i32, %arg2: memref<1x8x8x32xf32, #tpu.memory_space<vmem>>, %arg3: memref<1x1x8x32xf32, #tpu.memory_space<vmem>>, %arg4: memref<1x1x8x32xf32, #tpu.memory_space<vmem>>, %arg5: memref<3x3x32x32xbf16, #tpu.memory_space<vmem>>, %arg6: memref<1x32xf32, #tpu.memory_space<vmem>>, %arg7: memref<16x64xf32, #tpu.memory_space<vmem>>, %arg8: memref<1x16x32xf32, #tpu.memory_space<vmem>>, %arg9: memref<1x16x32xf32, #tpu.memory_space<vmem>>) attributes {dimension_semantics = [#tpu.dimension_semantics<parallel>, #tpu.dimension_semantics<parallel>], iteration_bounds = array<i64: 2, 1>, scalar_prefetch = 0 : i64, scratch_operands = 0 : i64, tpu.core_type = #tpu.core_type<tc>, window_params = [{transform_indices = @transform_0, window_bounds = array<i64: 1, 8, 8, 32>}, {transform_indices = @transform_1, window_bounds = array<i64: 1, 1, 8, 32>}, {transform_indices = @transform_2, window_bounds = array<i64: 1, 1, 8, 32>}, {pipeline_mode = #tpu.pipeline_mode<synchronous>, transform_indices = @transform_3, window_bounds = array<i64: 3, 3, 32, 32>}, {pipeline_mode = #tpu.pipeline_mode<synchronous>, transform_indices = @transform_4, window_bounds = array<i64: 1, 32>}, {pipeline_mode = #tpu.pipeline_mode<synchronous>, transform_indices = @transform_5, window_bounds = array<i64: 16, 64>}, {transform_indices = @transform_6, window_bounds = array<i64: 1, 16, 32>}, {transform_indices = @transform_7, window_bounds = array<i64: 1, 16, 32>}]} {
    %c0 = arith.constant 0 : index
    %c0_0 = arith.constant 0 : index
    %c0_1 = arith.constant 0 : index
    %c0_2 = arith.constant 0 : index
    %0 = vector.load %arg2[%c0, %c0_0, %c0_1, %c0_2] : memref<1x8x8x32xf32, #tpu.memory_space<vmem>>, vector<1x8x8x32xf32>
    %c0_i32 = arith.constant 0 : i32
    %1 = arith.cmpi eq, %arg1, %c0_i32 : i32
    %c0_3 = arith.constant 0 : index
    %c0_4 = arith.constant 0 : index
    %c0_5 = arith.constant 0 : index
    %c0_6 = arith.constant 0 : index
    %2 = vector.load %arg3[%c0_3, %c0_4, %c0_5, %c0_6] : memref<1x1x8x32xf32, #tpu.memory_space<vmem>>, vector<1x1x8x32xf32>
    %cst = arith.constant 0.000000e+00 : f32
    %3 = vector.broadcast %cst : f32 to vector<1x1x8x32xf32>
    %4 = arith.select %1, %3, %2 : vector<1x1x8x32xf32>
    %c0_i32_7 = arith.constant 0 : i32
    %5 = arith.cmpi eq, %arg1, %c0_i32_7 : i32
    %c0_8 = arith.constant 0 : index
    %c0_9 = arith.constant 0 : index
    %c0_10 = arith.constant 0 : index
    %c0_11 = arith.constant 0 : index
    %6 = vector.load %arg4[%c0_8, %c0_9, %c0_10, %c0_11] : memref<1x1x8x32xf32, #tpu.memory_space<vmem>>, vector<1x1x8x32xf32>
    %cst_12 = arith.constant 0.000000e+00 : f32
    %7 = vector.broadcast %cst_12 : f32 to vector<1x1x8x32xf32>
    %8 = arith.select %5, %7, %6 : vector<1x1x8x32xf32>
    %9 = tpu.concatenate %4, %0, %8 in 1 : vector<1x1x8x32xf32>, vector<1x8x8x32xf32>, vector<1x1x8x32xf32> -> vector<1x10x8x32xf32>
    %cst_13 = arith.constant 0.000000e+00 : f32
    %10 = vector.broadcast %cst_13 : f32 to vector<1x10x8x32xf32>
    %11 = arith.cmpf oge, %9, %10 : vector<1x10x8x32xf32>
    %cst_14 = arith.constant 2.000000e-01 : f32
    %12 = vector.broadcast %cst_14 : f32 to vector<1x10x8x32xf32>
    %13 = arith.mulf %12, %9 : vector<1x10x8x32xf32>
    %14 = arith.select %11, %9, %13 : vector<1x10x8x32xi1>, vector<1x10x8x32xf32>
    %cst_15 = arith.constant 0.000000e+00 : f32
    %15 = vector.broadcast %cst_15 : f32 to vector<1x10x1x32xf32>
    %cst_16 = arith.constant 0.000000e+00 : f32
    %16 = vector.broadcast %cst_16 : f32 to vector<1x10x1x32xf32>
    %17 = tpu.concatenate %15, %14, %16 in 2 : vector<1x10x1x32xf32>, vector<1x10x8x32xf32>, vector<1x10x1x32xf32> -> vector<1x10x10x32xf32>
    %18 = vector.shape_cast %17 : vector<1x10x10x32xf32> to vector<10x10x32xf32>
    %c0_17 = arith.constant 0 : index
    %c0_18 = arith.constant 0 : index
    %c0_19 = arith.constant 0 : index
    %c0_20 = arith.constant 0 : index
    %19 = vector.load %arg5[%c0_17, %c0_18, %c0_19, %c0_20] : memref<3x3x32x32xbf16, #tpu.memory_space<vmem>>, vector<3x3x32x32xbf16>
    %cst_21 = arith.constant 0.000000e+00 : f32
    %20 = vector.broadcast %cst_21 : f32 to vector<64x32xf32>
    %21 = vector.extract_strided_slice %18 {offsets = [0, 0, 0], sizes = [8, 8, 32], strides = [1, 1, 1]} : vector<10x10x32xf32> to vector<8x8x32xf32>
    %22 = vector.shape_cast %21 : vector<8x8x32xf32> to vector<64x32xf32>
    %23 = arith.truncf %22 : vector<64x32xf32> to vector<64x32xbf16>
    %24 = vector.extract_strided_slice %19 {offsets = [0, 0, 0, 0], sizes = [1, 1, 32, 32], strides = [1, 1, 1, 1]} : vector<3x3x32x32xbf16> to vector<1x1x32x32xbf16>
    %25 = vector.shape_cast %24 : vector<1x1x32x32xbf16> to vector<32x32xbf16>
    %cst_22 = arith.constant dense<0.000000e+00> : vector<64x32xf32>
    %26 = tpu.matmul %23, %25, %cst_22 {dimension_numbers = #tpu.dot_dimension_numbers<[1], [0], [0], [1], [0, 0, 1, 1], [], []>} : vector<64x32xbf16>, vector<32x32xbf16>, vector<64x32xf32> -> vector<64x32xf32>
    %27 = arith.addf %20, %26 : vector<64x32xf32>
    %28 = vector.extract_strided_slice %18 {offsets = [0, 1, 0], sizes = [8, 8, 32], strides = [1, 1, 1]} : vector<10x10x32xf32> to vector<8x8x32xf32>
    %29 = vector.shape_cast %28 : vector<8x8x32xf32> to vector<64x32xf32>
    %30 = arith.truncf %29 : vector<64x32xf32> to vector<64x32xbf16>
    %31 = vector.extract_strided_slice %19 {offsets = [0, 1, 0, 0], sizes = [1, 1, 32, 32], strides = [1, 1, 1, 1]} : vector<3x3x32x32xbf16> to vector<1x1x32x32xbf16>
    %32 = vector.shape_cast %31 : vector<1x1x32x32xbf16> to vector<32x32xbf16>
    %cst_23 = arith.constant dense<0.000000e+00> : vector<64x32xf32>
    %33 = tpu.matmul %30, %32, %cst_23 {dimension_numbers = #tpu.dot_dimension_numbers<[1], [0], [0], [1], [0, 0, 1, 1], [], []>} : vector<64x32xbf16>, vector<32x32xbf16>, vector<64x32xf32> -> vector<64x32xf32>
    %34 = arith.addf %27, %33 : vector<64x32xf32>
    %35 = vector.extract_strided_slice %18 {offsets = [0, 2, 0], sizes = [8, 8, 32], strides = [1, 1, 1]} : vector<10x10x32xf32> to vector<8x8x32xf32>
    %36 = vector.shape_cast %35 : vector<8x8x32xf32> to vector<64x32xf32>
    %37 = arith.truncf %36 : vector<64x32xf32> to vector<64x32xbf16>
    %38 = vector.extract_strided_slice %19 {offsets = [0, 2, 0, 0], sizes = [1, 1, 32, 32], strides = [1, 1, 1, 1]} : vector<3x3x32x32xbf16> to vector<1x1x32x32xbf16>
    %39 = vector.shape_cast %38 : vector<1x1x32x32xbf16> to vector<32x32xbf16>
    %cst_24 = arith.constant dense<0.000000e+00> : vector<64x32xf32>
    %40 = tpu.matmul %37, %39, %cst_24 {dimension_numbers = #tpu.dot_dimension_numbers<[1], [0], [0], [1], [0, 0, 1, 1], [], []>} : vector<64x32xbf16>, vector<32x32xbf16>, vector<64x32xf32> -> vector<64x32xf32>
    %41 = arith.addf %34, %40 : vector<64x32xf32>
    %42 = vector.extract_strided_slice %18 {offsets = [1, 0, 0], sizes = [8, 8, 32], strides = [1, 1, 1]} : vector<10x10x32xf32> to vector<8x8x32xf32>
    %43 = vector.shape_cast %42 : vector<8x8x32xf32> to vector<64x32xf32>
    %44 = arith.truncf %43 : vector<64x32xf32> to vector<64x32xbf16>
    %45 = vector.extract_strided_slice %19 {offsets = [1, 0, 0, 0], sizes = [1, 1, 32, 32], strides = [1, 1, 1, 1]} : vector<3x3x32x32xbf16> to vector<1x1x32x32xbf16>
    %46 = vector.shape_cast %45 : vector<1x1x32x32xbf16> to vector<32x32xbf16>
    %cst_25 = arith.constant dense<0.000000e+00> : vector<64x32xf32>
    %47 = tpu.matmul %44, %46, %cst_25 {dimension_numbers = #tpu.dot_dimension_numbers<[1], [0], [0], [1], [0, 0, 1, 1], [], []>} : vector<64x32xbf16>, vector<32x32xbf16>, vector<64x32xf32> -> vector<64x32xf32>
    %48 = arith.addf %41, %47 : vector<64x32xf32>
    %49 = vector.extract_strided_slice %18 {offsets = [1, 1, 0], sizes = [8, 8, 32], strides = [1, 1, 1]} : vector<10x10x32xf32> to vector<8x8x32xf32>
    %50 = vector.shape_cast %49 : vector<8x8x32xf32> to vector<64x32xf32>
    %51 = arith.truncf %50 : vector<64x32xf32> to vector<64x32xbf16>
    %52 = vector.extract_strided_slice %19 {offsets = [1, 1, 0, 0], sizes = [1, 1, 32, 32], strides = [1, 1, 1, 1]} : vector<3x3x32x32xbf16> to vector<1x1x32x32xbf16>
    %53 = vector.shape_cast %52 : vector<1x1x32x32xbf16> to vector<32x32xbf16>
    %cst_26 = arith.constant dense<0.000000e+00> : vector<64x32xf32>
    %54 = tpu.matmul %51, %53, %cst_26 {dimension_numbers = #tpu.dot_dimension_numbers<[1], [0], [0], [1], [0, 0, 1, 1], [], []>} : vector<64x32xbf16>, vector<32x32xbf16>, vector<64x32xf32> -> vector<64x32xf32>
    %55 = arith.addf %48, %54 : vector<64x32xf32>
    %56 = vector.extract_strided_slice %18 {offsets = [1, 2, 0], sizes = [8, 8, 32], strides = [1, 1, 1]} : vector<10x10x32xf32> to vector<8x8x32xf32>
    %57 = vector.shape_cast %56 : vector<8x8x32xf32> to vector<64x32xf32>
    %58 = arith.truncf %57 : vector<64x32xf32> to vector<64x32xbf16>
    %59 = vector.extract_strided_slice %19 {offsets = [1, 2, 0, 0], sizes = [1, 1, 32, 32], strides = [1, 1, 1, 1]} : vector<3x3x32x32xbf16> to vector<1x1x32x32xbf16>
    %60 = vector.shape_cast %59 : vector<1x1x32x32xbf16> to vector<32x32xbf16>
    %cst_27 = arith.constant dense<0.000000e+00> : vector<64x32xf32>
    %61 = tpu.matmul %58, %60, %cst_27 {dimension_numbers = #tpu.dot_dimension_numbers<[1], [0], [0], [1], [0, 0, 1, 1], [], []>} : vector<64x32xbf16>, vector<32x32xbf16>, vector<64x32xf32> -> vector<64x32xf32>
    %62 = arith.addf %55, %61 : vector<64x32xf32>
    %63 = vector.extract_strided_slice %18 {offsets = [2, 0, 0], sizes = [8, 8, 32], strides = [1, 1, 1]} : vector<10x10x32xf32> to vector<8x8x32xf32>
    %64 = vector.shape_cast %63 : vector<8x8x32xf32> to vector<64x32xf32>
    %65 = arith.truncf %64 : vector<64x32xf32> to vector<64x32xbf16>
    %66 = vector.extract_strided_slice %19 {offsets = [2, 0, 0, 0], sizes = [1, 1, 32, 32], strides = [1, 1, 1, 1]} : vector<3x3x32x32xbf16> to vector<1x1x32x32xbf16>
    %67 = vector.shape_cast %66 : vector<1x1x32x32xbf16> to vector<32x32xbf16>
    %cst_28 = arith.constant dense<0.000000e+00> : vector<64x32xf32>
    %68 = tpu.matmul %65, %67, %cst_28 {dimension_numbers = #tpu.dot_dimension_numbers<[1], [0], [0], [1], [0, 0, 1, 1], [], []>} : vector<64x32xbf16>, vector<32x32xbf16>, vector<64x32xf32> -> vector<64x32xf32>
    %69 = arith.addf %62, %68 : vector<64x32xf32>
    %70 = vector.extract_strided_slice %18 {offsets = [2, 1, 0], sizes = [8, 8, 32], strides = [1, 1, 1]} : vector<10x10x32xf32> to vector<8x8x32xf32>
    %71 = vector.shape_cast %70 : vector<8x8x32xf32> to vector<64x32xf32>
    %72 = arith.truncf %71 : vector<64x32xf32> to vector<64x32xbf16>
    %73 = vector.extract_strided_slice %19 {offsets = [2, 1, 0, 0], sizes = [1, 1, 32, 32], strides = [1, 1, 1, 1]} : vector<3x3x32x32xbf16> to vector<1x1x32x32xbf16>
    %74 = vector.shape_cast %73 : vector<1x1x32x32xbf16> to vector<32x32xbf16>
    %cst_29 = arith.constant dense<0.000000e+00> : vector<64x32xf32>
    %75 = tpu.matmul %72, %74, %cst_29 {dimension_numbers = #tpu.dot_dimension_numbers<[1], [0], [0], [1], [0, 0, 1, 1], [], []>} : vector<64x32xbf16>, vector<32x32xbf16>, vector<64x32xf32> -> vector<64x32xf32>
    %76 = arith.addf %69, %75 : vector<64x32xf32>
    %77 = vector.extract_strided_slice %18 {offsets = [2, 2, 0], sizes = [8, 8, 32], strides = [1, 1, 1]} : vector<10x10x32xf32> to vector<8x8x32xf32>
    %78 = vector.shape_cast %77 : vector<8x8x32xf32> to vector<64x32xf32>
    %79 = arith.truncf %78 : vector<64x32xf32> to vector<64x32xbf16>
    %80 = vector.extract_strided_slice %19 {offsets = [2, 2, 0, 0], sizes = [1, 1, 32, 32], strides = [1, 1, 1, 1]} : vector<3x3x32x32xbf16> to vector<1x1x32x32xbf16>
    %81 = vector.shape_cast %80 : vector<1x1x32x32xbf16> to vector<32x32xbf16>
    %cst_30 = arith.constant dense<0.000000e+00> : vector<64x32xf32>
    %82 = tpu.matmul %79, %81, %cst_30 {dimension_numbers = #tpu.dot_dimension_numbers<[1], [0], [0], [1], [0, 0, 1, 1], [], []>} : vector<64x32xbf16>, vector<32x32xbf16>, vector<64x32xf32> -> vector<64x32xf32>
    %83 = arith.addf %76, %82 : vector<64x32xf32>
    %c0_31 = arith.constant 0 : index
    %c0_32 = arith.constant 0 : index
    %84 = vector.load %arg6[%c0_31, %c0_32] : memref<1x32xf32, #tpu.memory_space<vmem>>, vector<1x32xf32>
    %85 = vector.broadcast %84 : vector<1x32xf32> to vector<64x32xf32>
    %86 = arith.addf %83, %85 : vector<64x32xf32>
    %c0_33 = arith.constant 0 : index
    %c0_34 = arith.constant 0 : index
    %87 = vector.load %arg7[%c0_33, %c0_34] : memref<16x64xf32, #tpu.memory_space<vmem>>, vector<16x64xf32>
    %cst_35 = arith.constant dense<0.000000e+00> : vector<16x32xf32>
    %88 = tpu.matmul %87, %86, %cst_35 {dimension_numbers = #tpu.dot_dimension_numbers<[1], [0], [0], [1], [0, 0, 1, 1], [], []>} : vector<16x64xf32>, vector<64x32xf32>, vector<16x32xf32> -> vector<16x32xf32>
    %89 = vector.shape_cast %88 : vector<16x32xf32> to vector<1x16x32xf32>
    %c0_36 = arith.constant 0 : index
    %c0_37 = arith.constant 0 : index
    %c0_38 = arith.constant 0 : index
    %90 = vector.load %arg8[%c0_36, %c0_37, %c0_38] : memref<1x16x32xf32, #tpu.memory_space<vmem>>, vector<1x16x32xf32>
    tpu.vector_store %arg8[%c0_36, %c0_37, %c0_38], %89 {strides = array<i32>} : memref<1x16x32xf32, #tpu.memory_space<vmem>>, vector<1x16x32xf32>,
    %91 = vector.shape_cast %0 : vector<1x8x8x32xf32> to vector<8x8x32xf32>
    %92 = vector.shape_cast %91 : vector<8x8x32xf32> to vector<64x32xf32>
    %cst_39 = arith.constant dense<0.000000e+00> : vector<16x32xf32>
    %93 = tpu.matmul %87, %92, %cst_39 {dimension_numbers = #tpu.dot_dimension_numbers<[1], [0], [0], [1], [0, 0, 1, 1], [], []>} : vector<16x64xf32>, vector<64x32xf32>, vector<16x32xf32> -> vector<16x32xf32>
    %94 = vector.shape_cast %93 : vector<16x32xf32> to vector<1x16x32xf32>
    %c0_40 = arith.constant 0 : index
    %c0_41 = arith.constant 0 : index
    %c0_42 = arith.constant 0 : index
    %95 = vector.load %arg9[%c0_40, %c0_41, %c0_42] : memref<1x16x32xf32, #tpu.memory_space<vmem>>, vector<1x16x32xf32>
    tpu.vector_store %arg9[%c0_40, %c0_41, %c0_42], %94 {strides = array<i32>} : memref<1x16x32xf32, #tpu.memory_space<vmem>>, vector<1x16x32xf32>,
    return
  }
  func.func @transform_0(%arg0: i32, %arg1: i32) -> (i32, i32, i32, i32) {
    %c0_i32 = arith.constant 0 : i32
    %c0_i32_0 = arith.constant 0 : i32
    %c0_i32_1 = arith.constant 0 : i32
    return %arg0, %arg1, %c0_i32, %c0_i32_0 : i32, i32, i32, i32
  }
  func.func @transform_1(%arg0: i32, %arg1: i32) -> (i32, i32, i32, i32) {
    %c8_i32 = arith.constant 8 : i32
    %0 = arith.muli %arg1, %c8_i32 : i32
    %c1_i32 = arith.constant 1 : i32
    %1 = arith.subi %0, %c1_i32 : i32
    %c0_i32 = arith.constant 0 : i32
    %2 = arith.maxsi %1, %c0_i32 : i32
    %c0_i32_0 = arith.constant 0 : i32
    %c0_i32_1 = arith.constant 0 : i32
    %c0_i32_2 = arith.constant 0 : i32
    return %arg0, %2, %c0_i32_0, %c0_i32_1 : i32, i32, i32, i32
  }
  func.func @transform_2(%arg0: i32, %arg1: i32) -> (i32, i32, i32, i32) {
    %c8_i32 = arith.constant 8 : i32
    %0 = arith.muli %arg1, %c8_i32 : i32
    %c8_i32_0 = arith.constant 8 : i32
    %1 = arith.addi %0, %c8_i32_0 : i32
    %c7_i32 = arith.constant 7 : i32
    %2 = arith.minsi %1, %c7_i32 : i32
    %c0_i32 = arith.constant 0 : i32
    %c0_i32_1 = arith.constant 0 : i32
    %c0_i32_2 = arith.constant 0 : i32
    return %arg0, %2, %c0_i32, %c0_i32_1 : i32, i32, i32, i32
  }
  func.func @transform_3(%arg0: i32, %arg1: i32) -> (i32, i32, i32, i32) {
    %c0_i32 = arith.constant 0 : i32
    %c0_i32_0 = arith.constant 0 : i32
    %c0_i32_1 = arith.constant 0 : i32
    %c0_i32_2 = arith.constant 0 : i32
    %c0_i32_3 = arith.constant 0 : i32
    return %c0_i32, %c0_i32_0, %c0_i32_1, %c0_i32_2 : i32, i32, i32, i32
  }
  func.func @transform_4(%arg0: i32, %arg1: i32) -> (i32, i32) {
    %c0_i32 = arith.constant 0 : i32
    %c0_i32_0 = arith.constant 0 : i32
    %c0_i32_1 = arith.constant 0 : i32
    return %c0_i32, %c0_i32_0 : i32, i32
  }
  func.func @transform_5(%arg0: i32, %arg1: i32) -> (i32, i32) {
    %c0_i32 = arith.constant 0 : i32
    %c0_i32_0 = arith.constant 0 : i32
    %c0_i32_1 = arith.constant 0 : i32
    return %c0_i32, %c0_i32_0 : i32, i32
  }
  func.func @transform_6(%arg0: i32, %arg1: i32) -> (i32, i32, i32) {
    %c0_i32 = arith.constant 0 : i32
    %c0_i32_0 = arith.constant 0 : i32
    return %arg0, %arg1, %c0_i32 : i32, i32, i32
  }
  func.func @transform_7(%arg0: i32, %arg1: i32) -> (i32, i32, i32) {
    %c0_i32 = arith.constant 0 : i32
    %c0_i32_0 = arith.constant 0 : i32
    return %arg0, %arg1, %c0_i32 : i32, i32, i32
  }
}

module attributes {stable_mosaic.version = 11 : i64} {
  func.func @kernel(%arg0: i32, %arg1: i32, %arg2: memref<1x4x4x32xf32, #tpu.memory_space<vmem>>, %arg3: memref<1x1x4x32xf32, #tpu.memory_space<vmem>>, %arg4: memref<1x1x4x32xf32, #tpu.memory_space<vmem>>, %arg5: memref<3x3x32x64xbf16, #tpu.memory_space<vmem>>, %arg6: memref<1x64xf32, #tpu.memory_space<vmem>>, %arg7: memref<1x4x4x32xf32, #tpu.memory_space<vmem>>, %arg8: memref<32x64xbf16, #tpu.memory_space<vmem>>, %arg9: memref<1x4x4x64xf32, #tpu.memory_space<vmem>>) attributes {dimension_semantics = [#tpu.dimension_semantics<parallel>, #tpu.dimension_semantics<parallel>], iteration_bounds = array<i64: 2, 1>, scalar_prefetch = 0 : i64, scratch_operands = 0 : i64, tpu.core_type = #tpu.core_type<tc>, window_params = [{transform_indices = @transform_0, window_bounds = array<i64: 1, 4, 4, 32>}, {transform_indices = @transform_1, window_bounds = array<i64: 1, 1, 4, 32>}, {transform_indices = @transform_2, window_bounds = array<i64: 1, 1, 4, 32>}, {pipeline_mode = #tpu.pipeline_mode<synchronous>, transform_indices = @transform_3, window_bounds = array<i64: 3, 3, 32, 64>}, {pipeline_mode = #tpu.pipeline_mode<synchronous>, transform_indices = @transform_4, window_bounds = array<i64: 1, 64>}, {transform_indices = @transform_5, window_bounds = array<i64: 1, 4, 4, 32>}, {pipeline_mode = #tpu.pipeline_mode<synchronous>, transform_indices = @transform_6, window_bounds = array<i64: 32, 64>}, {transform_indices = @transform_7, window_bounds = array<i64: 1, 4, 4, 64>}]} {
    %c0 = arith.constant 0 : index
    %c0_0 = arith.constant 0 : index
    %c0_1 = arith.constant 0 : index
    %c0_2 = arith.constant 0 : index
    %0 = vector.load %arg2[%c0, %c0_0, %c0_1, %c0_2] : memref<1x4x4x32xf32, #tpu.memory_space<vmem>>, vector<1x4x4x32xf32>
    %c0_i32 = arith.constant 0 : i32
    %1 = arith.cmpi eq, %arg1, %c0_i32 : i32
    %c0_3 = arith.constant 0 : index
    %c0_4 = arith.constant 0 : index
    %c0_5 = arith.constant 0 : index
    %c0_6 = arith.constant 0 : index
    %2 = vector.load %arg3[%c0_3, %c0_4, %c0_5, %c0_6] : memref<1x1x4x32xf32, #tpu.memory_space<vmem>>, vector<1x1x4x32xf32>
    %cst = arith.constant 0.000000e+00 : f32
    %3 = vector.broadcast %cst : f32 to vector<1x1x4x32xf32>
    %4 = arith.select %1, %3, %2 : vector<1x1x4x32xf32>
    %c0_i32_7 = arith.constant 0 : i32
    %5 = arith.cmpi eq, %arg1, %c0_i32_7 : i32
    %c0_8 = arith.constant 0 : index
    %c0_9 = arith.constant 0 : index
    %c0_10 = arith.constant 0 : index
    %c0_11 = arith.constant 0 : index
    %6 = vector.load %arg4[%c0_8, %c0_9, %c0_10, %c0_11] : memref<1x1x4x32xf32, #tpu.memory_space<vmem>>, vector<1x1x4x32xf32>
    %cst_12 = arith.constant 0.000000e+00 : f32
    %7 = vector.broadcast %cst_12 : f32 to vector<1x1x4x32xf32>
    %8 = arith.select %5, %7, %6 : vector<1x1x4x32xf32>
    %9 = tpu.concatenate %4, %0, %8 in 1 : vector<1x1x4x32xf32>, vector<1x4x4x32xf32>, vector<1x1x4x32xf32> -> vector<1x6x4x32xf32>
    %cst_13 = arith.constant 0.000000e+00 : f32
    %10 = vector.broadcast %cst_13 : f32 to vector<1x6x4x32xf32>
    %11 = arith.cmpf oge, %9, %10 : vector<1x6x4x32xf32>
    %cst_14 = arith.constant 2.000000e-01 : f32
    %12 = vector.broadcast %cst_14 : f32 to vector<1x6x4x32xf32>
    %13 = arith.mulf %12, %9 : vector<1x6x4x32xf32>
    %14 = arith.select %11, %9, %13 : vector<1x6x4x32xi1>, vector<1x6x4x32xf32>
    %cst_15 = arith.constant 0.000000e+00 : f32
    %15 = vector.broadcast %cst_15 : f32 to vector<1x6x1x32xf32>
    %cst_16 = arith.constant 0.000000e+00 : f32
    %16 = vector.broadcast %cst_16 : f32 to vector<1x6x5x32xf32>
    %17 = tpu.concatenate %15, %14, %16 in 2 : vector<1x6x1x32xf32>, vector<1x6x4x32xf32>, vector<1x6x5x32xf32> -> vector<1x6x10x32xf32>
    %18 = vector.shape_cast %17 : vector<1x6x10x32xf32> to vector<6x10x32xf32>
    %c0_17 = arith.constant 0 : index
    %c0_18 = arith.constant 0 : index
    %c0_19 = arith.constant 0 : index
    %c0_20 = arith.constant 0 : index
    %19 = vector.load %arg5[%c0_17, %c0_18, %c0_19, %c0_20] : memref<3x3x32x64xbf16, #tpu.memory_space<vmem>>, vector<3x3x32x64xbf16>
    %cst_21 = arith.constant 0.000000e+00 : f32
    %20 = vector.broadcast %cst_21 : f32 to vector<32x64xf32>
    %21 = vector.extract_strided_slice %18 {offsets = [0, 0, 0], sizes = [4, 8, 32], strides = [1, 1, 1]} : vector<6x10x32xf32> to vector<4x8x32xf32>
    %22 = vector.shape_cast %21 : vector<4x8x32xf32> to vector<32x32xf32>
    %23 = arith.truncf %22 : vector<32x32xf32> to vector<32x32xbf16>
    %24 = vector.extract_strided_slice %19 {offsets = [0, 0, 0, 0], sizes = [1, 1, 32, 64], strides = [1, 1, 1, 1]} : vector<3x3x32x64xbf16> to vector<1x1x32x64xbf16>
    %25 = vector.shape_cast %24 : vector<1x1x32x64xbf16> to vector<32x64xbf16>
    %cst_22 = arith.constant dense<0.000000e+00> : vector<32x64xf32>
    %26 = tpu.matmul %23, %25, %cst_22 {dimension_numbers = #tpu.dot_dimension_numbers<[1], [0], [0], [1], [0, 0, 1, 1], [], []>} : vector<32x32xbf16>, vector<32x64xbf16>, vector<32x64xf32> -> vector<32x64xf32>
    %27 = arith.addf %20, %26 : vector<32x64xf32>
    %28 = vector.extract_strided_slice %18 {offsets = [0, 1, 0], sizes = [4, 8, 32], strides = [1, 1, 1]} : vector<6x10x32xf32> to vector<4x8x32xf32>
    %29 = vector.shape_cast %28 : vector<4x8x32xf32> to vector<32x32xf32>
    %30 = arith.truncf %29 : vector<32x32xf32> to vector<32x32xbf16>
    %31 = vector.extract_strided_slice %19 {offsets = [0, 1, 0, 0], sizes = [1, 1, 32, 64], strides = [1, 1, 1, 1]} : vector<3x3x32x64xbf16> to vector<1x1x32x64xbf16>
    %32 = vector.shape_cast %31 : vector<1x1x32x64xbf16> to vector<32x64xbf16>
    %cst_23 = arith.constant dense<0.000000e+00> : vector<32x64xf32>
    %33 = tpu.matmul %30, %32, %cst_23 {dimension_numbers = #tpu.dot_dimension_numbers<[1], [0], [0], [1], [0, 0, 1, 1], [], []>} : vector<32x32xbf16>, vector<32x64xbf16>, vector<32x64xf32> -> vector<32x64xf32>
    %34 = arith.addf %27, %33 : vector<32x64xf32>
    %35 = vector.extract_strided_slice %18 {offsets = [0, 2, 0], sizes = [4, 8, 32], strides = [1, 1, 1]} : vector<6x10x32xf32> to vector<4x8x32xf32>
    %36 = vector.shape_cast %35 : vector<4x8x32xf32> to vector<32x32xf32>
    %37 = arith.truncf %36 : vector<32x32xf32> to vector<32x32xbf16>
    %38 = vector.extract_strided_slice %19 {offsets = [0, 2, 0, 0], sizes = [1, 1, 32, 64], strides = [1, 1, 1, 1]} : vector<3x3x32x64xbf16> to vector<1x1x32x64xbf16>
    %39 = vector.shape_cast %38 : vector<1x1x32x64xbf16> to vector<32x64xbf16>
    %cst_24 = arith.constant dense<0.000000e+00> : vector<32x64xf32>
    %40 = tpu.matmul %37, %39, %cst_24 {dimension_numbers = #tpu.dot_dimension_numbers<[1], [0], [0], [1], [0, 0, 1, 1], [], []>} : vector<32x32xbf16>, vector<32x64xbf16>, vector<32x64xf32> -> vector<32x64xf32>
    %41 = arith.addf %34, %40 : vector<32x64xf32>
    %42 = vector.extract_strided_slice %18 {offsets = [1, 0, 0], sizes = [4, 8, 32], strides = [1, 1, 1]} : vector<6x10x32xf32> to vector<4x8x32xf32>
    %43 = vector.shape_cast %42 : vector<4x8x32xf32> to vector<32x32xf32>
    %44 = arith.truncf %43 : vector<32x32xf32> to vector<32x32xbf16>
    %45 = vector.extract_strided_slice %19 {offsets = [1, 0, 0, 0], sizes = [1, 1, 32, 64], strides = [1, 1, 1, 1]} : vector<3x3x32x64xbf16> to vector<1x1x32x64xbf16>
    %46 = vector.shape_cast %45 : vector<1x1x32x64xbf16> to vector<32x64xbf16>
    %cst_25 = arith.constant dense<0.000000e+00> : vector<32x64xf32>
    %47 = tpu.matmul %44, %46, %cst_25 {dimension_numbers = #tpu.dot_dimension_numbers<[1], [0], [0], [1], [0, 0, 1, 1], [], []>} : vector<32x32xbf16>, vector<32x64xbf16>, vector<32x64xf32> -> vector<32x64xf32>
    %48 = arith.addf %41, %47 : vector<32x64xf32>
    %49 = vector.extract_strided_slice %18 {offsets = [1, 1, 0], sizes = [4, 8, 32], strides = [1, 1, 1]} : vector<6x10x32xf32> to vector<4x8x32xf32>
    %50 = vector.shape_cast %49 : vector<4x8x32xf32> to vector<32x32xf32>
    %51 = arith.truncf %50 : vector<32x32xf32> to vector<32x32xbf16>
    %52 = vector.extract_strided_slice %19 {offsets = [1, 1, 0, 0], sizes = [1, 1, 32, 64], strides = [1, 1, 1, 1]} : vector<3x3x32x64xbf16> to vector<1x1x32x64xbf16>
    %53 = vector.shape_cast %52 : vector<1x1x32x64xbf16> to vector<32x64xbf16>
    %cst_26 = arith.constant dense<0.000000e+00> : vector<32x64xf32>
    %54 = tpu.matmul %51, %53, %cst_26 {dimension_numbers = #tpu.dot_dimension_numbers<[1], [0], [0], [1], [0, 0, 1, 1], [], []>} : vector<32x32xbf16>, vector<32x64xbf16>, vector<32x64xf32> -> vector<32x64xf32>
    %55 = arith.addf %48, %54 : vector<32x64xf32>
    %56 = vector.extract_strided_slice %18 {offsets = [1, 2, 0], sizes = [4, 8, 32], strides = [1, 1, 1]} : vector<6x10x32xf32> to vector<4x8x32xf32>
    %57 = vector.shape_cast %56 : vector<4x8x32xf32> to vector<32x32xf32>
    %58 = arith.truncf %57 : vector<32x32xf32> to vector<32x32xbf16>
    %59 = vector.extract_strided_slice %19 {offsets = [1, 2, 0, 0], sizes = [1, 1, 32, 64], strides = [1, 1, 1, 1]} : vector<3x3x32x64xbf16> to vector<1x1x32x64xbf16>
    %60 = vector.shape_cast %59 : vector<1x1x32x64xbf16> to vector<32x64xbf16>
    %cst_27 = arith.constant dense<0.000000e+00> : vector<32x64xf32>
    %61 = tpu.matmul %58, %60, %cst_27 {dimension_numbers = #tpu.dot_dimension_numbers<[1], [0], [0], [1], [0, 0, 1, 1], [], []>} : vector<32x32xbf16>, vector<32x64xbf16>, vector<32x64xf32> -> vector<32x64xf32>
    %62 = arith.addf %55, %61 : vector<32x64xf32>
    %63 = vector.extract_strided_slice %18 {offsets = [2, 0, 0], sizes = [4, 8, 32], strides = [1, 1, 1]} : vector<6x10x32xf32> to vector<4x8x32xf32>
    %64 = vector.shape_cast %63 : vector<4x8x32xf32> to vector<32x32xf32>
    %65 = arith.truncf %64 : vector<32x32xf32> to vector<32x32xbf16>
    %66 = vector.extract_strided_slice %19 {offsets = [2, 0, 0, 0], sizes = [1, 1, 32, 64], strides = [1, 1, 1, 1]} : vector<3x3x32x64xbf16> to vector<1x1x32x64xbf16>
    %67 = vector.shape_cast %66 : vector<1x1x32x64xbf16> to vector<32x64xbf16>
    %cst_28 = arith.constant dense<0.000000e+00> : vector<32x64xf32>
    %68 = tpu.matmul %65, %67, %cst_28 {dimension_numbers = #tpu.dot_dimension_numbers<[1], [0], [0], [1], [0, 0, 1, 1], [], []>} : vector<32x32xbf16>, vector<32x64xbf16>, vector<32x64xf32> -> vector<32x64xf32>
    %69 = arith.addf %62, %68 : vector<32x64xf32>
    %70 = vector.extract_strided_slice %18 {offsets = [2, 1, 0], sizes = [4, 8, 32], strides = [1, 1, 1]} : vector<6x10x32xf32> to vector<4x8x32xf32>
    %71 = vector.shape_cast %70 : vector<4x8x32xf32> to vector<32x32xf32>
    %72 = arith.truncf %71 : vector<32x32xf32> to vector<32x32xbf16>
    %73 = vector.extract_strided_slice %19 {offsets = [2, 1, 0, 0], sizes = [1, 1, 32, 64], strides = [1, 1, 1, 1]} : vector<3x3x32x64xbf16> to vector<1x1x32x64xbf16>
    %74 = vector.shape_cast %73 : vector<1x1x32x64xbf16> to vector<32x64xbf16>
    %cst_29 = arith.constant dense<0.000000e+00> : vector<32x64xf32>
    %75 = tpu.matmul %72, %74, %cst_29 {dimension_numbers = #tpu.dot_dimension_numbers<[1], [0], [0], [1], [0, 0, 1, 1], [], []>} : vector<32x32xbf16>, vector<32x64xbf16>, vector<32x64xf32> -> vector<32x64xf32>
    %76 = arith.addf %69, %75 : vector<32x64xf32>
    %77 = vector.extract_strided_slice %18 {offsets = [2, 2, 0], sizes = [4, 8, 32], strides = [1, 1, 1]} : vector<6x10x32xf32> to vector<4x8x32xf32>
    %78 = vector.shape_cast %77 : vector<4x8x32xf32> to vector<32x32xf32>
    %79 = arith.truncf %78 : vector<32x32xf32> to vector<32x32xbf16>
    %80 = vector.extract_strided_slice %19 {offsets = [2, 2, 0, 0], sizes = [1, 1, 32, 64], strides = [1, 1, 1, 1]} : vector<3x3x32x64xbf16> to vector<1x1x32x64xbf16>
    %81 = vector.shape_cast %80 : vector<1x1x32x64xbf16> to vector<32x64xbf16>
    %cst_30 = arith.constant dense<0.000000e+00> : vector<32x64xf32>
    %82 = tpu.matmul %79, %81, %cst_30 {dimension_numbers = #tpu.dot_dimension_numbers<[1], [0], [0], [1], [0, 0, 1, 1], [], []>} : vector<32x32xbf16>, vector<32x64xbf16>, vector<32x64xf32> -> vector<32x64xf32>
    %83 = arith.addf %76, %82 : vector<32x64xf32>
    %c0_31 = arith.constant 0 : index
    %c0_32 = arith.constant 0 : index
    %84 = vector.load %arg6[%c0_31, %c0_32] : memref<1x64xf32, #tpu.memory_space<vmem>>, vector<1x64xf32>
    %85 = vector.broadcast %84 : vector<1x64xf32> to vector<32x64xf32>
    %86 = arith.addf %83, %85 : vector<32x64xf32>
    %c0_33 = arith.constant 0 : index
    %c0_34 = arith.constant 0 : index
    %c0_35 = arith.constant 0 : index
    %c0_36 = arith.constant 0 : index
    %87 = vector.load %arg7[%c0_33, %c0_34, %c0_35, %c0_36] : memref<1x4x4x32xf32, #tpu.memory_space<vmem>>, vector<1x4x4x32xf32>
    %88 = vector.shape_cast %87 : vector<1x4x4x32xf32> to vector<4x4x32xf32>
    %cst_37 = arith.constant 0.000000e+00 : f32
    %89 = vector.broadcast %cst_37 : f32 to vector<4x4x32xf32>
    %90 = tpu.concatenate %88, %89 in 1 : vector<4x4x32xf32>, vector<4x4x32xf32> -> vector<4x8x32xf32>
    %91 = vector.shape_cast %90 : vector<4x8x32xf32> to vector<32x32xf32>
    %92 = arith.truncf %91 : vector<32x32xf32> to vector<32x32xbf16>
    %c0_38 = arith.constant 0 : index
    %c0_39 = arith.constant 0 : index
    %93 = vector.load %arg8[%c0_38, %c0_39] : memref<32x64xbf16, #tpu.memory_space<vmem>>, vector<32x64xbf16>
    %cst_40 = arith.constant dense<0.000000e+00> : vector<32x64xf32>
    %94 = tpu.matmul %92, %93, %cst_40 {dimension_numbers = #tpu.dot_dimension_numbers<[1], [0], [0], [1], [0, 0, 1, 1], [], []>} : vector<32x32xbf16>, vector<32x64xbf16>, vector<32x64xf32> -> vector<32x64xf32>
    %95 = arith.addf %86, %94 : vector<32x64xf32>
    %cst_41 = arith.constant 0.707106769 : f32
    %96 = vector.broadcast %cst_41 : f32 to vector<32x64xf32>
    %97 = arith.mulf %95, %96 : vector<32x64xf32>
    %98 = vector.shape_cast %97 : vector<32x64xf32> to vector<4x8x64xf32>
    %99 = vector.extract_strided_slice %98 {offsets = [0, 0, 0], sizes = [4, 4, 64], strides = [1, 1, 1]} : vector<4x8x64xf32> to vector<4x4x64xf32>
    %100 = vector.shape_cast %99 : vector<4x4x64xf32> to vector<1x4x4x64xf32>
    %c0_42 = arith.constant 0 : index
    %c0_43 = arith.constant 0 : index
    %c0_44 = arith.constant 0 : index
    %c0_45 = arith.constant 0 : index
    %101 = vector.load %arg9[%c0_42, %c0_43, %c0_44, %c0_45] : memref<1x4x4x64xf32, #tpu.memory_space<vmem>>, vector<1x4x4x64xf32>
    tpu.vector_store %arg9[%c0_42, %c0_43, %c0_44, %c0_45], %100 {strides = array<i32>} : memref<1x4x4x64xf32, #tpu.memory_space<vmem>>, vector<1x4x4x64xf32>,
    return
  }
  func.func @transform_0(%arg0: i32, %arg1: i32) -> (i32, i32, i32, i32) {
    %c0_i32 = arith.constant 0 : i32
    %c0_i32_0 = arith.constant 0 : i32
    %c0_i32_1 = arith.constant 0 : i32
    return %arg0, %arg1, %c0_i32, %c0_i32_0 : i32, i32, i32, i32
  }
  func.func @transform_1(%arg0: i32, %arg1: i32) -> (i32, i32, i32, i32) {
    %c4_i32 = arith.constant 4 : i32
    %0 = arith.muli %arg1, %c4_i32 : i32
    %c1_i32 = arith.constant 1 : i32
    %1 = arith.subi %0, %c1_i32 : i32
    %c0_i32 = arith.constant 0 : i32
    %2 = arith.maxsi %1, %c0_i32 : i32
    %c0_i32_0 = arith.constant 0 : i32
    %c0_i32_1 = arith.constant 0 : i32
    %c0_i32_2 = arith.constant 0 : i32
    return %arg0, %2, %c0_i32_0, %c0_i32_1 : i32, i32, i32, i32
  }
  func.func @transform_2(%arg0: i32, %arg1: i32) -> (i32, i32, i32, i32) {
    %c4_i32 = arith.constant 4 : i32
    %0 = arith.muli %arg1, %c4_i32 : i32
    %c4_i32_0 = arith.constant 4 : i32
    %1 = arith.addi %0, %c4_i32_0 : i32
    %c3_i32 = arith.constant 3 : i32
    %2 = arith.minsi %1, %c3_i32 : i32
    %c0_i32 = arith.constant 0 : i32
    %c0_i32_1 = arith.constant 0 : i32
    %c0_i32_2 = arith.constant 0 : i32
    return %arg0, %2, %c0_i32, %c0_i32_1 : i32, i32, i32, i32
  }
  func.func @transform_3(%arg0: i32, %arg1: i32) -> (i32, i32, i32, i32) {
    %c0_i32 = arith.constant 0 : i32
    %c0_i32_0 = arith.constant 0 : i32
    %c0_i32_1 = arith.constant 0 : i32
    %c0_i32_2 = arith.constant 0 : i32
    %c0_i32_3 = arith.constant 0 : i32
    return %c0_i32, %c0_i32_0, %c0_i32_1, %c0_i32_2 : i32, i32, i32, i32
  }
  func.func @transform_4(%arg0: i32, %arg1: i32) -> (i32, i32) {
    %c0_i32 = arith.constant 0 : i32
    %c0_i32_0 = arith.constant 0 : i32
    %c0_i32_1 = arith.constant 0 : i32
    return %c0_i32, %c0_i32_0 : i32, i32
  }
  func.func @transform_5(%arg0: i32, %arg1: i32) -> (i32, i32, i32, i32) {
    %c0_i32 = arith.constant 0 : i32
    %c0_i32_0 = arith.constant 0 : i32
    %c0_i32_1 = arith.constant 0 : i32
    return %arg0, %arg1, %c0_i32, %c0_i32_0 : i32, i32, i32, i32
  }
  func.func @transform_6(%arg0: i32, %arg1: i32) -> (i32, i32) {
    %c0_i32 = arith.constant 0 : i32
    %c0_i32_0 = arith.constant 0 : i32
    %c0_i32_1 = arith.constant 0 : i32
    return %c0_i32, %c0_i32_0 : i32, i32
  }
  func.func @transform_7(%arg0: i32, %arg1: i32) -> (i32, i32, i32, i32) {
    %c0_i32 = arith.constant 0 : i32
    %c0_i32_0 = arith.constant 0 : i32
    %c0_i32_1 = arith.constant 0 : i32
    return %arg0, %arg1, %c0_i32, %c0_i32_0 : i32, i32, i32, i32
  }
}

module attributes {stable_mosaic.version = 11 : i64} {
  func.func @_head_kernel(%arg0: i32, %arg1: memref<2xi32, #tpu.memory_space<smem>>, %arg2: memref<1x1x1024xf32, #tpu.memory_space<vmem>>, %arg3: memref<1024x64xbf16, #tpu.memory_space<vmem>>, %arg4: memref<1x64xf32, #tpu.memory_space<vmem>>, %arg5: memref<1x64x64xbf16, #tpu.memory_space<vmem>>, %arg6: memref<1x1x64xf32, #tpu.memory_space<vmem>>, %arg7: memref<1x1x64xf32, #tpu.memory_space<vmem>>) attributes {dimension_semantics = [#tpu.dimension_semantics<arbitrary>], iteration_bounds = array<i64: 2>, scalar_prefetch = 1 : i64, scratch_operands = 0 : i64, tpu.core_type = #tpu.core_type<tc>, window_params = [{transform_indices = @transform_0, window_bounds = array<i64: 1, 1, 1024>}, {pipeline_mode = #tpu.pipeline_mode<synchronous>, transform_indices = @transform_1, window_bounds = array<i64: 1024, 64>}, {pipeline_mode = #tpu.pipeline_mode<synchronous>, transform_indices = @transform_2, window_bounds = array<i64: 1, 64>}, {transform_indices = @transform_3, window_bounds = array<i64: 1, 64, 64>}, {transform_indices = @transform_4, window_bounds = array<i64: 1, 1, 64>}, {transform_indices = @transform_5, window_bounds = array<i64: 1, 1, 64>}]} {
    %c0 = arith.constant 0 : index
    %c0_0 = arith.constant 0 : index
    %c0_1 = arith.constant 0 : index
    %0 = vector.load %arg2[%c0, %c0_0, %c0_1] : memref<1x1x1024xf32, #tpu.memory_space<vmem>>, vector<1x1x1024xf32>
    %1 = vector.shape_cast %0 : vector<1x1x1024xf32> to vector<1x1024xf32>
    %cst = arith.constant 0.000000e+00 : f32
    %2 = vector.broadcast %cst : f32 to vector<1x1024xf32>
    %3 = arith.cmpf oge, %1, %2 : vector<1x1024xf32>
    %cst_2 = arith.constant 2.000000e-01 : f32
    %4 = vector.broadcast %cst_2 : f32 to vector<1x1024xf32>
    %5 = arith.mulf %4, %1 : vector<1x1024xf32>
    %6 = arith.select %3, %1, %5 : vector<1x1024xi1>, vector<1x1024xf32>
    %7 = arith.truncf %6 : vector<1x1024xf32> to vector<1x1024xbf16>
    %c0_3 = arith.constant 0 : index
    %c0_4 = arith.constant 0 : index
    %8 = vector.load %arg3[%c0_3, %c0_4] : memref<1024x64xbf16, #tpu.memory_space<vmem>>, vector<1024x64xbf16>
    %cst_5 = arith.constant dense<0.000000e+00> : vector<1x64xf32>
    %9 = tpu.matmul %7, %8, %cst_5 {dimension_numbers = #tpu.dot_dimension_numbers<[1], [0], [0], [1], [0, 0, 1, 1], [], []>} : vector<1x1024xbf16>, vector<1024x64xbf16>, vector<1x64xf32> -> vector<1x64xf32>
    %c0_6 = arith.constant 0 : index
    %c0_7 = arith.constant 0 : index
    %10 = vector.load %arg4[%c0_6, %c0_7] : memref<1x64xf32, #tpu.memory_space<vmem>>, vector<1x64xf32>
    %11 = arith.addf %9, %10 : vector<1x64xf32>
    %cst_8 = arith.constant 0.000000e+00 : f32
    %12 = vector.broadcast %cst_8 : f32 to vector<1x64xf32>
    %13 = arith.cmpf oge, %11, %12 : vector<1x64xf32>
    %cst_9 = arith.constant 2.000000e-01 : f32
    %14 = vector.broadcast %cst_9 : f32 to vector<1x64xf32>
    %15 = arith.mulf %14, %11 : vector<1x64xf32>
    %16 = arith.select %13, %11, %15 : vector<1x64xi1>, vector<1x64xf32>
    %17 = arith.truncf %16 : vector<1x64xf32> to vector<1x64xbf16>
    %c0_10 = arith.constant 0 : index
    %c0_11 = arith.constant 0 : index
    %c0_12 = arith.constant 0 : index
    %18 = vector.load %arg5[%c0_10, %c0_11, %c0_12] : memref<1x64x64xbf16, #tpu.memory_space<vmem>>, vector<1x64x64xbf16>
    %19 = vector.shape_cast %18 : vector<1x64x64xbf16> to vector<64x64xbf16>
    %cst_13 = arith.constant dense<0.000000e+00> : vector<1x64xf32>
    %20 = tpu.matmul %17, %19, %cst_13 {dimension_numbers = #tpu.dot_dimension_numbers<[1], [0], [0], [1], [0, 0, 1, 1], [], []>} : vector<1x64xbf16>, vector<64x64xbf16>, vector<1x64xf32> -> vector<1x64xf32>
    %c0_14 = arith.constant 0 : index
    %c0_15 = arith.constant 0 : index
    %c0_16 = arith.constant 0 : index
    %21 = vector.load %arg6[%c0_14, %c0_15, %c0_16] : memref<1x1x64xf32, #tpu.memory_space<vmem>>, vector<1x1x64xf32>
    %22 = vector.shape_cast %21 : vector<1x1x64xf32> to vector<1x64xf32>
    %23 = arith.addf %20, %22 : vector<1x64xf32>
    %24 = vector.shape_cast %23 : vector<1x64xf32> to vector<1x1x64xf32>
    %c0_17 = arith.constant 0 : index
    %c0_18 = arith.constant 0 : index
    %c0_19 = arith.constant 0 : index
    %25 = vector.load %arg7[%c0_17, %c0_18, %c0_19] : memref<1x1x64xf32, #tpu.memory_space<vmem>>, vector<1x1x64xf32>
    tpu.vector_store %arg7[%c0_17, %c0_18, %c0_19], %24 {strides = array<i32>} : memref<1x1x64xf32, #tpu.memory_space<vmem>>, vector<1x1x64xf32>,
    return
  }
  func.func @transform_0(%arg0: i32, %arg1: memref<2xi32, #tpu.memory_space<smem>>) -> (i32, i32, i32) {
    %c0_i32 = arith.constant 0 : i32
    %c0_i32_0 = arith.constant 0 : i32
    %c0_i32_1 = arith.constant 0 : i32
    return %arg0, %c0_i32, %c0_i32_0 : i32, i32, i32
  }
  func.func @transform_1(%arg0: i32, %arg1: memref<2xi32, #tpu.memory_space<smem>>) -> (i32, i32) {
    %c0_i32 = arith.constant 0 : i32
    %c0_i32_0 = arith.constant 0 : i32
    %c0_i32_1 = arith.constant 0 : i32
    return %c0_i32, %c0_i32_0 : i32, i32
  }
  func.func @transform_2(%arg0: i32, %arg1: memref<2xi32, #tpu.memory_space<smem>>) -> (i32, i32) {
    %c0_i32 = arith.constant 0 : i32
    %c0_i32_0 = arith.constant 0 : i32
    %c0_i32_1 = arith.constant 0 : i32
    return %c0_i32, %c0_i32_0 : i32, i32
  }
  func.func @transform_3(%arg0: i32, %arg1: memref<2xi32, #tpu.memory_space<smem>>) -> (i32, i32, i32) {
    %0 = arith.index_cast %arg0 : i32 to index
    %1 = memref.load %arg1[%0] : memref<2xi32, #tpu.memory_space<smem>>
    %c0_i32 = arith.constant 0 : i32
    %c0_i32_0 = arith.constant 0 : i32
    %c0_i32_1 = arith.constant 0 : i32
    return %1, %c0_i32, %c0_i32_0 : i32, i32, i32
  }
  func.func @transform_4(%arg0: i32, %arg1: memref<2xi32, #tpu.memory_space<smem>>) -> (i32, i32, i32) {
    %0 = arith.index_cast %arg0 : i32 to index
    %1 = memref.load %arg1[%0] : memref<2xi32, #tpu.memory_space<smem>>
    %c0_i32 = arith.constant 0 : i32
    %c0_i32_0 = arith.constant 0 : i32
    %c0_i32_1 = arith.constant 0 : i32
    return %1, %c0_i32, %c0_i32_0 : i32, i32, i32
  }
  func.func @transform_5(%arg0: i32, %arg1: memref<2xi32, #tpu.memory_space<smem>>) -> (i32, i32, i32) {
    %c0_i32 = arith.constant 0 : i32
    %c0_i32_0 = arith.constant 0 : i32
    %c0_i32_1 = arith.constant 0 : i32
    return %arg0, %c0_i32, %c0_i32_0 : i32, i32, i32
  }
}

</mosaic_0001>

<bundles_post_ra>
// kernel: style_encoder_forward.8
= control target key start
LH: loop header
LB: loop body
LE: loop exit
PB: predicated region body
PF: predicated region fallthrough
CT: control target
= control target key end

     0   :  { %s2176_s24 = smov 0   ;;  %s2178_s1 = smov 0   ;;  %s2488_s0 = inlined_call_operand.vmem [shape: f32[2,8,8,16], index: 0, kind: input, shape index: {}, may-alias: {0,1,2}]   ;;  %s2489_s1 = inlined_call_operand.vmem [shape: f32[2,8,8,16], index: 1, kind: input, shape index: {}, may-alias: {0,1,2}]   ;;  %s2490_s2 = inlined_call_operand.vmem [shape: f32[2,8,8,16], index: 2, kind: input, shape index: {}, may-alias: {0,1,2}]   ;;  %s2491_s3 = inlined_call_operand.vmem [shape: bf16[3,3,16,32], index: 3, kind: input, shape index: {}]   ;;  %s2492_s4 = inlined_call_operand.vmem [shape: f32[1,32], index: 4, kind: input, shape index: {}]   ;;  %s2493_s5 = inlined_call_operand.vmem [shape: f32[2,8,8,16], index: 5, kind: input, shape index: {}]   ;;  %s2494_s6 = inlined_call_operand.vmem [shape: bf16[16,32], index: 6, kind: input, shape index: {}]   ;;  %s2495_s7 = inlined_call_operand.vmem [shape: f32[2,8,8,32], index: 7, kind: output, shape index: {}]  }
   0x1   :  { %s2180_s2 = smov 0  }
   0x2 LB: > { %s29_s25 = sadd.s32 1, %s2129_s1  ;;  %p1776_p0 = scmp.ge.s32.totalorder %s2133_s2, 1  ;;  %s2133_s2 = sphi %s2180_s2, %s17_s2   ;;  %s2129_s1 = sphi %s2178_s1, %s2497_s1   ;;  %s2125_s24 = sphi %s2176_s24, %s2496_s24  }
   0x3   : > { %p31_p1 = scmp.ge.s32.totalorder %s29_s25, 2  ;;  %p337_p2 = scmp.lt.s32.totalorder %s2133_s2, 3 }
   0x5   : > { %s2499_s25 = smov (%p31_p1, %s29_s25), 0  ;;  %p338_p3 = pnand %p1776_p0, %p337_p2 }
   0x6   : > { %v2101_v0 = vld [vmem:[%s2491_s3 + $0x8] sm:$0xff] (!%p338_p3)   ;;  %p411_p4 = scmp.lt.s32.totalorder (!%p338_p3), %s2125_s24, 1  ;;  %v2135_v2 = vmov (!%p338_p3), 0.0   ;;  %vm549_vm0 = vcmask (!%p338_p3), 1040384   ;;  %v2203_v4 = vld [vmem:[%s2491_s3] sm:$0xff] (!%p338_p3)   ;;  %v2208_v5 = vld [vmem:[%s2491_s3 + $0x30] sm:$0xff] (!%p338_p3)  }
   0x7   : > { %341 = sbr.rel (%p338_p3) target bundleno = 334 (0x14e), region = 48  ;;  %v2102_v1 = vld [vmem:[%s2491_s3 + $0x28] sm:$0xff] (!%p338_p3)   ;;  %1896 = vmatprep.subr.bf16.mxu1 (!%p338_p3), %v2101_v0  ;;  %v529_v3 = vrot.slane (!%p338_p3), %v2135_v2, 7  ;;  %vm608_vm2 = vcmask (!%p338_p3), 1046528   ;;  %vm651_vm8 = vcmask (!%p338_p3), 130048   ;;  %vm812_vm9 = vcmask (!%p338_p3), 1045504  }
   0x8   : > { %1897 = vmatpush3.bf16.msra.mxu1 (!%p338_p3), %v2101_v0  ;;  %1946 = vmatprep.subr.bf16.mxu0 (!%p338_p3), %v2102_v1  ;;  %v2277_v56 = vld [vmem:[%s2491_s3 + $0x10] sm:$0xff] (!%p338_p3)   ;;  %vm1622_vm12 = vcmask (!%p338_p3), 261120  }
   0x9   : > { %1947 = vmatpush3.bf16.msra.mxu0 (!%p338_p3), %v2102_v1  ;;  %1906 = vmatprep.subr.bf16.mxu1 (!%p338_p3), %v2203_v4  ;;  %v2220_v6 = vsel (!%p338_p3), %vm549_vm0, 0.0, %v529_v3  ;;  %v2230_v13 = vsel (!%p338_p3), %vm549_vm0, %v529_v3, 0.0 }
   0xa   : > { %1956 = vmatprep.subr.bf16.mxu0 (!%p338_p3), %v2208_v5  ;;  %v609_v15 = vrot.slane (!%p338_p3), %v2220_v6, 1  ;;  %v610_v25 = vrot.slane (!%p338_p3), %v2230_v13, 1 }
   0xc   : > { %v2247_v35 = vsel (!%p338_p3), %vm608_vm2, %v609_v15, %v610_v25 }
   0xe   : > { %s2501_s24 = smov (!%p411_p4, %s2125_s24), 1 }
   0xf   : > { %s2210_s11 = sshll.u32 %s2501_s24, 6 }
  0x10   : > { %s2217_s14 = scalar_lea.vmem %s2488_s0, %s2210_s11  ;;  %s460_s30 = scalar_lea.vmem %s2493_s5, %s2210_s11 }
  0x11   : > { %v473_v7 = vld [vmem:[%s2217_s14] sm:$0xff]  ;;  %v474_v8 = vld [vmem:[%s2217_s14 + $0x8] sm:$0xff]  ;;  %v475_v9 = vld [vmem:[%s2217_s14 + $0x10] sm:$0xff]  ;;  %s2461_s13 = scalar_lea.vmem %s2495_s7, %s2210_s11 }
  0x12   : > { %v476_v10 = vld [vmem:[%s2217_s14 + $0x18] sm:$0xff]  ;;  %v479_v11 = vld [vmem:[%s2217_s14 + $0x30] sm:$0xff]  ;;  %vm490_vm1 = vcmp.ge.f32.partialorder %v473_v7, 0.0  ;;  %vm491_vm3 = vcmp.ge.f32.partialorder %v474_v8, 0.0  ;;  %vm492_vm4 = vcmp.ge.f32.partialorder %v475_v9, 0.0  ;;  %v477_v51 = vld [vmem:[%s2217_s14 + $0x20] sm:$0xff] }
  0x13   : > { %v480_v12 = vld [vmem:[%s2217_s14 + $0x38] sm:$0xff]  ;;  %v500_v14 = vmul.f32 0.2, %v473_v7  ;;  %v501_v16 = vmul.f32 0.2, %v474_v8  ;;  %vm493_vm5 = vcmp.ge.f32.partialorder %v476_v10, 0.0 }
  0x14   : > { %v502_v17 = vmul.f32 0.2, %v475_v9  ;;  %v503_v18 = vmul.f32 0.2, %v476_v10  ;;  %v506_v19 = vmul.f32 0.2, %v479_v11 }
  0x15   : > { %v507_v20 = vmul.f32 0.2, %v480_v12  ;;  %v510_v21 = vsel %vm490_vm1, %v473_v7, %v500_v14  ;;  %v511_v22 = vsel %vm491_vm3, %v474_v8, %v501_v16  ;;  %vm496_vm6 = vcmp.ge.f32.partialorder %v479_v11, 0.0  ;;  %v478_v3 = vld [vmem:[%s2217_s14 + $0x28] sm:$0xff] }
  0x16   : > { %v512_v23 = vsel %vm492_vm4, %v475_v9, %v502_v17  ;;  %v530_v24 = vrot.slane %v510_v21, 7  ;;  %v531_v26 = vrot.slane %v511_v22, 7  ;;  %vm497_vm7 = vcmp.ge.f32.partialorder %v480_v12, 0.0 }
  0x17   : > { %v532_v27 = vrot.slane %v512_v23, 7  ;;  %v513_v28 = vsel %vm493_vm5, %v476_v10, %v503_v18  ;;  %v516_v36 = vsel %vm496_vm6, %v479_v11, %v506_v19  ;;  %v517_v37 = vsel %vm497_vm7, %v480_v12, %v507_v20  ;;  %v2106_v18 = vld [vmem:[%s2491_s3 + $0x38] sm:$0xff]  }
  0x18   : > { %v2235_v29 = vsel %vm549_vm0, 0.0, %v530_v24  ;;  %v2238_v30 = vsel %vm549_vm0, 0.0, %v531_v26  ;;  %v561_v32 = vsel %vm549_vm0, %v530_v24, 0.0  ;;  %v562_v33 = vsel %vm549_vm0, %v531_v26, 0.0 }
  0x19   : > { %v2241_v31 = vsel %vm549_vm0, 0.0, %v532_v27  ;;  %v563_v34 = vsel %vm549_vm0, %v532_v27, 0.0  ;;  %v533_v38 = vrot.slane %v513_v28, 7  ;;  %v612_v39 = vrot.slane %v2235_v29, 1 }
  0x1a   : > { %v613_v40 = vrot.slane %v561_v32, 1  ;;  %v615_v41 = vrot.slane %v2238_v30, 1  ;;  %v616_v42 = vrot.slane %v562_v33, 1  ;;  %v618_v43 = vrot.slane %v2241_v31, 1 }
  0x1b   : > { %v619_v44 = vrot.slane %v563_v34, 1  ;;  %v536_v45 = vrot.slane %v516_v36, 7  ;;  %v537_v48 = vrot.slane %v517_v37, 7  ;;  %v2265_v52 = vsel %vm549_vm0, 0.0, %v533_v38 }
  0x1c   : > { %v2253_v46 = vsel %vm608_vm2, %v612_v39, %v613_v40  ;;  %v2256_v47 = vsel %vm608_vm2, %v615_v41, %v616_v42  ;;  %v564_v53 = vsel %vm549_vm0, %v533_v38, 0.0  ;;  %v816_v57 = vrot.slane %v2235_v29, 2 }
  0x1d   : > { %v2259_v49 = vsel %vm608_vm2, %v618_v43, %v619_v44  ;;  %v641_v50 = vpack.c.bf16 %v2253_v46, %v2247_v35  ;;  %v1041_v55 = vpack.c.bf16 %v2256_v47, %v2253_v46  ;;  %v817_v58 = vrot.slane %v561_v32, 2  ;;  %v1515_v46 = vld [vmem:[%s460_s30 + $0x30] sm:$0xff] }
  0x1e   : > { %v2270_v54 = vpack.c.bf16 %v2259_v49, %v2256_v47  ;;  %v819_v59 = vrot.slane %v2238_v30, 2  ;;  %v2283_v60 = vsel %vm549_vm0, 0.0, %v536_v45  ;;  %v820_v61 = vrot.slane %v562_v33, 2  ;;  %v1516_v47 = vld [vmem:[%s460_s30 + $0x38] sm:$0xff] }
  0x1f   : > { %1898 = vmatprep.mubr.msk.bf16.mxu1 %vm651_vm8, %v641_v50  ;;  %v822_v62 = vrot.slane %v2241_v31, 2  ;;  %vm494_vm10 = vcmp.ge.f32.partialorder %v477_v51, 0.0  ;;  %v2289_v63 = vsel %vm812_vm9, %v816_v57, %v817_v58  ;;  %v823_v0 = vrot.slane %v563_v34, 2 }
  0x20   : > { %1899 = vmatmul.mubr.msk.bf16.vlgmr.msra.gmra.mrb[0].mxu1 %vm651_vm8, %v2270_v54  ;;  %v825_v1 = vrot.slane %v2265_v52, 2  ;;  %v826_v2 = vrot.slane %v564_v53, 2  ;;  %v2295_v7 = vsel %vm549_vm0, 0.0, %v537_v48  ;;  %v567_v8 = vsel %vm549_vm0, %v536_v45, 0.0 }
  0x21   : > { %1907 = vmatpush3.bf16.msra.mxu1 %v2203_v4  ;;  %v2299_v9 = vsel %vm549_vm0, %v537_v48, 0.0  ;;  %v2302_v10 = vsel %vm812_vm9, %v819_v59, %v820_v61  ;;  %v2306_v11 = vsel %vm812_vm9, %v822_v62, %v823_v0  ;;  %v504_v14 = vmul.f32 0.2, %v477_v51 }
  0x22   : > { %1916 = vmatprep.subr.bf16.mxu1 %v2277_v56  ;;  %v2309_v12 = vsel %vm812_vm9, %v825_v1, %v826_v2  ;;  %v1140_v4 = vpack.c.bf16 %v2302_v10, %v2289_v63  ;;  %v621_v15 = vrot.slane %v2265_v52, 1  ;;  %v622_v16 = vrot.slane %v564_v53, 1 }
  0x23   : > { %v1141_v17 = vpack.c.bf16 %v2309_v12, %v2306_v11  ;;  %vm495_vm11 = vcmp.ge.f32.partialorder %v478_v3, 0.0  ;;  %v1136_v19 = vrot.slane %v2295_v7, 2  ;;  %v514_v20 = vsel %vm494_vm10, %v477_v51, %v504_v14 }
  0x24   : > { %1948 = vmatprep.mubr.msk.bf16.mxu0 %vm651_vm8, %v1140_v4  ;;  %v505_v21 = vmul.f32 0.2, %v478_v3  ;;  %v1137_v22 = vrot.slane %v2299_v9, 2  ;;  %v534_v23 = vrot.slane %v514_v20, 7  ;;  %v834_v24 = vrot.slane %v2283_v60, 2 }
  0x25   : > { %1949 = vmatmul.mubr.msk.bf16.vlgmr.msra.gmra.mrb[0].mxu0 %vm651_vm8, %v1141_v17  ;;  %v835_v25 = vrot.slane %v567_v8, 2  ;;  %v630_v26 = vrot.slane %v2283_v60, 1  ;;  %v631_v27 = vrot.slane %v567_v8, 1  ;;  %v2328_v32 = vsel %vm608_vm2, %v621_v15, %v622_v16  ;;  %v2107_v16 = vld [vmem:[%s2491_s3 + $0x18] sm:$0xff]   ;;  %v2108_v17 = vld [vmem:[%s2491_s3 + $0x40] sm:$0xff]  }
  0x26   : > { %1957 = vmatpush3.bf16.msra.mxu0 %v2208_v5  ;;  %v515_v28 = vsel %vm495_vm11, %v478_v3, %v505_v21  ;;  %v2331_v33 = vsel %vm549_vm0, 0.0, %v534_v23  ;;  %v565_v34 = vsel %vm549_vm0, %v534_v23, 0.0  ;;  %v2337_v41 = vsel %vm812_vm9, %v1136_v19, %v1137_v22  ;;  %v2110_v22 = vld [vmem:[%s2494_s6] sm:$0xff]  }
  0x27   : > { %v535_v36 = vrot.slane %v515_v28, 7  ;;  %1966 = vmatprep.subr.bf16.mxu0 %v2106_v18  ;;  %v624_v37 = vrot.slane %v2331_v33, 1  ;;  %v625_v38 = vrot.slane %v565_v34, 1  ;;  %v828_v39 = vrot.slane %v2331_v33, 2 }
  0x28   : > { %v829_v40 = vrot.slane %v565_v34, 2  ;;  %v836_v43 = vsel %vm812_vm9, %v834_v24, %v835_v25  ;;  %v2350_v51 = vsel %vm608_vm2, %v630_v26, %v631_v27  ;;  %v588_v1 = vpack.c.bf16 %v2235_v29, %v2220_v6  ;;  %v1511_v24 = vld [vmem:[%s460_s30 + $0x10] sm:$0xff]  ;;  %v1512_v25 = vld [vmem:[%s460_s30 + $0x18] sm:$0xff]  ;;  %v1513_v26 = vld [vmem:[%s460_s30 + $0x20] sm:$0xff] }
  0x29   : > { %v2340_v5 = vsel %vm549_vm0, 0.0, %v535_v36  ;;  %v566_v42 = vsel %vm549_vm0, %v535_v36, 0.0  ;;  %v2345_v44 = vsel %vm608_vm2, %v624_v37, %v625_v38  ;;  %v1143_v61 = vpack.c.bf16 %v2337_v41, %v836_v43  ;;  %v1514_v27 = vld [vmem:[%s460_s30 + $0x28] sm:$0xff] }
  0x2a   : > { %v830_v45 = vsel %vm812_vm9, %v828_v39, %v829_v40  ;;  %v831_v48 = vrot.slane %v2340_v5, 2  ;;  %v832_v50 = vrot.slane %v566_v42, 2  ;;  %v643_v53 = vpack.c.bf16 %v2345_v44, %v2328_v32 }
  0x2b   : > { %v627_v57 = vrot.slane %v2340_v5, 1  ;;  %v628_v58 = vrot.slane %v566_v42, 1  ;;  %v589_v2 = vpack.c.bf16 %v2241_v31, %v2238_v30  ;;  %v590_v8 = vpack.c.bf16 %v2331_v33, %v2265_v52 }
  0x2c   : > { %v833_v59 = vsel %vm812_vm9, %v831_v48, %v832_v50  ;;  %1902 = vmatprep.mubr.msk.bf16.mxu1 %vm651_vm8, %v643_v53  ;;  %v813_v4 = vrot.slane %v2220_v6, 2  ;;  %v814_v14 = vrot.slane %v2230_v13, 2  ;;  %v591_v15 = vpack.c.bf16 %v2283_v60, %v2340_v5 }
  0x2d   : > { %v1142_v62 = vpack.c.bf16 %v833_v59, %v830_v45  ;;  %v2359_v0 = vsel %vm608_vm2, %v627_v57, %v628_v58  ;;  %v1235_v19 = vpack.c.bf16 %v2220_v6, %v2295_v7  ;;  %v1038_v21 = vrot.slane %v2299_v9, 1 }
  0x2e   : > { %v644_v3 = vpack.c.bf16 %v2350_v51, %v2359_v0  ;;  %v815_v13 = vsel %vm812_vm9, %v813_v4, %v814_v14  ;;  %v847_v6 = vpack.c.bf16 %v830_v45, %v2309_v12  ;;  %v941_v12 = vpack.c.bf16 %v2265_v52, %v2241_v31 }
  0x2f   : > { %1952 = vmatprep.mubr.msk.bf16.mxu0 %vm651_vm8, %v1142_v62  ;;  %v845_v20 = vpack.c.bf16 %v2289_v63, %v815_v13  ;;  %v2109_v63 = vld [vmem:[%s2491_s3 + $0x20] sm:$0xff]   ;;  %v942_v23 = vpack.c.bf16 %v2340_v5, %v2331_v33  ;;  %v1411_v31 = vpack.c.bf16 %v815_v13, %v2337_v41  ;;  %v1042_v28 = vpack.c.bf16 %v2328_v32, %v2259_v49 }
  0x30   : > { %1903 = vmatmul.mubr.msk.bf16.gmra.mrb[4].mxu1 %vm651_vm8, %v644_v3  ;;  %1953 = vmatmul.mubr.msk.bf16.gmra.mrb[4].mxu0 %vm651_vm8, %v1143_v61  ;;  %v1519_v33 = vpack.c.bf16 %v1514_v27, %v1513_v26  ;;  %v1520_v34 = vpack.c.bf16 %v1516_v47, %v1515_v46  ;;  %v1832_v49 = vld [vmem:[%s2492_s4] ss:$0 sm:$0xff] }
  0x31   : > { %1908 = vmatprep.mubr.msk.bf16.mxu1 %vm651_vm8, %v588_v1  ;;  %1958 = vmatprep.mubr.msk.bf16.mxu0 %vm651_vm8, %v589_v2 }
  0x38   : > { %1909 = vmatmul.mubr.msk.bf16.vlgmr.msra.gmra.mrb[0].mxu1 %vm651_vm8, %v589_v2  ;;  %1959 = vmatmul.mubr.msk.bf16.vlgmr.msra.gmra.mrb[0].mxu0 %vm651_vm8, %v590_v8 }
  0x39   : > { %1917 = vmatpush3.bf16.msra.mxu1 %v2277_v56  ;;  %1967 = vmatpush3.bf16.msra.mxu0 %v2106_v18  ;;  %v846_v56 = vpack.c.bf16 %v2306_v11, %v2302_v10  ;;  %v1037_v18 = vrot.slane %v2295_v7, 1  ;;  %v848_v10 = vpack.c.bf16 %v836_v43, %v833_v59  ;;  %v940_v11 = vpack.c.bf16 %v2238_v30, %v2235_v29  ;;  %v1509_v29 = vld [vmem:[%s460_s30] sm:$0xff]  ;;  %v1510_v30 = vld [vmem:[%s460_s30 + $0x8] sm:$0xff] }
  0x3a   : > { %1912 = vmatprep.mubr.msk.bf16.mxu1 %vm651_vm8, %v590_v8  ;;  %1962 = vmatprep.mubr.msk.bf16.mxu0 %vm651_vm8, %v591_v15  ;;  %v1517_v52 = vpack.c.bf16 %v1510_v30, %v1509_v29 }
  0x3b   : > { %1926 = vmatprep.subr.bf16.mxu1 %v2107_v16  ;;  %1976 = vmatprep.subr.bf16.mxu0 %v2108_v17 }
  0x40   : > { %1913 = vmatmul.mubr.msk.bf16.gmra.mrb[4].mxu1 %vm651_vm8, %v591_v15  ;;  %1963 = vmatmul.mubr.msk.bf16.gmra.mrb[4].mxu0 %vm651_vm8, %v1235_v19 }
  0x41   : > { %1918 = vmatprep.mubr.msk.bf16.mxu1 %vm651_vm8, %v845_v20  ;;  %1968 = vmatprep.mubr.msk.bf16.mxu0 %vm651_vm8, %v2270_v54  ;;  %v1039_v54 = vsel %vm608_vm2, %v1037_v18, %v1038_v21 }
  0x42   : > { %v1324_v9 = vpack.c.bf16 %v2247_v35, %v1039_v54  ;;  %v943_v35 = vpack.c.bf16 %v2295_v7, %v2283_v60  ;;  %v1518_v60 = vpack.c.bf16 %v1512_v25, %v1511_v24  ;;  %v1043_v7 = vpack.c.bf16 %v2359_v0, %v2345_v44 }
  0x48   : > { %1919 = vmatmul.mubr.msk.bf16.vlgmr.msra.gmra.mrb[0].mxu1 %vm651_vm8, %v846_v56  ;;  %1969 = vmatmul.mubr.msk.bf16.vlgmr.msra.gmra.mrb[0].mxu0 %vm651_vm8, %v643_v53 }
  0x49   : > { %1927 = vmatpush3.bf16.msra.mxu1 %v2107_v16  ;;  %1977 = vmatpush3.bf16.msra.mxu0 %v2108_v17 }
  0x4a   : > { %1922 = vmatprep.mubr.msk.bf16.mxu1 %vm651_vm8, %v847_v6  ;;  %1972 = vmatprep.mubr.msk.bf16.mxu0 %vm651_vm8, %v644_v3 }
  0x4b   : > { %1936 = vmatprep.subr.bf16.mxu1 %v2109_v63  ;;  %1986 = vmatprep.subr.bf16.mxu0 %v2110_v22 }
  0x50   : > { %1923 = vmatmul.mubr.msk.bf16.gmra.mrb[4].mxu1 %vm651_vm8, %v848_v10  ;;  %1973 = vmatmul.mubr.msk.bf16.gmra.mrb[4].mxu0 %vm651_vm8, %v1324_v9 }
  0x51   : > { %1928 = vmatprep.mubr.msk.bf16.mxu1 %vm651_vm8, %v940_v11  ;;  %1978 = vmatprep.mubr.msk.bf16.mxu0 %vm651_vm8, %v846_v56 }
  0x58   : > { %1929 = vmatmul.mubr.msk.bf16.vlgmr.msra.gmra.mrb[0].mxu1 %vm651_vm8, %v941_v12  ;;  %1979 = vmatmul.mubr.msk.bf16.vlgmr.msra.gmra.mrb[0].mxu0 %vm651_vm8, %v847_v6 }
  0x59   : > { %1937 = vmatpush3.bf16.msra.mxu1 %v2109_v63  ;;  %1987 = vmatpush3.bf16.msra.mxu0 %v2110_v22 }
  0x5a   : > { %1932 = vmatprep.mubr.msk.bf16.mxu1 %vm651_vm8, %v942_v23  ;;  %1982 = vmatprep.mubr.msk.bf16.mxu0 %vm651_vm8, %v848_v10 }
  0x60   : > { %1933 = vmatmul.mubr.msk.bf16.gmra.mrb[4].mxu1 %vm651_vm8, %v943_v35  ;;  %1983 = vmatmul.mubr.msk.bf16.gmra.mrb[4].mxu0 %vm651_vm8, %v1411_v31 }
  0x61   : > { %1938 = vmatprep.mubr.msk.bf16.mxu1 %vm651_vm8, %v1041_v55  ;;  %1988 = vmatprep.mubr.msk.bf16.mxu0 %vm651_vm8, %v1517_v52  ;;  %v1044_v55 = vpack.c.bf16 %v1039_v54, %v2350_v51 }
  0x68   : > { %1939 = vmatmul.mubr.msk.bf16.vlgmr.msra.gmra.mrb[0].mxu1 %vm651_vm8, %v1042_v28  ;;  %1989 = vmatmul.mubr.msk.bf16.vlgmr.msra.gmra.mrb[0].mxu0 %vm651_vm8, %v1518_v60 }
  0x69   : > { %1942 = vmatprep.mubr.msk.bf16.mxu1 %vm651_vm8, %v1043_v7  ;;  %1992 = vmatprep.mubr.msk.bf16.mxu0 %vm651_vm8, %v1519_v33 }
  0x70   : > { %1943 = vmatmul.mubr.msk.bf16.gmra.mrb[4].mxu1 %vm651_vm8, %v1044_v55  ;;  %1993 = vmatmul.mubr.msk.bf16.gmra.mrb[4].mxu0 %vm651_vm8, %v1520_v34 }
 0x13b   : > { %v1940_v32 = vpop.f32.mrb[0].mxu1  ;;  %v1990_v36 = vpop.f32.mrb[0].mxu0 }
 0x13c   : > { %v1996_v37 = vadd.f32 %v1940_v32, %v1832_v49  ;;  %v1097_v38 = vpop.f32.mrb[1].mxu1  ;;  %v1575_v39 = vpop.f32.mrb[1].mxu0 }
 0x13d   : > { %v1998_v40 = vadd.f32 %v1832_v49, %v1097_v38  ;;  %v1941_v41 = vpop.f32.mrb[2].mxu1  ;;  %v1991_v5 = vpop.f32.mrb[2].mxu0 }
 0x13e   : > { %v1997_v42 = vadd.f32 %v1996_v37, %v1990_v36  ;;  %v2000_v43 = vadd.f32 %v1941_v41, %v1832_v49  ;;  %v1100_v44 = vpop.f32.mrb[3].mxu1  ;;  %v1578_v45 = vpop.f32.mrb[3].mxu0 }
 0x13f   : > { %v1999_v48 = vadd.f32 %v1998_v40, %v1575_v39  ;;  %v2002_v50 = vadd.f32 %v1832_v49, %v1100_v44 }
 0x140   : > { %v1616_v51 = vmul.f32 0.70710677, %v1997_v42  ;;  %v2001_v53 = vadd.f32 %v2000_v43, %v1991_v5 }
 0x141   : > { %v1614_v57 = vmul.f32 0.70710677, %v1999_v48  ;;  %v2003_v58 = vadd.f32 %v2002_v50, %v1578_v45 }
 0x142   : > { %1625 = vst.msk [vmem:[%s2461_s13 + $0x10] sm:$0xff] %vm1622_vm12, %v1616_v51  ;;  %v1617_v59 = vmul.f32 0.70710677, %v2001_v53 }
 0x143   : > { %1623 = vst.msk [vmem:[%s2461_s13] sm:$0xff] %vm1622_vm12, %v1614_v57  ;;  %v1615_v61 = vmul.f32 0.70710677, %v2003_v58  ;;  %v1944_v62 = vpop.f32.mrb[4].mxu1  ;;  %v1994_v0 = vpop.f32.mrb[4].mxu0 }
 0x144   : > { %1626 = vst.msk [vmem:[%s2461_s13 + $0x18] sm:$0xff] %vm1622_vm12, %v1617_v59  ;;  %v2004_v1 = vadd.f32 %v1944_v62, %v1832_v49  ;;  %v1113_v2 = vpop.f32.mrb[5].mxu1  ;;  %v1591_v3 = vpop.f32.mrb[5].mxu0 }
 0x145   : > { %1624 = vst.msk [vmem:[%s2461_s13 + $0x8] sm:$0xff] %vm1622_vm12, %v1615_v61  ;;  %v2006_v8 = vadd.f32 %v1832_v49, %v1113_v2  ;;  %v1945_v4 = vpop.f32.mrb[6].mxu1  ;;  %v1995_v14 = vpop.f32.mrb[6].mxu0 }
 0x146   : > { %v2005_v15 = vadd.f32 %v2004_v1, %v1994_v0  ;;  %v2008_v16 = vadd.f32 %v1945_v4, %v1832_v49  ;;  %v1116_v17 = vpop.f32.mrb[7].mxu1  ;;  %v1594_v13 = vpop.f32.mrb[7].mxu0 }
 0x147   : > { %v2007_v19 = vadd.f32 %v2006_v8, %v1591_v3  ;;  %v2010_v20 = vadd.f32 %v1832_v49, %v1116_v17 }
 0x148   : > { %v1620_v56 = vmul.f32 0.70710677, %v2005_v15  ;;  %v2009_v18 = vadd.f32 %v2008_v16, %v1995_v14 }
 0x149   : > { %v1618_v21 = vmul.f32 0.70710677, %v2007_v19  ;;  %v2011_v6 = vadd.f32 %v2010_v20, %v1594_v13 }
 0x14a   : > { %1629 = vst.msk [vmem:[%s2461_s13 + $0x30] sm:$0xff] %vm1622_vm12, %v1620_v56  ;;  %v1621_v63 = vmul.f32 0.70710677, %v2009_v18 }
 0x14b   : > { %1627 = vst.msk [vmem:[%s2461_s13 + $0x20] sm:$0xff] %vm1622_vm12, %v1618_v21  ;;  %v1619_v22 = vmul.f32 0.70710677, %v2011_v6 }
 0x14c   : > { %1630 = vst.msk [vmem:[%s2461_s13 + $0x38] sm:$0xff] %vm1622_vm12, %v1621_v63 }
 0x14d   : > { %1628 = vst.msk [vmem:[%s2461_s13 + $0x28] sm:$0xff] %vm1622_vm12, %v1619_v22 }
 0x14e PF: > { %s17_s2 = sadd.s32 1, %s2133_s2   ;;  %s2496_s24 = smov %s2129_s1 }
 0x14f   : > { %p14_p5 = scmp.ge.s32.totalorder %s17_s2, 4   ;;  %s2497_s1 = smov %s2499_s25 }
 0x151   :  { %16 = sbr.rel (!%p14_p5) target bundleno = 2 (0x2), region = 87 }

// kernel: style_encoder_forward.6
= control target key start
LH: loop header
LB: loop body
LE: loop exit
PB: predicated region body
PF: predicated region fallthrough
CT: control target
= control target key end

     0   :  { %s2625_s18 = smov 0   ;;  %s2627_s19 = smov 0   ;;  %s3230_s0 = inlined_call_operand.vmem [shape: f32[2,16,16,3], index: 0, kind: input, shape index: {}, may-alias: {0,1,2}]   ;;  %s3231_s1 = inlined_call_operand.vmem [shape: f32[2,16,16,3], index: 1, kind: input, shape index: {}, may-alias: {0,1,2}]   ;;  %s3232_s2 = inlined_call_operand.vmem [shape: f32[2,16,16,3], index: 2, kind: input, shape index: {}, may-alias: {0,1,2}]   ;;  %s3233_s3 = inlined_call_operand.vmem [shape: bf16[3,3,3,16], index: 3, kind: input, shape index: {}]   ;;  %s3234_s4 = inlined_call_operand.vmem [shape: f32[1,16], index: 4, kind: input, shape index: {}]   ;;  %s3235_s5 = inlined_call_operand.vmem [shape: f32[2,16,16,16], index: 5, kind: output, shape index: {}]  }
   0x1   :  { %s2629_s20 = smov 0   ;;  %s2631_s21 = smov 0  }
   0x2   :  { %s2633_s22 = smov 0  }
   0x3 LB: > { %s24_s23 = sadd.s32 1, %s2584_s20  ;;  %s27_s24 = sadd.s32 1, %s2588_s21  ;;  %s2592_s22 = sphi %s2633_s22, %s15_s22   ;;  %s2588_s21 = sphi %s2631_s21, %s3240_s21   ;;  %s2584_s20 = sphi %s2629_s20, %s3239_s20   ;;  %s2580_s19 = sphi %s2627_s19, %s3238_s19   ;;  %s2576_s18 = sphi %s2625_s18, %s3237_s18  }
   0x4   : > { %p25_p0 = scmp.ge.s32.totalorder %s24_s23, 2  ;;  %p2025_p1 = scmp.ge.s32.totalorder %s2592_s22, 1 }
   0x5   : > { %p273_p2 = scmp.lt.s32.totalorder %s2592_s22, 5 }
   0x6   : > { %s3242_s23 = smov (%p25_p0, %s24_s23), 0  ;;  %s3244_s24 = smov (!%p25_p0, %s27_s24), %s2588_s21 }
   0x7   : > { %p274_p3 = pnand %p2025_p1, %p273_p2  ;;  %p29_p4 = scmp.ge.s32.totalorder %s3244_s24, 2 }
   0x8   : > { %vm446_vm0 = vcmask (!%p274_p3), 1040384   ;;  %v531_v0 = vld [vmem:[%s3233_s3 + $0x8] sm:$0x3] (!%p274_p3)  ;;  %vm650_vm1 = vcmask (!%p274_p3), 1041408   ;;  %s2661_s27 = sshll.u32 (!%p274_p3), %s2576_s18, 3  ;;  %v2594_v1 = vmov (!%p274_p3), 65535  }
   0x9   : > { %s3246_s24 = smov (%p29_p4, %s3244_s24), 0  ;;  %277 = sbr.rel (%p274_p3) target bundleno = 398 (0x18e), region = 40 }
   0xa   : > { %v651_v2 = vsel (!%p274_p3), %vm446_vm0, 4294967295, %v2594_v1  ;;  %v528_v3 = vld [vmem:[%s3233_s3 + $0x2] sm:$0x3] (!%p274_p3)  ;;  %p338_p5 = scmp.lt.s32.totalorder (!%p274_p3), %s2580_s19, 1  ;;  %p340_p6 = scmp.lt.s32.totalorder (!%p274_p3), %s2661_s27, 15  ;;  %vm560_vm2 = vcmask (!%p274_p3), 1046528  }
   0xb   : > { %v2668_v4 = vsel (!%p274_p3), %vm650_vm1, %v651_v2, 0  ;;  %s2671_s30 = sadd.s32 (!%p274_p3), 4294967295, %s2661_s27  ;;  %v527_v5 = vld [vmem:[%s3233_s3] sm:$0x3] (!%p274_p3)  ;;  %v532_v9 = vld [vmem:[%s3233_s3 + $0xa] sm:$0x3] (!%p274_p3) }
   0xc   : > { %v2677_v6 = vand.u32 (!%p274_p3), %v2668_v4, %v531_v0  ;;  %v654_v7 = vand.u32 (!%p274_p3), %v2668_v4, %v528_v3  ;;  %v2681_v8 = vand.u32 (!%p274_p3), %v2668_v4, %v527_v5  ;;  %v2688_v10 = vand.u32 (!%p274_p3), %v2668_v4, %v532_v9  ;;  %p350_p7 = scmp.gt.s32.totalorder (!%p274_p3), %s2671_s30, 0  ;;  %p410_p8 = scmp.eq.s32.totalorder (!%p274_p3), %s2576_s18, 0  ;;  %v533_v19 = vld [vmem:[%s3233_s3 + $0xc] sm:$0x3] (!%p274_p3) }
   0xd   : > { %p2032_p9 = scmp.lt.s32.totalorder (!%p274_p3), %s2671_s30, 15  ;;  %s366_s26 = sadd.s32 (!%p274_p3), 8, %s2661_s27  ;;  %vm625_vm3 = vcmask (!%p274_p3), 23552   ;;  %v2740_v29 = vand.u32 (!%p274_p3), %v2668_v4, %v533_v19  ;;  %vm877_vm4 = vcmask (!%p274_p3), 1045504   ;;  %vm1857_vm5 = vcmask (!%p274_p3), 130048  }
   0xe   : > { %2281 = vmatprep.subr.bf16.mxu0 (!%p274_p3), %v2677_v6  ;;  %2209 = vmatprep.subr.bf16.mxu1 (!%p274_p3), %v654_v7  ;;  %p2751_p10 = scmp.lt.s32.totalorder (!%p274_p3), %s366_s26, 15  ;;  %p418_p11 = scmp.eq.s32.totalorder (!%p274_p3), %s2576_s18, 1 }
   0xf   : > { %2282 = vmatpush3.bf16.msra.mxu0 (!%p274_p3), %v2677_v6  ;;  %2210 = vmatpush3.bf16.msra.mxu1 (!%p274_p3), %v654_v7 }
  0x10   : > { %s3248_s19 = smov (!%p338_p5, %s2580_s19), 1  ;;  %2227 = vmatprep.subr.bf16.mxu1 %v2681_v8  ;;  %2299 = vmatprep.subr.bf16.mxu0 %v2688_v10  ;;  %s3250_s30 = smov (!%p350_p7, %s2671_s30), 0 }
  0x11   : > { %s341_s10 = scalar_select %p340_p6, %s2661_s27, 15 }
  0x12   : > { %s2691_s11 = sshll.u32 %s3248_s19, 5  ;;  %s3252_s30 = smov (!%p2032_p9, %s3250_s30), 15 }
  0x13   : > { %s2027_s12 = sshll.u32 %s341_s10, 1  ;;  %s2037_s28 = sshll.u32 %s3252_s30, 1 }
  0x14   : > { %s2696_s13 = sadd.s32 %s2691_s11, %s2027_s12  ;;  %s358_s29 = sadd.s32 %s2037_s28, %s2691_s11 }
  0x15   : > { %s2029_s14 = sshll.u32 %s2696_s13, 3  ;;  %s2039_s30 = sshll.u32 %s358_s29, 3 }
  0x16   : > { %s2708_s17 = scalar_lea.vmem %s3230_s0, %s2029_s14  ;;  %s360_s9 = scalar_lea.vmem %s3231_s1, %s2039_s30 }
  0x17   : > { %v394_v11 = vld [vmem:[%s2708_s17] sm:$0xff]  ;;  %v395_v12 = vld [vmem:[%s2708_s17 + $0x8] sm:$0xff]  ;;  %v396_v13 = vld [vmem:[%s2708_s17 + $0x10] sm:$0xff]  ;;  %s2543_s10 = scalar_select %p410_p8, 0, 255 }
  0x18   : > { %v450_v14 = vrot.slane %v394_v11, 7  ;;  %v451_v15 = vrot.slane %v395_v12, 7  ;;  %v397_v16 = vld [vmem:[%s2708_s17 + $0x18] sm:$0xff]  ;;  %v453_v17 = vrot.slane %v396_v13, 7  ;;  %v398_v28 = vld [vmem:[%s2708_s17 + $0x20] sm:$0xff]  ;;  %v399_v34 = vld [vmem:[%s2708_s17 + $0x28] sm:$0xff] }
  0x19   : > { %v454_v18 = vrot.slane %v397_v16, 7  ;;  %v400_v39 = vld [vmem:[%s2708_s17 + $0x30] sm:$0xff]  ;;  %v401_v40 = vld [vmem:[%s2708_s17 + $0x38] sm:$0xff]  ;;  %v456_v43 = vrot.slane %v398_v28, 7  ;;  %v457_v46 = vrot.slane %v399_v34, 7  ;;  %v2544_v48 = vld [vmem:[%s360_s9] sm:%s2543_s10] }
  0x1a   : > { %v2719_v20 = vsel %vm446_vm0, %v450_v14, %v451_v15  ;;  %v2722_v21 = vsel %vm446_vm0, 0.0, %v450_v14  ;;  %v2725_v22 = vsel %vm446_vm0, %v451_v15, 0.0  ;;  %v2728_v23 = vsel %vm446_vm0, 0.0, %v453_v17  ;;  %s3254_s26 = smov (!%p2751_p10, %s366_s26), 15  ;;  %v2547_v52 = vld [vmem:[%s360_s9 + $0x8] sm:%s2543_s10] }
  0x1b   : > { %v566_v24 = vrot.slane %v2722_v21, 1  ;;  %v567_v25 = vrot.slane %v2719_v20, 1  ;;  %v569_v26 = vrot.slane %v2725_v22, 1  ;;  %v2735_v27 = vsel %vm446_vm0, %v453_v17, %v454_v18  ;;  %s3256_s26 = smov (!%p2751_p10, %s3254_s26), 15  ;;  %v529_v16 = vld [vmem:[%s3233_s3 + $0x4] sm:$0x3] }
  0x1c   : > { %v2745_v32 = vsel %vm446_vm0, %v454_v18, 0.0  ;;  %v571_v33 = vrot.slane %v2728_v23, 1  ;;  %v883_v36 = vrot.slane %v2722_v21, 2  ;;  %v572_v37 = vrot.slane %v2735_v27, 1  ;;  %s2818_s27 = sshll.u32 %s3256_s26, 1 }
  0x1d   : > { %v568_v30 = vsel %vm560_vm2, %v566_v24, %v567_v25  ;;  %v570_v31 = vsel %vm560_vm2, %v567_v25, %v569_v26  ;;  %v574_v38 = vrot.slane %v2745_v32, 1  ;;  %v884_v41 = vrot.slane %v2719_v20, 2  ;;  %s375_s12 = sadd.s32 %s2818_s27, %s2691_s11  ;;  %v402_v24 = vld [vmem:[%s2708_s17 + $0x40] sm:$0xff]  ;;  %v403_v25 = vld [vmem:[%s2708_s17 + $0x48] sm:$0xff] }
  0x1e   : > { %v2755_v35 = vpack.c.bf16 %v570_v31, %v568_v30  ;;  %v886_v42 = vrot.slane %v2725_v22, 2  ;;  %v573_v44 = vsel %vm560_vm2, %v571_v33, %v572_v37  ;;  %v2776_v49 = vsel %vm446_vm0, 0.0, %v456_v43  ;;  %s2046_s26 = sshll.u32 %s375_s12, 3  ;;  %s3165_s12 = scalar_lea.vmem %s3235_s5, %s2029_s14 }
  0x1f   : > { %v575_v45 = vsel %vm560_vm2, %v572_v37, %v574_v38  ;;  %v459_v50 = vrot.slane %v400_v39, 7  ;;  %v460_v51 = vrot.slane %v401_v40, 7  ;;  %v447_v53 = vrot.slane %v2544_v48, 7  ;;  %s377_s29 = scalar_lea.vmem %s3232_s2, %s2046_s26 }
  0x20   : > { %2283 = vmatprep.mubr.msk.bf16.mxu0 %vm625_vm3, %v2755_v35  ;;  %v2773_v47 = vpack.c.bf16 %v575_v45, %v573_v44  ;;  %v2783_v54 = vsel %vm446_vm0, %v456_v43, %v457_v46  ;;  %v2786_v55 = vsel %vm446_vm0, %v457_v46, 0.0  ;;  %v576_v56 = vrot.slane %v2776_v49, 1  ;;  %v404_v46 = vld [vmem:[%s2708_s17 + $0x50] sm:$0xff]  ;;  %s2549_s30 = scalar_select %p418_p11, 0, 255 }
  0x21   : > { %v448_v57 = vrot.slane %v2547_v52, 7  ;;  %v577_v58 = vrot.slane %v2783_v54, 1  ;;  %v579_v59 = vrot.slane %v2786_v55, 1  ;;  %v2794_v60 = vsel %vm446_vm0, %v459_v50, %v460_v51 }
  0x22   : > { %2284 = vmatmul.mubr.msk.bf16.vlgmr.msra.gmra.mrb[0].mxu0 %vm625_vm3, %v2773_v47  ;;  %v888_v61 = vrot.slane %v2728_v23, 2  ;;  %v2800_v62 = vsel %vm446_vm0, 0.0, %v447_v53  ;;  %v2804_v63 = vsel %vm446_vm0, 0.0, %v459_v50  ;;  %v2807_v0 = vsel %vm446_vm0, %v460_v51, 0.0 }
  0x23   : > { %2300 = vmatpush3.bf16.msra.mxu0 %v2688_v10  ;;  %v2810_v1 = vsel %vm446_vm0, %v447_v53, %v448_v57  ;;  %v2813_v2 = vsel %vm446_vm0, %v448_v57, 0.0  ;;  %v561_v3 = vrot.slane %v2800_v62, 1  ;;  %v582_v5 = vrot.slane %v2794_v60, 1  ;;  %v406_v57 = vld [vmem:[%s2708_s17 + $0x60] sm:$0xff] }
  0x24   : > { %2317 = vmatprep.subr.bf16.mxu0 %v2740_v29  ;;  %v889_v7 = vrot.slane %v2735_v27, 2  ;;  %v891_v9 = vrot.slane %v2745_v32, 2  ;;  %v562_v10 = vrot.slane %v2810_v1, 1  ;;  %v564_v11 = vrot.slane %v2813_v2, 1 }
  0x25   : > { %v578_v12 = vsel %vm560_vm2, %v576_v56, %v577_v58  ;;  %v580_v13 = vsel %vm560_vm2, %v577_v58, %v579_v59  ;;  %v581_v14 = vrot.slane %v2804_v63, 1  ;;  %v584_v15 = vrot.slane %v2807_v0, 1  ;;  %v405_v56 = vld [vmem:[%s2708_s17 + $0x58] sm:$0xff] }
  0x26   : > { %v563_v17 = vsel %vm560_vm2, %v561_v3, %v562_v10  ;;  %v565_v18 = vsel %vm560_vm2, %v562_v10, %v564_v11  ;;  %v2835_v19 = vpack.c.bf16 %v580_v13, %v578_v12  ;;  %v885_v22 = vsel %vm877_vm4, %v883_v36, %v884_v41 }
  0x27   : > { %v617_v26 = vpack.c.bf16 %v565_v18, %v563_v17  ;;  %v583_v28 = vsel %vm560_vm2, %v581_v14, %v582_v5  ;;  %v585_v30 = vsel %vm560_vm2, %v582_v5, %v584_v15  ;;  %v887_v31 = vsel %vm877_vm4, %v884_v41, %v886_v42  ;;  %v534_v41 = vld [vmem:[%s3233_s3 + $0xe] sm:$0x3] }
  0x28   : > { %2287 = vmatprep.mubr.msk.bf16.mxu0 %vm625_vm3, %v2835_v19  ;;  %v2845_v32 = vpack.c.bf16 %v585_v30, %v583_v28  ;;  %v2847_v33 = vpack.c.bf16 %v887_v31, %v885_v22  ;;  %v890_v34 = vsel %vm877_vm4, %v888_v61, %v889_v7  ;;  %v2851_v36 = vand.u32 %v2668_v4, %v529_v16 }
  0x29   : > { %2211 = vmatprep.mubr.msk.bf16.mxu1 %vm625_vm3, %v617_v26  ;;  %v892_v37 = vsel %vm877_vm4, %v889_v7, %v891_v9  ;;  %v462_v38 = vrot.slane %v402_v24, 7  ;;  %v463_v39 = vrot.slane %v403_v25, 7  ;;  %v893_v40 = vrot.slane %v2776_v49, 2 }
  0x2a   : > { %2212 = vmatmul.mubr.msk.bf16.vlgmr.msra.gmra.mrb[0].mxu1 %vm625_vm3, %v2755_v35  ;;  %2288 = vmatmul.mubr.msk.bf16.gmra.mrb[4].mxu0 %vm625_vm3, %v2845_v32  ;;  %v894_v42 = vrot.slane %v2783_v54, 2  ;;  %v896_v43 = vrot.slane %v2786_v55, 2  ;;  %v898_v44 = vrot.slane %v2804_v63, 2  ;;  %v899_v45 = vrot.slane %v2794_v60, 2 }
  0x2b   : > { %2228 = vmatpush3.bf16.msra.mxu1 %v2681_v8  ;;  %2215 = vmatprep.mubr.msk.bf16.mxu1 %vm625_vm3, %v2773_v47  ;;  %v2872_v35 = vsel %vm446_vm0, %v462_v38, %v463_v39  ;;  %v2875_v48 = vsel %vm446_vm0, 0.0, %v462_v38  ;;  %v522_v50 = vsel %vm446_vm0, %v463_v39, 0.0  ;;  %v901_v51 = vrot.slane %v2807_v0, 2  ;;  %v407_v0 = vld [vmem:[%s2708_s17 + $0x68] sm:$0xff] }
  0x2c   : > { %2301 = vmatprep.mubr.msk.bf16.mxu0 %vm625_vm3, %v2847_v33  ;;  %v586_v8 = vrot.slane %v2875_v48, 1  ;;  %v587_v52 = vrot.slane %v2872_v35, 1  ;;  %v589_v53 = vrot.slane %v522_v50, 1  ;;  %v895_v55 = vsel %vm877_vm4, %v893_v40, %v894_v42  ;;  %2245 = vmatprep.subr.bf16.mxu1 %v2851_v36 }
  0x2d   : > { %v2888_v58 = vpack.c.bf16 %v892_v37, %v890_v34  ;;  %v897_v59 = vsel %vm877_vm4, %v894_v42, %v896_v43  ;;  %v465_v61 = vrot.slane %v404_v46, 7  ;;  %v2893_v3 = vand.u32 %v2668_v4, %v534_v41  ;;  %v408_v43 = vld [vmem:[%s2708_s17 + $0x70] sm:$0xff] }
  0x2e   : > { %v588_v5 = vsel %vm560_vm2, %v586_v8, %v587_v52  ;;  %v590_v7 = vsel %vm560_vm2, %v587_v52, %v589_v53  ;;  %v900_v9 = vsel %vm877_vm4, %v898_v44, %v899_v45  ;;  %v902_v10 = vsel %vm877_vm4, %v899_v45, %v901_v51 }
  0x2f   : > { %v2899_v11 = vpack.c.bf16 %v897_v59, %v895_v55  ;;  %v466_v12 = vrot.slane %v405_v56, 7  ;;  %v2902_v13 = vsel %vm446_vm0, 0.0, %v465_v61  ;;  %v468_v14 = vrot.slane %v406_v57, 7 }
  0x30   : > { %v591_v15 = vrot.slane %v2902_v13, 1  ;;  %v469_v16 = vrot.slane %v407_v0, 7  ;;  %v903_v17 = vrot.slane %v2875_v48, 2  ;;  %v904_v18 = vrot.slane %v2872_v35, 2 }
  0x31   : > { %v2908_v22 = vsel %vm446_vm0, %v465_v61, %v466_v12  ;;  %v523_v24 = vsel %vm446_vm0, %v466_v12, 0.0  ;;  %v2912_v25 = vsel %vm446_vm0, 0.0, %v468_v14  ;;  %v906_v26 = vrot.slane %v522_v50, 2  ;;  %v409_v50 = vld [vmem:[%s2708_s17 + $0x78] sm:$0xff] }
  0x32   : > { %2216 = vmatmul.mubr.msk.bf16.gmra.mrb[4].mxu1 %vm625_vm3, %v2835_v19  ;;  %2302 = vmatmul.mubr.msk.bf16.vlgmr.msra.gmra.mrb[0].mxu0 %vm625_vm3, %v2888_v58  ;;  %v592_v28 = vrot.slane %v2908_v22, 1  ;;  %v594_v30 = vrot.slane %v523_v24, 1  ;;  %v2920_v31 = vsel %vm446_vm0, %v468_v14, %v469_v16  ;;  %v524_v34 = vsel %vm446_vm0, %v469_v16, 0.0 }
  0x33   : > { %2219 = vmatprep.mubr.msk.bf16.mxu1 %vm625_vm3, %v2845_v32  ;;  %v2925_v37 = vpack.c.bf16 %v590_v7, %v588_v5  ;;  %2318 = vmatpush3.bf16.msra.mxu0 %v2740_v29  ;;  %v2928_v38 = vpack.c.bf16 %v902_v10, %v900_v9  ;;  %v905_v39 = vsel %vm877_vm4, %v903_v17, %v904_v18  ;;  %v596_v29 = vrot.slane %v2912_v25, 1 }
  0x34   : > { %2305 = vmatprep.mubr.msk.bf16.mxu0 %vm625_vm3, %v2899_v11  ;;  %v593_v40 = vsel %vm560_vm2, %v591_v15, %v592_v28  ;;  %v595_v41 = vsel %vm560_vm2, %v592_v28, %v594_v30  ;;  %v907_v42 = vsel %vm877_vm4, %v904_v18, %v906_v26  ;;  %2335 = vmatprep.subr.bf16.mxu0 %v2893_v3  ;;  %v597_v44 = vrot.slane %v2920_v31, 1  ;;  %v2550_v15 = vld [vmem:[%s377_s29] sm:%s2549_s30]  ;;  %v2553_v18 = vld [vmem:[%s377_s29 + $0x8] sm:%s2549_s30] }
  0x35   : > { %v599_v45 = vrot.slane %v524_v34, 1  ;;  %v908_v46 = vrot.slane %v2902_v13, 2  ;;  %v2945_v51 = vpack.c.bf16 %v595_v41, %v593_v40  ;;  %v2947_v8 = vpack.c.bf16 %v907_v42, %v905_v39 }
  0x36   : > { %v909_v52 = vrot.slane %v2908_v22, 2  ;;  %v911_v53 = vrot.slane %v523_v24, 2  ;;  %v913_v55 = vrot.slane %v2912_v25, 2  ;;  %v914_v56 = vrot.slane %v2920_v31, 2 }
  0x37   : > { %v916_v57 = vrot.slane %v524_v34, 2  ;;  %v471_v59 = vrot.slane %v408_v43, 7  ;;  %v472_v61 = vrot.slane %v409_v50, 7  ;;  %v598_v0 = vsel %vm560_vm2, %v596_v29, %v597_v44 }
  0x38   : > { %v600_v5 = vsel %vm560_vm2, %v597_v44, %v599_v45  ;;  %v910_v7 = vsel %vm877_vm4, %v908_v46, %v909_v52  ;;  %v912_v9 = vsel %vm877_vm4, %v909_v52, %v911_v53  ;;  %v915_v10 = vsel %vm877_vm4, %v913_v55, %v914_v56 }
  0x39   : > { %v917_v12 = vsel %vm877_vm4, %v914_v56, %v916_v57  ;;  %v2972_v14 = vsel %vm446_vm0, 0.0, %v471_v59  ;;  %v2975_v16 = vsel %vm446_vm0, %v471_v59, %v472_v61  ;;  %v2978_v17 = vsel %vm446_vm0, %v472_v61, 0.0 }
  0x3a   : > { %2220 = vmatmul.mubr.msk.bf16.gmra.mrb[8].mxu1 %vm625_vm3, %v2925_v37  ;;  %2306 = vmatmul.mubr.msk.bf16.gmra.mrb[4].mxu0 %vm625_vm3, %v2928_v38  ;;  %v2980_v24 = vpack.c.bf16 %v600_v5, %v598_v0  ;;  %v2982_v26 = vpack.c.bf16 %v912_v9, %v910_v7  ;;  %v536_v28 = vpack.c.bf16 %v2810_v1, %v2800_v62  ;;  %v1331_v34 = vrot.slane %v2972_v14, 2  ;;  %v530_v5 = vld [vmem:[%s3233_s3 + $0x6] sm:$0x3] }
  0x3b   : > { %2223 = vmatprep.mubr.msk.bf16.mxu1 %vm625_vm3, %v2945_v51  ;;  %2309 = vmatprep.mubr.msk.bf16.mxu0 %vm625_vm3, %v2947_v8  ;;  %v2986_v30 = vpack.c.bf16 %v917_v12, %v915_v10  ;;  %v474_v39 = vrot.slane %v2550_v15, 7  ;;  %v1332_v40 = vrot.slane %v2975_v16, 2  ;;  %v1334_v41 = vrot.slane %v2978_v17, 2 }
  0x3c   : > { %v475_v42 = vrot.slane %v2553_v18, 7  ;;  %v3019_v7 = vpack.c.bf16 %v2719_v20, %v2722_v21  ;;  %v3031_v15 = vpack.c.bf16 %v2735_v27, %v2728_v23  ;;  %v1087_v20 = vand.u32 %v2668_v4, %v530_v5  ;;  %v535_v21 = vld [vmem:[%s3233_s3 + $0x10] sm:$0x3] }
  0x3d   : > { %v2992_v43 = vsel %vm446_vm0, 0.0, %v474_v39  ;;  %v1333_v53 = vsel %vm877_vm4, %v1331_v34, %v1332_v40  ;;  %v1335_v55 = vsel %vm877_vm4, %v1332_v40, %v1334_v41  ;;  %v539_v23 = vpack.c.bf16 %v2783_v54, %v2776_v49 }
  0x3e   : > { %v476_v29 = vsel %vm446_vm0, %v474_v39, %v475_v42  ;;  %v1580_v44 = vrot.slane %v2992_v43, 1  ;;  %v1707_v45 = vrot.slane %v2992_v43, 2  ;;  %v526_v56 = vsel %vm446_vm0, %v475_v42, 0.0 }
  0x3f   : > { %v1458_v46 = vpack.c.bf16 %v476_v29, %v2992_v43  ;;  %v1581_v50 = vrot.slane %v476_v29, 1  ;;  %v1708_v52 = vrot.slane %v476_v29, 2  ;;  %v1583_v59 = vrot.slane %v526_v56, 1 }
  0x40   : > { %v1710_v0 = vrot.slane %v526_v56, 2  ;;  %v3021_v9 = vpack.c.bf16 %v1335_v55, %v1333_v53  ;;  %v540_v27 = vpack.c.bf16 %v2794_v60, %v2804_v63  ;;  %v1719_v34 = vand.u32 %v2668_v4, %v535_v21 }
  0x41   : > { %v3009_v57 = vsel %vm560_vm2, %v1580_v44, %v1581_v50  ;;  %v3012_v61 = vsel %vm877_vm4, %v1707_v45, %v1708_v52  ;;  %v3024_v10 = vsel %vm560_vm2, %v1581_v50, %v1583_v59  ;;  %v542_v49 = vpack.c.bf16 %v2908_v22, %v2902_v13 }
  0x42   : > { %2224 = vmatmul.mubr.msk.bf16.gmra.mrb[12].mxu1 %vm625_vm3, %v2980_v24  ;;  %2310 = vmatmul.mubr.msk.bf16.gmra.mrb[8].mxu0 %vm625_vm3, %v2982_v26  ;;  %v3027_v12 = vsel %vm877_vm4, %v1708_v52, %v1710_v0  ;;  %v1587_v18 = vpack.c.bf16 %v3024_v10, %v3009_v57  ;;  %v878_v54 = vrot.slane %v2800_v62, 2  ;;  %v879_v4 = vrot.slane %v2810_v1, 2 }
  0x43   : > { %2229 = vmatprep.mubr.msk.bf16.mxu1 %vm625_vm3, %v536_v28  ;;  %2313 = vmatprep.mubr.msk.bf16.mxu0 %vm625_vm3, %v2986_v30  ;;  %v1714_v28 = vpack.c.bf16 %v3027_v12, %v3012_v61  ;;  %v881_v60 = vrot.slane %v2813_v2, 2  ;;  %v1082_v1 = vpack.c.bf16 %v2975_v16, %v2972_v14  ;;  %v1204_v2 = vrot.slane %v2972_v14, 1 }
  0x44   : > { %v880_v63 = vsel %vm877_vm4, %v878_v54, %v879_v4 }
  0x4a   : > { %2230 = vmatmul.mubr.msk.bf16.vlgmr.msra.gmra.mrb[0].mxu1 %vm625_vm3, %v3019_v7  ;;  %2314 = vmatmul.mubr.msk.bf16.gmra.mrb[12].mxu0 %vm625_vm3, %v3021_v9 }
  0x4b   : > { %2246 = vmatpush3.bf16.msra.mxu1 %v2851_v36  ;;  %2233 = vmatprep.mubr.msk.bf16.mxu1 %vm625_vm3, %v3031_v15  ;;  %v541_v36 = vpack.c.bf16 %v2872_v35, %v2875_v48  ;;  %v882_v35 = vsel %vm877_vm4, %v879_v4, %v881_v60  ;;  %v543_v48 = vpack.c.bf16 %v2920_v31, %v2912_v25  ;;  %v3158_v31 = vld [vmem:[%s3234_s4] ss:$0 sm:$0xff] }
  0x4c   : > { %2319 = vmatprep.mubr.msk.bf16.mxu0 %vm625_vm3, %v3031_v15  ;;  %2263 = vmatprep.subr.bf16.mxu1 %v1087_v20  ;;  %v934_v62 = vpack.c.bf16 %v882_v35, %v880_v63 }
  0x52   : > { %2234 = vmatmul.mubr.msk.bf16.gmra.mrb[4].mxu1 %vm625_vm3, %v539_v23  ;;  %2320 = vmatmul.mubr.msk.bf16.vlgmr.msra.gmra.mrb[0].mxu0 %vm625_vm3, %v539_v23 }
  0x53   : > { %2237 = vmatprep.mubr.msk.bf16.mxu1 %vm625_vm3, %v540_v27  ;;  %2336 = vmatpush3.bf16.msra.mxu0 %v2893_v3 }
  0x54   : > { %2323 = vmatprep.mubr.msk.bf16.mxu0 %vm625_vm3, %v540_v27  ;;  %2353 = vmatprep.subr.bf16.mxu0 %v1719_v34 }
  0x5a   : > { %2238 = vmatmul.mubr.msk.bf16.gmra.mrb[8].mxu1 %vm625_vm3, %v541_v36  ;;  %2324 = vmatmul.mubr.msk.bf16.gmra.mrb[4].mxu0 %vm625_vm3, %v541_v36 }
  0x5b   : > { %2241 = vmatprep.mubr.msk.bf16.mxu1 %vm625_vm3, %v542_v49  ;;  %2327 = vmatprep.mubr.msk.bf16.mxu0 %vm625_vm3, %v542_v49 }
  0x62   : > { %2242 = vmatmul.mubr.msk.bf16.gmra.mrb[12].mxu1 %vm625_vm3, %v543_v48  ;;  %2328 = vmatmul.mubr.msk.bf16.gmra.mrb[8].mxu0 %vm625_vm3, %v543_v48 }
  0x63   : > { %2247 = vmatprep.mubr.msk.bf16.mxu1 %vm625_vm3, %v934_v62  ;;  %2331 = vmatprep.mubr.msk.bf16.mxu0 %vm625_vm3, %v1082_v1 }
  0x6a   : > { %2248 = vmatmul.mubr.msk.bf16.vlgmr.msra.gmra.mrb[0].mxu1 %vm625_vm3, %v2847_v33  ;;  %2332 = vmatmul.mubr.msk.bf16.gmra.mrb[12].mxu0 %vm625_vm3, %v1458_v46  ;;  %v1205_v33 = vrot.slane %v2975_v16, 1 }
  0x6b   : > { %2264 = vmatpush3.bf16.msra.mxu1 %v1087_v20  ;;  %2251 = vmatprep.mubr.msk.bf16.mxu1 %vm625_vm3, %v2888_v58 }
  0x6c   : > { %2337 = vmatprep.mubr.msk.bf16.mxu0 %vm625_vm3, %v2773_v47  ;;  %2371 = vmatprep.subr.bf16.mxu1 %v2677_v6  ;;  %v1207_v47 = vrot.slane %v2978_v17, 1 }
  0x72   : > { %2252 = vmatmul.mubr.msk.bf16.gmra.mrb[4].mxu1 %vm625_vm3, %v2899_v11  ;;  %2338 = vmatmul.mubr.msk.bf16.vlgmr.msra.gmra.mrb[0].mxu0 %vm625_vm3, %v2835_v19  ;;  %v1206_v19 = vsel %vm560_vm2, %v1204_v2, %v1205_v33 }
  0x73   : > { %2255 = vmatprep.mubr.msk.bf16.mxu1 %vm625_vm3, %v2928_v38  ;;  %2354 = vmatpush3.bf16.msra.mxu0 %v1719_v34 }
  0x74   : > { %2341 = vmatprep.mubr.msk.bf16.mxu0 %vm625_vm3, %v2845_v32  ;;  %v1208_v32 = vsel %vm560_vm2, %v1205_v33, %v1207_v47 }
  0x75   : > { %v1211_v3 = vpack.c.bf16 %v1208_v32, %v1206_v19 }
  0x7a   : > { %2256 = vmatmul.mubr.msk.bf16.gmra.mrb[8].mxu1 %vm625_vm3, %v2947_v8  ;;  %2342 = vmatmul.mubr.msk.bf16.gmra.mrb[4].mxu0 %vm625_vm3, %v2925_v37 }
  0x7b   : > { %2259 = vmatprep.mubr.msk.bf16.mxu1 %vm625_vm3, %v2982_v26  ;;  %2345 = vmatprep.mubr.msk.bf16.mxu0 %vm625_vm3, %v2945_v51 }
  0x82   : > { %2260 = vmatmul.mubr.msk.bf16.gmra.mrb[12].mxu1 %vm625_vm3, %v2986_v30  ;;  %2346 = vmatmul.mubr.msk.bf16.gmra.mrb[8].mxu0 %vm625_vm3, %v2980_v24 }
  0x83   : > { %2265 = vmatprep.mubr.msk.bf16.mxu1 %vm625_vm3, %v3019_v7  ;;  %2349 = vmatprep.mubr.msk.bf16.mxu0 %vm625_vm3, %v1211_v3 }
  0x8a   : > { %2266 = vmatmul.mubr.msk.bf16.vlgmr.msra.gmra.mrb[0].mxu1 %vm625_vm3, %v3031_v15  ;;  %2350 = vmatmul.mubr.msk.bf16.gmra.mrb[12].mxu0 %vm625_vm3, %v1587_v18 }
  0x8b   : > { %2372 = vmatpush3.bf16.msra.mxu1 %v2677_v6  ;;  %2269 = vmatprep.mubr.msk.bf16.mxu1 %vm625_vm3, %v539_v23 }
  0x8c   : > { %2355 = vmatprep.mubr.msk.bf16.mxu0 %vm625_vm3, %v2888_v58 }
  0x92   : > { %2270 = vmatmul.mubr.msk.bf16.gmra.mrb[4].mxu1 %vm625_vm3, %v540_v27  ;;  %2356 = vmatmul.mubr.msk.bf16.vlgmr.msra.gmra.mrb[0].mxu0 %vm625_vm3, %v2899_v11 }
  0x93   : > { %2273 = vmatprep.mubr.msk.bf16.mxu1 %vm625_vm3, %v541_v36  ;;  %2359 = vmatprep.mubr.msk.bf16.mxu0 %vm625_vm3, %v2928_v38 }
  0x9a   : > { %2274 = vmatmul.mubr.msk.bf16.gmra.mrb[8].mxu1 %vm625_vm3, %v542_v49  ;;  %2360 = vmatmul.mubr.msk.bf16.gmra.mrb[4].mxu0 %vm625_vm3, %v2947_v8 }
  0x9b   : > { %2277 = vmatprep.mubr.msk.bf16.mxu1 %vm625_vm3, %v543_v48  ;;  %2363 = vmatprep.mubr.msk.bf16.mxu0 %vm625_vm3, %v2982_v26 }
  0xa2   : > { %2278 = vmatmul.mubr.msk.bf16.gmra.mrb[12].mxu1 %vm625_vm3, %v1082_v1  ;;  %2364 = vmatmul.mubr.msk.bf16.gmra.mrb[8].mxu0 %vm625_vm3, %v2986_v30 }
  0xa3   : > { %2291 = vmatprep.mubr.msk.bf16.mxu1 %vm625_vm3, %v2925_v37  ;;  %2367 = vmatprep.mubr.msk.bf16.mxu0 %vm625_vm3, %v3021_v9 }
  0xaa   : > { %2292 = vmatmul.mubr.msk.bf16.vlgmr.msra.gmra.mrb[8].mxu1 %vm625_vm3, %v2945_v51  ;;  %2368 = vmatmul.mubr.msk.bf16.gmra.mrb[12].mxu0 %vm625_vm3, %v1714_v28 }
  0xab   : > { %2295 = vmatprep.mubr.msk.bf16.mxu1 %vm625_vm3, %v2980_v24 }
  0xb2   : > { %2296 = vmatmul.mubr.msk.bf16.gmra.mrb[12].mxu1 %vm625_vm3, %v1211_v3 }
 0x15d   : > { %v2267_v6 = vpop.f32.mrb[0].mxu1 }
 0x15e   : > { %v1123_v58 = vpop.f32.mrb[1].mxu1 }
 0x15f   : > { %v2268_v11 = vpop.f32.mrb[2].mxu1 }
 0x160   : > { %v1126_v13 = vpop.f32.mrb[3].mxu1 }
 0x165   : > { %v2271_v22 = vpop.f32.mrb[4].mxu1  ;;  %v2357_v25 = vpop.f32.mrb[0].mxu0 }
 0x166   : > { %v1139_v37 = vpop.f32.mrb[5].mxu1  ;;  %v2373_v38 = vadd.f32 %v2357_v25, %v2267_v6  ;;  %v1755_v51 = vpop.f32.mrb[1].mxu0 }
 0x167   : > { %v2272_v8 = vpop.f32.mrb[6].mxu1  ;;  %v2374_v14 = vadd.f32 %v1755_v51, %v1123_v58  ;;  %v2358_v16 = vpop.f32.mrb[2].mxu0 }
 0x168   : > { %v1142_v17 = vpop.f32.mrb[7].mxu1  ;;  %v1843_v24 = vadd.f32 %v2373_v38, %v3158_v31  ;;  %v2375_v26 = vadd.f32 %v2358_v16, %v2268_v11  ;;  %v1758_v30 = vpop.f32.mrb[3].mxu0 }
 0x169   : > { %v1841_v39 = vadd.f32 %v2374_v14, %v3158_v31  ;;  %v2376_v40 = vadd.f32 %v1758_v30, %v1126_v13 }
 0x16a   : > { %1860 = vst.msk [vmem:[%s3165_s12 + $0x10] sm:$0xff] %vm1857_vm5, %v1843_v24  ;;  %v1844_v41 = vadd.f32 %v2375_v26, %v3158_v31 }
 0x16b   : > { %1858 = vst.msk [vmem:[%s3165_s12] sm:$0xff] %vm1857_vm5, %v1841_v39  ;;  %v1842_v42 = vadd.f32 %v2376_v40, %v3158_v31 }
 0x16c   : > { %1861 = vst.msk [vmem:[%s3165_s12 + $0x18] sm:$0xff] %vm1857_vm5, %v1844_v41 }
 0x16d   : > { %1859 = vst.msk [vmem:[%s3165_s12 + $0x8] sm:$0xff] %vm1857_vm5, %v1842_v42  ;;  %v2361_v43 = vpop.f32.mrb[4].mxu0 }
 0x16e   : > { %v2377_v29 = vadd.f32 %v2361_v43, %v2271_v22  ;;  %v1771_v44 = vpop.f32.mrb[5].mxu0 }
 0x16f   : > { %v2378_v45 = vadd.f32 %v1771_v44, %v1139_v37  ;;  %v2362_v46 = vpop.f32.mrb[6].mxu0 }
 0x170   : > { %v1847_v50 = vadd.f32 %v2377_v29, %v3158_v31  ;;  %v2379_v52 = vadd.f32 %v2362_v46, %v2272_v8  ;;  %v1774_v53 = vpop.f32.mrb[7].mxu0 }
 0x171   : > { %v1845_v55 = vadd.f32 %v2378_v45, %v3158_v31  ;;  %v2380_v56 = vadd.f32 %v1774_v53, %v1142_v17 }
 0x172   : > { %1864 = vst.msk [vmem:[%s3165_s12 + $0x30] sm:$0xff] %vm1857_vm5, %v1847_v50  ;;  %v1848_v57 = vadd.f32 %v2379_v52, %v3158_v31 }
 0x173   : > { %1862 = vst.msk [vmem:[%s3165_s12 + $0x20] sm:$0xff] %vm1857_vm5, %v1845_v55  ;;  %v1846_v59 = vadd.f32 %v2380_v56, %v3158_v31 }
 0x174   : > { %1865 = vst.msk [vmem:[%s3165_s12 + $0x38] sm:$0xff] %vm1857_vm5, %v1848_v57 }
 0x175   : > { %1863 = vst.msk [vmem:[%s3165_s12 + $0x28] sm:$0xff] %vm1857_vm5, %v1846_v59  ;;  %v2365_v61 = vpop.f32.mrb[8].mxu0 }
 0x176   : > { %v1787_v0 = vpop.f32.mrb[9].mxu0 }
 0x177   : > { %v2366_v5 = vpop.f32.mrb[10].mxu0 }
 0x178   : > { %v1790_v7 = vpop.f32.mrb[11].mxu0 }
 0x17d   : > { %v2293_v9 = vpop.f32.mrb[8].mxu1  ;;  %v2369_v10 = vpop.f32.mrb[12].mxu0 }
 0x17e   : > { %v2381_v12 = vadd.f32 %v2365_v61, %v2293_v9  ;;  %v1284_v15 = vpop.f32.mrb[9].mxu1  ;;  %v1803_v18 = vpop.f32.mrb[13].mxu0 }
 0x17f   : > { %v2382_v28 = vadd.f32 %v1787_v0, %v1284_v15  ;;  %v2294_v20 = vpop.f32.mrb[10].mxu1  ;;  %v2370_v21 = vpop.f32.mrb[14].mxu0 }
 0x180   : > { %v1851_v23 = vadd.f32 %v2381_v12, %v3158_v31  ;;  %v2383_v27 = vadd.f32 %v2366_v5, %v2294_v20  ;;  %v1287_v34 = vpop.f32.mrb[11].mxu1  ;;  %v1806_v36 = vpop.f32.mrb[15].mxu0 }
 0x181   : > { %v1849_v49 = vadd.f32 %v2382_v28, %v3158_v31  ;;  %v2384_v54 = vadd.f32 %v1790_v7, %v1287_v34 }
 0x182   : > { %1868 = vst.msk [vmem:[%s3165_s12 + $0x50] sm:$0xff] %vm1857_vm5, %v1851_v23  ;;  %v1852_v4 = vadd.f32 %v2383_v27, %v3158_v31 }
 0x183   : > { %1866 = vst.msk [vmem:[%s3165_s12 + $0x40] sm:$0xff] %vm1857_vm5, %v1849_v49  ;;  %v1850_v60 = vadd.f32 %v2384_v54, %v3158_v31 }
 0x184   : > { %1869 = vst.msk [vmem:[%s3165_s12 + $0x58] sm:$0xff] %vm1857_vm5, %v1852_v4 }
 0x185   : > { %1867 = vst.msk [vmem:[%s3165_s12 + $0x48] sm:$0xff] %vm1857_vm5, %v1850_v60  ;;  %v2297_v63 = vpop.f32.mrb[12].mxu1 }
 0x186   : > { %v2385_v35 = vadd.f32 %v2369_v10, %v2297_v63  ;;  %v1300_v48 = vpop.f32.mrb[13].mxu1 }
 0x187   : > { %v2386_v62 = vadd.f32 %v1803_v18, %v1300_v48  ;;  %v2298_v1 = vpop.f32.mrb[14].mxu1 }
 0x188   : > { %v1855_v2 = vadd.f32 %v2385_v35, %v3158_v31  ;;  %v2387_v33 = vadd.f32 %v2370_v21, %v2298_v1  ;;  %v1303_v47 = vpop.f32.mrb[15].mxu1 }
 0x189   : > { %v1853_v19 = vadd.f32 %v2386_v62, %v3158_v31  ;;  %v2388_v32 = vadd.f32 %v1806_v36, %v1303_v47 }
 0x18a   : > { %1872 = vst.msk [vmem:[%s3165_s12 + $0x70] sm:$0xff] %vm1857_vm5, %v1855_v2  ;;  %v1856_v3 = vadd.f32 %v2387_v33, %v3158_v31 }
 0x18b   : > { %1870 = vst.msk [vmem:[%s3165_s12 + $0x60] sm:$0xff] %vm1857_vm5, %v1853_v19  ;;  %v1854_v6 = vadd.f32 %v2388_v32, %v3158_v31 }
 0x18c   : > { %1873 = vst.msk [vmem:[%s3165_s12 + $0x78] sm:$0xff] %vm1857_vm5, %v1856_v3 }
 0x18d   : > { %1871 = vst.msk [vmem:[%s3165_s12 + $0x68] sm:$0xff] %vm1857_vm5, %v1854_v6 }
 0x18e PF: > { %s15_s22 = sadd.s32 1, %s2592_s22   ;;  %s3237_s18 = smov %s2584_s20 }
 0x18f   : > { %p12_p12 = scmp.ge.s32.totalorder %s15_s22, 6   ;;  %s3238_s19 = smov %s2588_s21 }
 0x190   : > { %s3239_s20 = smov %s3242_s23  ;;  %s3240_s21 = smov %s3246_s24 }
 0x191   :  { %14 = sbr.rel (!%p12_p12) target bundleno = 3 (0x3), region = 76 }

// kernel: style_encoder_forward.7
= control target key start
LH: loop header
LB: loop body
LE: loop exit
PB: predicated region body
PF: predicated region fallthrough
CT: control target
= control target key end

     0   :  { %s3225_s24 = smov 0   ;;  %s3227_s25 = smov 0   ;;  %s3980_s0 = inlined_call_operand.vmem [shape: f32[2,16,16,16], index: 0, kind: input, shape index: {}, may-alias: {0,1,2}]   ;;  %s3981_s1 = inlined_call_operand.vmem [shape: f32[2,16,16,16], index: 1, kind: input, shape index: {}, may-alias: {0,1,2}]   ;;  %s3982_s2 = inlined_call_operand.vmem [shape: f32[2,16,16,16], index: 2, kind: input, shape index: {}, may-alias: {0,1,2}]   ;;  %s3983_s3 = inlined_call_operand.vmem [shape: bf16[3,3,16,16], index: 3, kind: input, shape index: {}]   ;;  %s3984_s4 = inlined_call_operand.vmem [shape: f32[1,16], index: 4, kind: input, shape index: {}]   ;;  %s3985_s5 = inlined_call_operand.vmem [shape: f32[32,128], index: 5, kind: input, shape index: {}]   ;;  %s3986_s6 = inlined_call_operand.vmem [shape: f32[2,64,16], index: 6, kind: output, shape index: {0}]   ;;  %s3987_s7 = inlined_call_operand.vmem [shape: f32[2,64,16], index: 7, kind: output, shape index: {1}]  }
   0x1   :  { %s3229_s26 = smov 0   ;;  %s3231_s27 = smov 0  }
   0x2   :  { %s3233_s28 = smov 0  }
   0x3 LB: > { %s27_s29 = sadd.s32 1, %s3175_s26  ;;  %s30_s30 = sadd.s32 1, %s3179_s27  ;;  %s3183_s28 = sphi %s3233_s28, %s18_s28   ;;  %s3179_s27 = sphi %s3231_s27, %s4002_s27   ;;  %s3175_s26 = sphi %s3229_s26, %s4001_s26   ;;  %s3171_s25 = sphi %s3227_s25, %s4000_s25   ;;  %s3167_s24 = sphi %s3225_s24, %s3999_s24  }
   0x4   : > { %p28_p0 = scmp.ge.s32.totalorder %s27_s29, 2  ;;  %p2403_p1 = scmp.ge.s32.totalorder %s3183_s28, 1 }
   0x5   : > { %p328_p2 = scmp.lt.s32.totalorder %s3183_s28, 5 }
   0x6   : > { %s4004_s29 = smov (%p28_p0, %s27_s29), 0  ;;  %s4006_s30 = smov (!%p28_p0, %s30_s30), %s3179_s27 }
   0x7   : > { %p329_p3 = pnand %p2403_p1, %p328_p2  ;;  %p32_p4 = scmp.ge.s32.totalorder %s4006_s30, 2 }
   0x9   : > { %s4008_s30 = smov (%p32_p4, %s4006_s30), 0  ;;  %332 = sbr.rel (%p329_p3) target bundleno = 674 (0x2a2), region = 44 }
  0x10   : > { %v3124_v0 = vld [vmem:[%s3983_s3 + $0x20] sm:$0xff]   ;;  %s3261_s10 = sshll.u32 %s3167_s24, 3  ;;  %p405_p5 = scmp.lt.s32.totalorder %s3171_s25, 1  ;;  %v3267_v1 = vld [vmem:[%s3983_s3 + $0x28] sm:$0xff]   ;;  %vm582_vm2 = vcmask 1040384   ;;  %vm705_vm5 = vcmask 1046528  }
  0x11   : > { %p407_p6 = scmp.lt.s32.totalorder %s3261_s10, 15  ;;  %2710 = vmatprep.subr.bf16.mxu0 %v3124_v0  ;;  %v3126_v2 = vld [vmem:[%s3983_s3 + $0x8] sm:$0xff]   ;;  %v3279_v3 = vld [vmem:[%s3983_s3] sm:$0xff]   ;;  %s2409_s19 = sadd.s32 4294967295, %s3261_s10  ;;  %vm776_vm6 = vcmask 130048   ;;  %v3378_v43 = vld [vmem:[%s3983_s3 + $0x30] sm:$0xff]  }
  0x12   : > { %2711 = vmatpush3.bf16.msra.mxu0 %v3124_v0  ;;  %s4010_s25 = smov (!%p405_p5, %s3171_s25), 1  ;;  %2638 = vmatprep.subr.bf16.mxu1 %v3126_v2  ;;  %p417_p7 = scmp.gt.s32.totalorder %s2409_s19, 0 }
  0x13   : > { %s408_s15 = scalar_select %p407_p6, %s3261_s10, 15  ;;  %2728 = vmatprep.subr.bf16.mxu0 %v3267_v1  ;;  %2639 = vmatpush3.bf16.msra.mxu1 %v3126_v2 }
  0x14   : > { %s3282_s18 = sshll.u32 %s4010_s25, 5  ;;  %2656 = vmatprep.subr.bf16.mxu1 %v3279_v3  ;;  %p2410_p8 = scmp.lt.s32.totalorder %s2409_s19, 15 }
  0x15   : > { %s2405_s20 = sshll.u32 %s408_s15, 1  ;;  %p486_p9 = scmp.eq.s32.totalorder %s3167_s24, 0 }
  0x16   : > { %s411_s21 = sadd.s32 %s3282_s18, %s2405_s20  ;;  %p494_p11 = scmp.eq.s32.totalorder %s3167_s24, 1 }
  0x17   : > { %s2407_s22 = sshll.u32 %s411_s21, 3  ;;  %s2425_s16 = sshll.u32 %s3167_s24, 2 }
  0x18   : > { %s3290_s9 = scalar_lea.vmem %s3980_s0, %s2407_s22  ;;  %p452_p12 = scmp.lt.s32.totalorder %s2425_s16, 7 }
  0x19   : > { %v3294_v4 = vld [vmem:[%s3290_s9] sm:$0xff]  ;;  %v3297_v5 = vld [vmem:[%s3290_s9 + $0x8] sm:$0xff]  ;;  %v3300_v6 = vld [vmem:[%s3290_s9 + $0x10] sm:$0xff]  ;;  %s418_s11 = scalar_select %p417_p7, %s2409_s19, 0 }
  0x1a   : > { %vm504_vm0 = vcmp.ge.f32.partialorder %v3294_v4, 0.0  ;;  %vm505_vm1 = vcmp.ge.f32.partialorder %v3297_v5, 0.0  ;;  %v524_v7 = vmul.f32 0.2, %v3294_v4  ;;  %v525_v8 = vmul.f32 0.2, %v3297_v5 }
  0x1b   : > { %v3307_v9 = vld [vmem:[%s3290_s9 + $0x18] sm:$0xff]  ;;  %vm506_vm3 = vcmp.ge.f32.partialorder %v3300_v6, 0.0  ;;  %v526_v10 = vmul.f32 0.2, %v3300_v6  ;;  %s4012_s11 = smov (!%p2410_p8, %s418_s11), 15  ;;  %s433_s19 = sadd.s32 8, %s3261_s10 }
  0x1c   : > { %v544_v11 = vsel %vm504_vm0, %v3294_v4, %v524_v7  ;;  %v545_v12 = vsel %vm505_vm1, %v3297_v5, %v525_v8  ;;  %vm507_vm4 = vcmp.ge.f32.partialorder %v3307_v9, 0.0  ;;  %v527_v13 = vmul.f32 0.2, %v3307_v9  ;;  %s2415_s12 = sshll.u32 %s4012_s11, 1  ;;  %v3341_v27 = vld [vmem:[%s3290_s9 + $0x20] sm:$0xff]  ;;  %v3344_v28 = vld [vmem:[%s3290_s9 + $0x28] sm:$0xff] }
  0x1d   : > { %v586_v14 = vrot.slane %v544_v11, 7  ;;  %v587_v15 = vrot.slane %v545_v12, 7  ;;  %v546_v16 = vsel %vm506_vm3, %v3300_v6, %v526_v10  ;;  %s425_s13 = sadd.s32 %s2415_s12, %s3282_s18  ;;  %p3359_p10 = scmp.lt.s32.totalorder %s433_s19, 15  ;;  %vm508_vm7 = vcmp.ge.f32.partialorder %v3341_v27, 0.0  ;;  %v3366_v39 = vld [vmem:[%s3290_s9 + $0x30] sm:$0xff]  ;;  %v3369_v40 = vld [vmem:[%s3290_s9 + $0x38] sm:$0xff] }
  0x1e   : > { %v547_v17 = vsel %vm507_vm4, %v3307_v9, %v527_v13  ;;  %v589_v18 = vrot.slane %v546_v16, 7  ;;  %s2417_s14 = sshll.u32 %s425_s13, 3  ;;  %vm509_vm8 = vcmp.ge.f32.partialorder %v3344_v28, 0.0  ;;  %v528_v47 = vmul.f32 0.2, %v3341_v27  ;;  %v3406_v61 = vld [vmem:[%s3290_s9 + $0x40] sm:$0xff] }
  0x1f   : > { %v3320_v19 = vsel %vm582_vm2, %v586_v14, %v587_v15  ;;  %v3323_v20 = vsel %vm582_vm2, 0.0, %v586_v14  ;;  %v3326_v21 = vsel %vm582_vm2, %v587_v15, 0.0  ;;  %v590_v22 = vrot.slane %v547_v17, 7  ;;  %s427_s17 = scalar_lea.vmem %s3981_s1, %s2417_s14  ;;  %s4014_s19 = smov (!%p3359_p10, %s433_s19), 15  ;;  %v3439_v14 = vld [vmem:[%s3290_s9 + $0x48] sm:$0xff] }
  0x20   : > { %v711_v23 = vrot.slane %v3323_v20, 1  ;;  %v712_v24 = vrot.slane %v3320_v19, 1  ;;  %v714_v25 = vrot.slane %v3326_v21, 1  ;;  %s3128_s20 = scalar_select %p486_p9, 0, 255  ;;  %v3349_v31 = vsel %vm582_vm2, 0.0, %v589_v18 }
  0x21   : > { %v3336_v26 = vsel %vm582_vm2, %v589_v18, %v590_v22  ;;  %v3352_v32 = vsel %vm582_vm2, %v590_v22, 0.0  ;;  %v716_v34 = vrot.slane %v3349_v31, 1  ;;  %v529_v48 = vmul.f32 0.2, %v3344_v28  ;;  %s4016_s19 = smov (!%p3359_p10, %s4014_s19), 15  ;;  %s4018_s16 = smov (!%p452_p12, %s2425_s16), 7 }
  0x22   : > { %v713_v29 = vsel %vm705_vm5, %v711_v23, %v712_v24  ;;  %v715_v30 = vsel %vm705_vm5, %v712_v24, %v714_v25  ;;  %v717_v35 = vrot.slane %v3336_v26, 1  ;;  %v719_v36 = vrot.slane %v3352_v32, 1  ;;  %v3129_v37 = vld [vmem:[%s427_s17] sm:%s3128_s20]  ;;  %v3132_v38 = vld [vmem:[%s427_s17 + $0x8] sm:%s3128_s20]  ;;  %s3409_s23 = sshll.u32 %s4016_s19, 1  ;;  %s2426_s17 = sshll.u32 %s4010_s25, 3 }
  0x23   : > { %v3354_v33 = vpack.c.bf16 %v715_v30, %v713_v29  ;;  %vm502_vm9 = vcmp.ge.f32.partialorder %v3129_v37, 0.0  ;;  %vm503_vm10 = vcmp.ge.f32.partialorder %v3132_v38, 0.0  ;;  %v522_v45 = vmul.f32 0.2, %v3129_v37  ;;  %s442_s8 = sadd.s32 %s3409_s23, %s3282_s18  ;;  %v3448_v29 = vld [vmem:[%s3290_s9 + $0x50] sm:$0xff]  ;;  %s455_s19 = sadd.s32 %s2426_s17, %s4018_s16 }
  0x24   : > { %v718_v41 = vsel %vm705_vm5, %v716_v34, %v717_v35  ;;  %v720_v42 = vsel %vm705_vm5, %v717_v35, %v719_v36  ;;  %v523_v46 = vmul.f32 0.2, %v3132_v38  ;;  %vm510_vm11 = vcmp.ge.f32.partialorder %v3366_v39, 0.0  ;;  %v3453_v30 = vld [vmem:[%s3983_s3 + $0x10] sm:$0xff]   ;;  %s3138_s13 = scalar_select %p494_p11, 0, 255 }
  0x25   : > { %2712 = vmatprep.mubr.msk.bf16.mxu0 %vm776_vm6, %v3354_v33  ;;  %v3382_v44 = vpack.c.bf16 %v720_v42, %v718_v41  ;;  %vm511_vm12 = vcmp.ge.f32.partialorder %v3369_v40, 0.0  ;;  %v530_v49 = vmul.f32 0.2, %v3366_v39  ;;  %v542_v50 = vsel %vm502_vm9, %v3129_v37, %v522_v45  ;;  %v3460_v37 = vld [vmem:[%s3290_s9 + $0x58] sm:$0xff]  ;;  %s2427_s20 = sshll.u32 %s455_s19, 3 }
  0x26   : > { %v543_v51 = vsel %vm503_vm10, %v3132_v38, %v523_v46  ;;  %v548_v52 = vsel %vm508_vm7, %v3341_v27, %v528_v47  ;;  %v531_v53 = vmul.f32 0.2, %v3369_v40  ;;  %v583_v54 = vrot.slane %v542_v50, 7  ;;  %v3481_v50 = vld [vmem:[%s3290_s9 + $0x60] sm:$0xff]  ;;  %s467_s22 = scalar_lea.vmem %s3987_s7, %s2427_s20  ;;  %s457_s11 = scalar_lea.vmem %s3986_s6, %s2427_s20 }
  0x27   : > { %2713 = vmatmul.mubr.msk.bf16.vlgmr.msra.gmra.mrb[0].mxu0 %vm776_vm6, %v3382_v44  ;;  %v584_v55 = vrot.slane %v543_v51, 7  ;;  %v549_v56 = vsel %vm509_vm8, %v3344_v28, %v529_v48  ;;  %v592_v57 = vrot.slane %v548_v52, 7  ;;  %v1031_v58 = vrot.slane %v3323_v20, 2  ;;  %v3494_v52 = vld [vmem:[%s3290_s9 + $0x68] sm:$0xff] }
  0x28   : > { %2729 = vmatpush3.bf16.msra.mxu0 %v3267_v1  ;;  %v593_v59 = vrot.slane %v549_v56, 7  ;;  %v550_v60 = vsel %vm510_vm11, %v3366_v39, %v530_v49  ;;  %v3415_v63 = vsel %vm582_vm2, 0.0, %v583_v54  ;;  %v551_v10 = vsel %vm511_vm12, %v3369_v40, %v531_v53  ;;  %3992 = vst [vmem:[#allocation2_spill] sm:$0xff] %v3494_v52 }
  0x29   : > { %2746 = vmatprep.subr.bf16.mxu0 %v3378_v43  ;;  %v3412_v62 = vsel %vm582_vm2, %v583_v54, %v584_v55  ;;  %v3418_v0 = vsel %vm582_vm2, %v584_v55, 0.0  ;;  %v3421_v1 = vsel %vm582_vm2, 0.0, %v592_v57  ;;  %v706_v2 = vrot.slane %v3415_v63, 1 }
  0x2a   : > { %v707_v7 = vrot.slane %v3412_v62, 1  ;;  %v709_v8 = vrot.slane %v3418_v0, 1  ;;  %v1032_v11 = vrot.slane %v3320_v19, 2  ;;  %v3433_v12 = vsel %vm582_vm2, %v592_v57, %v593_v59 }
  0x2b   : > { %v3436_v13 = vsel %vm582_vm2, %v593_v59, 0.0  ;;  %vm512_vm13 = vcmp.ge.f32.partialorder %v3406_v61, 0.0  ;;  %v721_v17 = vrot.slane %v3421_v1, 1  ;;  %v722_v18 = vrot.slane %v3433_v12, 1 }
  0x2c   : > { %v708_v15 = vsel %vm705_vm5, %v706_v2, %v707_v7  ;;  %v710_v16 = vsel %vm705_vm5, %v707_v7, %v709_v8  ;;  %v724_v23 = vrot.slane %v3436_v13, 1  ;;  %v595_v24 = vrot.slane %v550_v60, 7 }
  0x2d   : > { %v762_v22 = vpack.c.bf16 %v710_v16, %v708_v15  ;;  %v596_v25 = vrot.slane %v551_v10, 7  ;;  %v723_v34 = vsel %vm705_vm5, %v721_v17, %v722_v18  ;;  %vm513_vm14 = vcmp.ge.f32.partialorder %v3439_v14, 0.0 }
  0x2e   : > { %v532_v35 = vmul.f32 0.2, %v3406_v61  ;;  %v533_v36 = vmul.f32 0.2, %v3439_v14  ;;  %v725_v38 = vsel %vm705_vm5, %v722_v18, %v724_v23  ;;  %v3468_v42 = vsel %vm582_vm2, 0.0, %v595_v24 }
  0x2f   : > { %2640 = vmatprep.mubr.msk.bf16.mxu1 %vm776_vm6, %v762_v22  ;;  %v3465_v41 = vsel %vm582_vm2, %v595_v24, %v596_v25  ;;  %v3471_v45 = vsel %vm582_vm2, %v596_v25, 0.0  ;;  %v3475_v46 = vpack.c.bf16 %v725_v38, %v723_v34  ;;  %v726_v47 = vrot.slane %v3468_v42, 1 }
  0x30   : > { %2641 = vmatmul.mubr.msk.bf16.vlgmr.msra.gmra.mrb[0].mxu1 %vm776_vm6, %v3354_v33  ;;  %v727_v48 = vrot.slane %v3465_v41, 1  ;;  %v729_v49 = vrot.slane %v3471_v45, 1  ;;  %v552_v51 = vsel %vm512_vm13, %v3406_v61, %v532_v35  ;;  %v553_v33 = vsel %vm513_vm14, %v3439_v14, %v533_v36  ;;  %v3534_v36 = vld [vmem:[%s3290_s9 + $0x70] sm:$0xff] }
  0x31   : > { %2644 = vmatprep.mubr.msk.bf16.mxu1 %vm776_vm6, %v3382_v44  ;;  %vm514_vm15 = vcmp.ge.f32.partialorder %v3448_v29, 0.0  ;;  %vm515_vm0 = vcmp.ge.f32.partialorder %v3460_v37, 0.0  ;;  %2657 = vmatpush3.bf16.msra.mxu1 %v3279_v3  ;;  %v598_v55 = vrot.slane %v552_v51, 7  ;;  %v599_v56 = vrot.slane %v553_v33, 7  ;;  %3993 = vst [vmem:[#allocation3_spill] sm:$0xff] %v3534_v36 }
  0x32   : > { %2716 = vmatprep.mubr.msk.bf16.mxu0 %vm776_vm6, %v3475_v46  ;;  %v728_v53 = vsel %vm705_vm5, %v726_v47, %v727_v48  ;;  %v730_v54 = vsel %vm705_vm5, %v727_v48, %v729_v49  ;;  %2674 = vmatprep.subr.bf16.mxu1 %v3453_v30  ;;  %v534_v59 = vmul.f32 0.2, %v3448_v29  ;;  %v535_v60 = vmul.f32 0.2, %v3460_v37  ;;  %v3550_v49 = vld [vmem:[%s3290_s9 + $0x78] sm:$0xff]  ;;  %s2424_s9 = sshll.u32 %s442_s8, 3 }
  0x33   : > { %v3502_v57 = vpack.c.bf16 %v730_v54, %v728_v53  ;;  %vm516_vm1 = vcmp.ge.f32.partialorder %v3481_v50, 0.0  ;;  %v3508_v3 = vsel %vm582_vm2, %v598_v55, %v599_v56  ;;  %v3511_v2 = vsel %vm582_vm2, 0.0, %v598_v55  ;;  %3994 = vst [vmem:[#allocation4_spill] sm:$0xff] %v3550_v49  ;;  %s444_s15 = scalar_lea.vmem %s3982_s2, %s2424_s9 }
  0x34   : > { %v3514_v7 = vsel %vm582_vm2, %v599_v56, 0.0  ;;  %vm517_vm3 = vcmp.ge.f32.partialorder %v3494_v52, 0.0  ;;  %v731_v8 = vrot.slane %v3511_v2, 1  ;;  %v732_v10 = vrot.slane %v3508_v3, 1 }
  0x35   : > { %2717 = vmatmul.mubr.msk.bf16.gmra.mrb[4].mxu0 %vm776_vm6, %v3502_v57  ;;  %v734_v15 = vrot.slane %v3514_v7, 1  ;;  %v554_v16 = vsel %vm514_vm15, %v3448_v29, %v534_v59  ;;  %vm1025_vm4 = vcmask 1045504   ;;  %v555_v17 = vsel %vm515_vm0, %v3460_v37, %v535_v60 }
  0x36   : > { %v601_v18 = vrot.slane %v554_v16, 7  ;;  %v536_v22 = vmul.f32 0.2, %v3481_v50  ;;  %v537_v23 = vmul.f32 0.2, %v3494_v52  ;;  %v1034_v24 = vrot.slane %v3326_v21, 2 }
  0x37   : > { %v733_v25 = vsel %vm705_vm5, %v731_v8, %v732_v10  ;;  %v735_v34 = vsel %vm705_vm5, %v732_v10, %v734_v15  ;;  %v602_v35 = vrot.slane %v555_v17, 7  ;;  %vm518_vm7 = vcmp.ge.f32.partialorder %v3534_v36, 0.0 }
  0x38   : > { %2645 = vmatmul.mubr.msk.bf16.gmra.mrb[4].mxu1 %vm776_vm6, %v3475_v46  ;;  %v3538_v38 = vpack.c.bf16 %v735_v34, %v733_v25  ;;  %v3541_v47 = vsel %vm582_vm2, 0.0, %v601_v18  ;;  %v556_v21 = vsel %vm516_vm1, %v3481_v50, %v536_v22  ;;  %v557_v48 = vsel %vm517_vm3, %v3494_v52, %v537_v23 }
  0x39   : > { %v3553_v51 = vsel %vm582_vm2, %v601_v18, %v602_v35  ;;  %v3556_v33 = vsel %vm582_vm2, %v602_v35, 0.0  ;;  %v736_v53 = vrot.slane %v3541_v47, 1  ;;  %2648 = vmatprep.mubr.msk.bf16.mxu1 %vm776_vm6, %v3502_v57  ;;  %v604_v54 = vrot.slane %v556_v21, 7 }
  0x3a   : > { %2720 = vmatprep.mubr.msk.bf16.mxu0 %vm776_vm6, %v3538_v38  ;;  %v737_v55 = vrot.slane %v3553_v51, 1  ;;  %v739_v56 = vrot.slane %v3556_v33, 1  ;;  %v605_v59 = vrot.slane %v557_v48, 7  ;;  %vm519_vm8 = vcmp.ge.f32.partialorder %v3550_v49, 0.0 }
  0x3b   : > { %v3568_v60 = vsel %vm582_vm2, 0.0, %v604_v54  ;;  %v538_v8 = vmul.f32 0.2, %v3534_v36  ;;  %v539_v10 = vmul.f32 0.2, %v3550_v49 }
  0x3c   : > { %v738_v15 = vsel %vm705_vm5, %v736_v53, %v737_v55  ;;  %v740_v16 = vsel %vm705_vm5, %v737_v55, %v739_v56  ;;  %v3576_v17 = vsel %vm582_vm2, %v604_v54, %v605_v59  ;;  %v3579_v18 = vsel %vm582_vm2, %v605_v59, 0.0 }
  0x3d   : > { %v3581_v22 = vpack.c.bf16 %v740_v16, %v738_v15  ;;  %v741_v23 = vrot.slane %v3568_v60, 1  ;;  %v742_v25 = vrot.slane %v3576_v17, 1  ;;  %v744_v34 = vrot.slane %v3579_v18, 1 }
  0x3e   : > { %v558_v35 = vsel %vm518_vm7, %v3534_v36, %v538_v8  ;;  %v559_v21 = vsel %vm519_vm8, %v3550_v49, %v539_v10  ;;  %v1033_v59 = vsel %vm1025_vm4, %v1031_v58, %v1032_v11  ;;  %v1035_v16 = vsel %vm1025_vm4, %v1032_v11, %v1034_v24 }
  0x3f   : > { %2721 = vmatmul.mubr.msk.bf16.gmra.mrb[8].mxu0 %vm776_vm6, %v3581_v22  ;;  %v743_v48 = vsel %vm705_vm5, %v741_v23, %v742_v25  ;;  %v745_v53 = vsel %vm705_vm5, %v742_v25, %v744_v34  ;;  %v607_v54 = vrot.slane %v558_v35, 7  ;;  %v608_v55 = vrot.slane %v559_v21, 7 }
  0x40   : > { %2649 = vmatmul.mubr.msk.bf16.gmra.mrb[8].mxu1 %vm776_vm6, %v3538_v38  ;;  %v3594_v56 = vpack.c.bf16 %v745_v53, %v743_v48  ;;  %v1036_v34 = vrot.slane %v3349_v31, 2  ;;  %v1037_v35 = vrot.slane %v3336_v26, 2  ;;  %v1039_v21 = vrot.slane %v3352_v32, 2 }
  0x41   : > { %v3602_v8 = vsel %vm582_vm2, %v607_v54, %v608_v55  ;;  %v3605_v10 = vsel %vm582_vm2, 0.0, %v607_v54  ;;  %v3608_v15 = vsel %vm582_vm2, %v608_v55, 0.0  ;;  %2652 = vmatprep.mubr.msk.bf16.mxu1 %vm776_vm6, %v3581_v22  ;;  %v3625_v48 = vpack.c.bf16 %v1035_v16, %v1033_v59 }
  0x42   : > { %2724 = vmatprep.mubr.msk.bf16.mxu0 %vm776_vm6, %v3594_v56  ;;  %v1358_v58 = vrot.slane %v3605_v10, 1  ;;  %v1359_v23 = vrot.slane %v3602_v8, 1  ;;  %v1361_v25 = vrot.slane %v3608_v15, 1  ;;  %v681_v54 = vpack.c.bf16 %v3412_v62, %v3415_v63 }
  0x43   : > { %v1041_v55 = vrot.slane %v3421_v1, 2  ;;  %v1042_v49 = vrot.slane %v3433_v12, 2  ;;  %v1044_v36 = vrot.slane %v3436_v13, 2  ;;  %v1038_v32 = vsel %vm1025_vm4, %v1036_v34, %v1037_v35 }
  0x44   : > { %v1360_v11 = vsel %vm705_vm5, %v1358_v58, %v1359_v23  ;;  %v1362_v24 = vsel %vm705_vm5, %v1359_v23, %v1361_v25  ;;  %v1040_v59 = vsel %vm1025_vm4, %v1037_v35, %v1039_v21  ;;  %v1046_v58 = vrot.slane %v3468_v42, 2 }
  0x45   : > { %v3627_v53 = vpack.c.bf16 %v1362_v24, %v1360_v11  ;;  %v1043_v13 = vsel %vm1025_vm4, %v1041_v55, %v1042_v49  ;;  %v1045_v16 = vsel %vm1025_vm4, %v1042_v49, %v1044_v36  ;;  %v1047_v23 = vrot.slane %v3465_v41, 2  ;;  %v3139_v11 = vld [vmem:[%s444_s15] sm:%s3138_s13]  ;;  %v3142_v24 = vld [vmem:[%s444_s15 + $0x8] sm:%s3138_s13] }
  0x46   : > { %v3655_v25 = vpack.c.bf16 %v1040_v59, %v1038_v32  ;;  %v1049_v34 = vrot.slane %v3471_v45, 2  ;;  %v3660_v35 = vpack.c.bf16 %v3320_v19, %v3323_v20  ;;  %v3664_v21 = vpack.c.bf16 %v3336_v26, %v3349_v31  ;;  %v3675_v19 = vld [vmem:[%s3983_s3 + $0x38] sm:$0xff]  }
  0x47   : > { %2725 = vmatmul.mubr.msk.bf16.gmra.mrb[12].mxu0 %vm776_vm6, %v3627_v53  ;;  %v1051_v36 = vrot.slane %v3511_v2, 2  ;;  %v1052_v49 = vrot.slane %v3508_v3, 2  ;;  %v1054_v55 = vrot.slane %v3514_v7, 2  ;;  %v1048_v45 = vsel %vm1025_vm4, %v1046_v58, %v1047_v23  ;;  %v3683_v26 = vld [vmem:[%s3983_s3 + $0x18] sm:$0xff]  }
  0x48   : > { %2653 = vmatmul.mubr.msk.bf16.gmra.mrb[12].mxu1 %vm776_vm6, %v3594_v56  ;;  %2730 = vmatprep.mubr.msk.bf16.mxu0 %vm776_vm6, %v3625_v48  ;;  %v1050_v20 = vsel %vm1025_vm4, %v1047_v23, %v1049_v34  ;;  %vm520_vm9 = vcmp.ge.f32.partialorder %v3139_v11, 0.0  ;;  %vm521_vm10 = vcmp.ge.f32.partialorder %v3142_v24, 0.0  ;;  %v540_v31 = vmul.f32 0.2, %v3139_v11 }
  0x49   : > { %2658 = vmatprep.mubr.msk.bf16.mxu1 %vm776_vm6, %v681_v54  ;;  %v3666_v54 = vpack.c.bf16 %v1045_v16, %v1043_v13  ;;  %v541_v7 = vmul.f32 0.2, %v3142_v24  ;;  %v3694_v32 = vpack.c.bf16 %v3433_v12, %v3421_v1  ;;  %v1053_v59 = vsel %vm1025_vm4, %v1051_v36, %v1052_v49 }
  0x4a   : > { %v1055_v13 = vsel %vm1025_vm4, %v1052_v49, %v1054_v55  ;;  %v1056_v16 = vrot.slane %v3541_v47, 2  ;;  %v560_v58 = vsel %vm520_vm9, %v3139_v11, %v540_v31  ;;  %v1057_v34 = vrot.slane %v3553_v51, 2 }
  0x4b   : > { %v561_v23 = vsel %vm521_vm10, %v3142_v24, %v541_v7  ;;  %v1059_v1 = vrot.slane %v3556_v33, 2  ;;  %v610_v12 = vrot.slane %v560_v58, 7  ;;  %v3708_v49 = vpack.c.bf16 %v1055_v13, %v1053_v59 }
  0x4c   : > { %v611_v36 = vrot.slane %v561_v23, 7  ;;  %v3712_v55 = vpack.c.bf16 %v3465_v41, %v3468_v42  ;;  %v1062_v11 = vrot.slane %v3576_v17, 2  ;;  %v1064_v24 = vrot.slane %v3579_v18, 2 }
  0x4d   : > { %v3721_v33 = vsel %vm582_vm2, 0.0, %v610_v12  ;;  %v1058_v18 = vsel %vm1025_vm4, %v1056_v16, %v1057_v34  ;;  %v1060_v23 = vsel %vm1025_vm4, %v1057_v34, %v1059_v1 }
  0x4e   : > { %v1743_v41 = vrot.slane %v3721_v33, 1  ;;  %v1873_v7 = vrot.slane %v3721_v33, 2  ;;  %v1065_v16 = vsel %vm1025_vm4, %v1062_v11, %v1064_v24 }
  0x4f   : > { %2731 = vmatmul.mubr.msk.bf16.vlgmr.msra.gmra.mrb[0].mxu0 %vm776_vm6, %v3655_v25 }
  0x50   : > { %2747 = vmatpush3.bf16.msra.mxu0 %v3378_v43  ;;  %2659 = vmatmul.mubr.msk.bf16.vlgmr.msra.gmra.mrb[0].mxu1 %vm776_vm6, %v3660_v35  ;;  %v3698_v43 = vpack.c.bf16 %v1050_v20, %v1048_v45  ;;  %v3718_v45 = vsel %vm582_vm2, %v610_v12, %v611_v36  ;;  %v662_v20 = vsel %vm582_vm2, %v611_v36, 0.0 }
  0x51   : > { %2734 = vmatprep.mubr.msk.bf16.mxu0 %vm776_vm6, %v3666_v54  ;;  %2662 = vmatprep.mubr.msk.bf16.mxu1 %vm776_vm6, %v3664_v21  ;;  %v1744_v42 = vrot.slane %v3718_v45, 1  ;;  %v1874_v59 = vrot.slane %v3718_v45, 2  ;;  %v1746_v13 = vrot.slane %v662_v20, 1  ;;  %v1876_v58 = vrot.slane %v662_v20, 2 }
  0x52   : > { %2764 = vmatprep.subr.bf16.mxu0 %v3675_v19  ;;  %2675 = vmatpush3.bf16.msra.mxu1 %v3453_v30  ;;  %v1061_v30 = vrot.slane %v3568_v60, 2 }
  0x53   : > { %2692 = vmatprep.subr.bf16.mxu1 %v3683_v26  ;;  %v3740_v36 = vsel %vm705_vm5, %v1743_v41, %v1744_v42  ;;  %v3746_v20 = vsel %vm705_vm5, %v1744_v42, %v1746_v13  ;;  %v3749_v31 = vsel %vm1025_vm4, %v1873_v7, %v1874_v59  ;;  %v3752_v52 = vsel %vm1025_vm4, %v1874_v59, %v1876_v58 }
  0x54   : > { %v1063_v12 = vsel %vm1025_vm4, %v1061_v30, %v1062_v11  ;;  %v1750_v34 = vpack.c.bf16 %v3746_v20, %v3740_v36  ;;  %v1880_v1 = vpack.c.bf16 %v3752_v52, %v3749_v31  ;;  %v3758_v30 = vpack.c.bf16 %v1060_v23, %v1058_v18 }
  0x55   : > { %v686_v11 = vpack.c.bf16 %v3508_v3, %v3511_v2  ;;  %v3762_v24 = vpack.c.bf16 %v1065_v16, %v1063_v12  ;;  %v1488_v41 = vrot.slane %v3605_v10, 2  ;;  %v1489_v42 = vrot.slane %v3602_v8, 2 }
  0x56   : > { %v1491_v7 = vrot.slane %v3608_v15, 2  ;;  %v687_v59 = vpack.c.bf16 %v3553_v51, %v3541_v47  ;;  %v1026_v13 = vrot.slane %v3415_v63, 2  ;;  %v1027_v58 = vrot.slane %v3412_v62, 2  ;;  %v3144_v15 = vld [vmem:[%s3983_s3 + $0x40] sm:$0xff]  }
  0x57   : > { %2735 = vmatmul.mubr.msk.bf16.gmra.mrb[4].mxu0 %vm776_vm6, %v3698_v43  ;;  %v1029_v18 = vrot.slane %v3418_v0, 2  ;;  %v1490_v3 = vsel %vm1025_vm4, %v1488_v41, %v1489_v42  ;;  %v688_v0 = vpack.c.bf16 %v3576_v17, %v3568_v60  ;;  %v1233_v60 = vpack.c.bf16 %v3602_v8, %v3605_v10 }
  0x58   : > { %2663 = vmatmul.mubr.msk.bf16.gmra.mrb[4].mxu1 %vm776_vm6, %v3694_v32  ;;  %2738 = vmatprep.mubr.msk.bf16.mxu0 %vm776_vm6, %v3708_v49  ;;  %v1492_v2 = vsel %vm1025_vm4, %v1489_v42, %v1491_v7  ;;  %v1028_v63 = vsel %vm1025_vm4, %v1026_v13, %v1027_v58  ;;  %v3995_v17 = vpack.c.bf16 %v3718_v45, %v3721_v33 }
  0x59   : > { %2666 = vmatprep.mubr.msk.bf16.mxu1 %vm776_vm6, %v3712_v55  ;;  %v1030_v62 = vsel %vm1025_vm4, %v1027_v58, %v1029_v18  ;;  %v1495_v47 = vpack.c.bf16 %v1492_v2, %v1490_v3  ;;  %v3883_v52 = vpack.c.bf16 %v3344_v28, %v3341_v27  ;;  %v3997_v28 = vld [vmem:[#allocation3_spill] sm:$0xff] }
  0x5a   : > { %v1082_v51 = vpack.c.bf16 %v1030_v62, %v1028_v63 }
  0x5f   : > { %2739 = vmatmul.mubr.msk.bf16.gmra.mrb[8].mxu0 %vm776_vm6, %v3758_v30 }
  0x60   : > { %2667 = vmatmul.mubr.msk.bf16.gmra.mrb[8].mxu1 %vm776_vm6, %v686_v11  ;;  %2742 = vmatprep.mubr.msk.bf16.mxu0 %vm776_vm6, %v3762_v24 }
  0x61   : > { %2670 = vmatprep.mubr.msk.bf16.mxu1 %vm776_vm6, %v687_v59 }
  0x67   : > { %2743 = vmatmul.mubr.msk.bf16.gmra.mrb[12].mxu0 %vm776_vm6, %v1495_v47 }
  0x68   : > { %2671 = vmatmul.mubr.msk.bf16.gmra.mrb[12].mxu1 %vm776_vm6, %v688_v0  ;;  %2748 = vmatprep.mubr.msk.bf16.mxu0 %vm776_vm6, %v3664_v21 }
  0x69   : > { %2676 = vmatprep.mubr.msk.bf16.mxu1 %vm776_vm6, %v1082_v51 }
  0x6f   : > { %2749 = vmatmul.mubr.msk.bf16.vlgmr.msra.gmra.mrb[0].mxu0 %vm776_vm6, %v3694_v32 }
  0x70   : > { %2765 = vmatpush3.bf16.msra.mxu0 %v3675_v19  ;;  %2677 = vmatmul.mubr.msk.bf16.vlgmr.msra.gmra.mrb[0].mxu1 %vm776_vm6, %v3625_v48 }
  0x71   : > { %2752 = vmatprep.mubr.msk.bf16.mxu0 %vm776_vm6, %v3712_v55  ;;  %2680 = vmatprep.mubr.msk.bf16.mxu1 %vm776_vm6, %v3655_v25 }
  0x72   : > { %2782 = vmatprep.subr.bf16.mxu0 %v3144_v15  ;;  %2693 = vmatpush3.bf16.msra.mxu1 %v3683_v26 }
  0x77   : > { %2753 = vmatmul.mubr.msk.bf16.gmra.mrb[4].mxu0 %vm776_vm6, %v686_v11 }
  0x78   : > { %2681 = vmatmul.mubr.msk.bf16.gmra.mrb[4].mxu1 %vm776_vm6, %v3666_v54  ;;  %2756 = vmatprep.mubr.msk.bf16.mxu0 %vm776_vm6, %v687_v59 }
  0x79   : > { %2684 = vmatprep.mubr.msk.bf16.mxu1 %vm776_vm6, %v3698_v43 }
  0x7f   : > { %2757 = vmatmul.mubr.msk.bf16.gmra.mrb[8].mxu0 %vm776_vm6, %v688_v0 }
  0x80   : > { %2685 = vmatmul.mubr.msk.bf16.gmra.mrb[8].mxu1 %vm776_vm6, %v3708_v49  ;;  %2760 = vmatprep.mubr.msk.bf16.mxu0 %vm776_vm6, %v1233_v60 }
  0x81   : > { %2688 = vmatprep.mubr.msk.bf16.mxu1 %vm776_vm6, %v3758_v30 }
  0x87   : > { %2761 = vmatmul.mubr.msk.bf16.gmra.mrb[12].mxu0 %vm776_vm6, %v3995_v17 }
  0x88   : > { %2689 = vmatmul.mubr.msk.bf16.gmra.mrb[12].mxu1 %vm776_vm6, %v3762_v24  ;;  %2766 = vmatprep.mubr.msk.bf16.mxu0 %vm776_vm6, %v3382_v44  ;;  %v2026_v44 = vld [vmem:[%s3985_s5] sm:$0xff] }
  0x89   : > { %2694 = vmatprep.mubr.msk.bf16.mxu1 %vm776_vm6, %v3660_v35 }
  0x8f   : > { %2767 = vmatmul.mubr.msk.bf16.vlgmr.msra.gmra.mrb[0].mxu0 %vm776_vm6, %v3475_v46  ;;  %v3871_v46 = vpack.c.bf16 %v3297_v5, %v3294_v4  ;;  %v3889_v4 = vpack.c.bf16 %v3369_v40, %v3366_v39  ;;  %v3895_v5 = vpack.c.bf16 %v3439_v14, %v3406_v61  ;;  %v3998_v39 = vld [vmem:[#allocation4_spill] sm:$0xff]  ;;  %v3920_v61 = vld [vmem:[%s3985_s5 + $0x8] sm:$0xff] }
  0x90   : > { %2783 = vmatpush3.bf16.msra.mxu0 %v3144_v15  ;;  %2695 = vmatmul.mubr.msk.bf16.vlgmr.msra.gmra.mrb[0].mxu1 %vm776_vm6, %v3664_v21  ;;  %v3913_v40 = vpack.c.bf16 %v3998_v39, %v3997_v28 }
  0x91   : > { %2770 = vmatprep.mubr.msk.bf16.mxu0 %vm776_vm6, %v3502_v57  ;;  %2698 = vmatprep.mubr.msk.bf16.mxu1 %vm776_vm6, %v3694_v32  ;;  %v3877_v57 = vpack.c.bf16 %v3307_v9, %v3300_v6  ;;  %v3901_v6 = vpack.c.bf16 %v3460_v37, %v3448_v29  ;;  %v3996_v9 = vld [vmem:[#allocation2_spill] sm:$0xff] }
  0x92   : > { %2909 = vmatprep.subr.bf16.mxu0 %v3871_v46  ;;  %v3907_v27 = vpack.c.bf16 %v3996_v9, %v3481_v50 }
  0x97   : > { %2771 = vmatmul.mubr.msk.bf16.gmra.mrb[4].mxu0 %vm776_vm6, %v3538_v38 }
  0x98   : > { %2699 = vmatmul.mubr.msk.bf16.gmra.mrb[4].mxu1 %vm776_vm6, %v3712_v55  ;;  %2774 = vmatprep.mubr.msk.bf16.mxu0 %vm776_vm6, %v3581_v22 }
  0x99   : > { %2702 = vmatprep.mubr.msk.bf16.mxu1 %vm776_vm6, %v686_v11 }
  0x9f   : > { %2775 = vmatmul.mubr.msk.bf16.gmra.mrb[8].mxu0 %vm776_vm6, %v3594_v56 }
  0xa0   : > { %2703 = vmatmul.mubr.msk.bf16.gmra.mrb[8].mxu1 %vm776_vm6, %v687_v59  ;;  %2778 = vmatprep.mubr.msk.bf16.mxu0 %vm776_vm6, %v3627_v53 }
  0xa1   : > { %2706 = vmatprep.mubr.msk.bf16.mxu1 %vm776_vm6, %v688_v0 }
  0xa7   : > { %2779 = vmatmul.mubr.msk.bf16.gmra.mrb[12].mxu0 %vm776_vm6, %v1750_v34 }
  0xa8   : > { %2707 = vmatmul.mubr.msk.bf16.gmra.mrb[12].mxu1 %vm776_vm6, %v1233_v60  ;;  %2784 = vmatprep.mubr.msk.bf16.mxu0 %vm776_vm6, %v3655_v25 }
  0xa9   : > { %2832 = vmatprep.mubr.f32.mxu1 %v2026_v44 }
  0xaf   : > { %2785 = vmatmul.mubr.msk.bf16.vlgmr.msra.gmra.mrb[0].mxu0 %vm776_vm6, %v3666_v54 }
  0xb0   : > { %2788 = vmatprep.mubr.msk.bf16.mxu0 %vm776_vm6, %v3698_v43  ;;  %2911 = vmatpush3.bf16.msra.mxu0 %v3871_v46 }
  0xb1   : > { %2913 = vmatprep.subr.bf16.mxu0 %v3877_v57 }
  0xb4   : > { %2915 = vmatpush3.bf16.msra.mxu0 %v3877_v57 }
  0xb5   : > { %2917 = vmatprep.subr.bf16.mxu0 %v3883_v52 }
  0xb7   : > { %2789 = vmatmul.mubr.msk.bf16.gmra.mrb[4].mxu0 %vm776_vm6, %v3708_v49  ;;  %v2512_v49 = vld [vmem:[%s3984_s4] ss:$0 sm:$0xff] }
  0xb8   : > { %2792 = vmatprep.mubr.msk.bf16.mxu0 %vm776_vm6, %v3758_v30  ;;  %2919 = vmatpush3.bf16.msra.mxu0 %v3883_v52 }
  0xb9   : > { %2921 = vmatprep.subr.bf16.mxu0 %v3889_v4 }
  0xbc   : > { %2923 = vmatpush3.bf16.msra.mxu0 %v3889_v4 }
  0xbd   : > { %2925 = vmatprep.subr.bf16.mxu0 %v3895_v5 }
  0xbf   : > { %2793 = vmatmul.mubr.msk.bf16.gmra.mrb[8].mxu0 %vm776_vm6, %v3762_v24 }
  0xc0   : > { %2796 = vmatprep.mubr.msk.bf16.mxu0 %vm776_vm6, %v1495_v47  ;;  %2927 = vmatpush3.bf16.msra.mxu0 %v3895_v5 }
  0xc1   : > { %2929 = vmatprep.subr.bf16.mxu0 %v3901_v6 }
  0xc4   : > { %2931 = vmatpush3.bf16.msra.mxu0 %v3901_v6 }
  0xc5   : > { %2933 = vmatprep.subr.bf16.mxu0 %v3907_v27 }
  0xc7   : > { %2797 = vmatmul.mubr.msk.bf16.gmra.mrb[12].mxu0 %vm776_vm6, %v1880_v1 }
  0xc8   : > { %2870 = vmatprep.mubr.f32.mxu0 %v2026_v44  ;;  %2935 = vmatpush3.bf16.msra.mxu0 %v3907_v27 }
  0xc9   : > { %2937 = vmatprep.subr.bf16.mxu0 %v3913_v40 }
  0xcc   : > { %2939 = vmatpush3.bf16.msra.mxu0 %v3913_v40 }
  0xcf   : > { %2871 = vmatmul.mubr.f32.vlgmr.msra.gmra.mrb[16].mxu0 %v3920_v61 }
 0x163   : > { %v2696_v14 = vpop.f32.mrb[0].mxu1 }
 0x164   : > { %v1277_v29 = vpop.f32.mrb[1].mxu1 }
 0x165   : > { %v2697_v37 = vpop.f32.mrb[2].mxu1 }
 0x166   : > { %v1280_v50 = vpop.f32.mrb[3].mxu1 }
 0x16b   : > { %v2700_v38 = vpop.f32.mrb[4].mxu1 }
 0x16c   : > { %v1293_v22 = vpop.f32.mrb[5].mxu1 }
 0x16d   : > { %v2701_v56 = vpop.f32.mrb[6].mxu1 }
 0x16e   : > { %v1296_v8 = vpop.f32.mrb[7].mxu1 }
 0x173   : > { %v2704_v10 = vpop.f32.mrb[8].mxu1 }
 0x174   : > { %v1309_v48 = vpop.f32.mrb[9].mxu1 }
 0x175   : > { %v2705_v53 = vpop.f32.mrb[10].mxu1 }
 0x176   : > { %v1312_v25 = vpop.f32.mrb[11].mxu1 }
 0x17b   : > { %v2708_v35 = vpop.f32.mrb[12].mxu1 }
 0x17c   : > { %v1325_v21 = vpop.f32.mrb[13].mxu1 }
 0x17d   : > { %v2709_v54 = vpop.f32.mrb[14].mxu1 }
 0x17e   : > { %v1328_v19 = vpop.f32.mrb[15].mxu1 }
 0x182   : > { %v2786_v26 = vpop.f32.mrb[0].mxu0 }
 0x183   : > { %v2956_v32 = vadd.f32 %v2786_v26, %v2696_v14  ;;  %v1924_v43 = vpop.f32.mrb[1].mxu0 }
 0x184   : > { %v2957_v55 = vadd.f32 %v1924_v43, %v1277_v29  ;;  %v2787_v45 = vpop.f32.mrb[2].mxu0 }
 0x185   : > { %v2958_v33 = vadd.f32 %v2787_v45, %v2697_v37  ;;  %v1927_v31 = vpop.f32.mrb[3].mxu0  ;;  %v2012_v12 = vadd.f32 %v2956_v32, %v2512_v49 }
 0x186   : > { %v2959_v23 = vadd.f32 %v1927_v31, %v1280_v50  ;;  %v2010_v16 = vadd.f32 %v2957_v55, %v2512_v49 }
 0x187   : > { %v2013_v36 = vadd.f32 %v2958_v33, %v2512_v49 }
 0x188   : > { %v2011_v20 = vadd.f32 %v2959_v23, %v2512_v49 }
 0x189   : > { %v2880_v34 = vpack.c.bf16 %v2013_v36, %v2012_v12 }
 0x18a   : > { %v2790_v1 = vpop.f32.mrb[4].mxu0  ;;  %v2876_v30 = vpack.c.bf16 %v2011_v20, %v2010_v16 }
 0x18b   : > { %v2960_v11 = vadd.f32 %v2790_v1, %v2700_v38  ;;  %v1940_v24 = vpop.f32.mrb[5].mxu0 }
 0x18c   : > { %v2961_v41 = vadd.f32 %v1940_v24, %v1293_v22  ;;  %v2791_v42 = vpop.f32.mrb[6].mxu0  ;;  %2877 = vmatprep.subr.bf16.mxu1 %v2876_v30 }
 0x18d   : > { %v2962_v7 = vadd.f32 %v2791_v42, %v2701_v56  ;;  %v1943_v59 = vpop.f32.mrb[7].mxu0  ;;  %2879 = vmatpush3.bf16.msra.mxu1 %v2876_v30  ;;  %v2016_v58 = vadd.f32 %v2960_v11, %v2512_v49 }
 0x18e   : > { %v2963_v13 = vadd.f32 %v1943_v59, %v1296_v8  ;;  %2881 = vmatprep.subr.bf16.mxu1 %v2880_v34  ;;  %v2014_v3 = vadd.f32 %v2961_v41, %v2512_v49 }
 0x18f   : > { %v2017_v18 = vadd.f32 %v2962_v7, %v2512_v49 }
 0x190   : > { %v2015_v2 = vadd.f32 %v2963_v13, %v2512_v49 }
 0x191   : > { %2883 = vmatpush3.bf16.msra.mxu1 %v2880_v34  ;;  %v2888_v63 = vpack.c.bf16 %v2017_v18, %v2016_v58 }
 0x192   : > { %v2794_v62 = vpop.f32.mrb[8].mxu0  ;;  %v2884_v47 = vpack.c.bf16 %v2015_v2, %v2014_v3 }
 0x193   : > { %v2964_v0 = vadd.f32 %v2794_v62, %v2704_v10  ;;  %v1956_v51 = vpop.f32.mrb[9].mxu0 }
 0x194   : > { %v2965_v15 = vadd.f32 %v1956_v51, %v1309_v48  ;;  %v2795_v60 = vpop.f32.mrb[10].mxu0  ;;  %2885 = vmatprep.subr.bf16.mxu1 %v2884_v47 }
 0x195   : > { %v2966_v17 = vadd.f32 %v2795_v60, %v2705_v53  ;;  %v1959_v44 = vpop.f32.mrb[11].mxu0  ;;  %2887 = vmatpush3.bf16.msra.mxu1 %v2884_v47  ;;  %v2020_v28 = vadd.f32 %v2964_v0, %v2512_v49 }
 0x196   : > { %v2967_v9 = vadd.f32 %v1959_v44, %v1312_v25  ;;  %2889 = vmatprep.subr.bf16.mxu1 %v2888_v63  ;;  %v2018_v14 = vadd.f32 %v2965_v15, %v2512_v49 }
 0x197   : > { %v2021_v39 = vadd.f32 %v2966_v17, %v2512_v49 }
 0x198   : > { %v2019_v29 = vadd.f32 %v2967_v9, %v2512_v49 }
 0x199   : > { %2891 = vmatpush3.bf16.msra.mxu1 %v2888_v63  ;;  %v2896_v37 = vpack.c.bf16 %v2021_v39, %v2020_v28 }
 0x19a   : > { %v2798_v50 = vpop.f32.mrb[12].mxu0  ;;  %v2892_v38 = vpack.c.bf16 %v2019_v29, %v2018_v14 }
 0x19b   : > { %v2968_v22 = vadd.f32 %v2798_v50, %v2708_v35  ;;  %v1972_v56 = vpop.f32.mrb[13].mxu0  ;;  %v2028_v35 = vld [vmem:[%s3985_s5 + $0x10] sm:$0xff] }
 0x19c   : > { %v2969_v8 = vadd.f32 %v1972_v56, %v1325_v21  ;;  %v2799_v10 = vpop.f32.mrb[14].mxu0  ;;  %2893 = vmatprep.subr.bf16.mxu1 %v2892_v38  ;;  %v2029_v21 = vld [vmem:[%s3985_s5 + $0x18] sm:$0xff] }
 0x19d   : > { %v2970_v48 = vadd.f32 %v2799_v10, %v2709_v54  ;;  %v1975_v26 = vpop.f32.mrb[15].mxu0  ;;  %2895 = vmatpush3.bf16.msra.mxu1 %v2892_v38  ;;  %v2024_v25 = vadd.f32 %v2968_v22, %v2512_v49 }
 0x19e   : > { %v2971_v53 = vadd.f32 %v1975_v26, %v1328_v19  ;;  %2897 = vmatprep.subr.bf16.mxu1 %v2896_v37  ;;  %v2022_v43 = vadd.f32 %v2969_v8, %v2512_v49 }
 0x19f   : > { %v2025_v32 = vadd.f32 %v2970_v48, %v2512_v49 }
 0x1a0   : > { %v2023_v55 = vadd.f32 %v2971_v53, %v2512_v49 }
 0x1a1   : > { %2899 = vmatpush3.bf16.msra.mxu1 %v2896_v37  ;;  %v2904_v45 = vpack.c.bf16 %v2025_v32, %v2024_v25 }
 0x1a2   : > { %v2900_v33 = vpack.c.bf16 %v2023_v55, %v2022_v43 }
 0x1a4   : > { %2901 = vmatprep.subr.bf16.mxu1 %v2900_v33 }
 0x1a5   : > { %2903 = vmatpush3.bf16.msra.mxu1 %v2900_v33 }
 0x1a6   : > { %2905 = vmatprep.subr.bf16.mxu1 %v2904_v45 }
 0x1a9   : > { %2907 = vmatpush3.bf16.msra.mxu1 %v2904_v45 }
 0x1aa   : > { %2940 = vmatprep.subr.bf16.mxu1 %v3871_v46 }
 0x1ac   : > { %2833 = vmatmul.mubr.f32.vlgmr.msra.gmra.mrb[16].mxu1 %v3920_v61 }
 0x1ad   : > { %2948 = vmatpush3.bf16.msra.mxu1 %v3871_v46  ;;  %2835 = vmatprep.mubr.f32.mxu1 %v2028_v35  ;;  %v2872_v46 = vpop.f32.mrb[16].mxu0 }
 0x1ae   : > { %2941 = vmatprep.subr.bf16.mxu1 %v3877_v57  ;;  %2205 = vst.msk [vmem:[%s467_s22 + $0x8] sm:$0xff] %vm776_vm6, %v2872_v46 }
 0x1b0   : > { %2836 = vmatmul.mubr.f32.gmra.mrb[18].mxu1 %v2029_v21 }
 0x1b1   : > { %2949 = vmatpush3.bf16.msra.mxu1 %v3877_v57  ;;  %2873 = vmatprep.mubr.f32.mxu1 %v2028_v35  ;;  %v2185_v57 = vpop.f32.mrb[17].mxu0 }
 0x1b2   : > { %2942 = vmatprep.subr.bf16.mxu1 %v3883_v52  ;;  %2204 = vst.msk [vmem:[%s467_s22] sm:$0xff] %vm776_vm6, %v2185_v57 }
 0x1b5   : > { %2950 = vmatpush3.bf16.msra.mxu1 %v3883_v52 }
 0x1b6   : > { %2943 = vmatprep.subr.bf16.mxu1 %v3889_v4 }
 0x1b9   : > { %2951 = vmatpush3.bf16.msra.mxu1 %v3889_v4 }
 0x1ba   : > { %2944 = vmatprep.subr.bf16.mxu1 %v3895_v5 }
 0x1bd   : > { %2952 = vmatpush3.bf16.msra.mxu1 %v3895_v5 }
 0x1be   : > { %2945 = vmatprep.subr.bf16.mxu1 %v3901_v6 }
 0x1c1   : > { %2953 = vmatpush3.bf16.msra.mxu1 %v3901_v6 }
 0x1c2   : > { %2946 = vmatprep.subr.bf16.mxu1 %v3907_v27 }
 0x1c5   : > { %2954 = vmatpush3.bf16.msra.mxu1 %v3907_v27 }
 0x1c6   : > { %2947 = vmatprep.subr.bf16.mxu1 %v3913_v40 }
 0x1c9   : > { %2955 = vmatpush3.bf16.msra.mxu1 %v3913_v40 }
 0x1cc   : > { %2874 = vmatmul.mubr.f32.vlgmr.msra.gmra.mrb[20].mxu1 %v2029_v21 }
 0x27f   : > { %v2834_v52 = vpop.f32.mrb[16].mxu1 }
 0x280   : > { %2116 = vst.msk [vmem:[%s457_s11 + $0x8] sm:$0xff] %vm776_vm6, %v2834_v52  ;;  %v2096_v4 = vpop.f32.mrb[17].mxu1 }
 0x281   : > { %2115 = vst.msk [vmem:[%s457_s11] sm:$0xff] %vm776_vm6, %v2096_v4 }
 0x283   : > { %v2837_v5 = vpop.f32.mrb[18].mxu1 }
 0x284   : > { %2118 = vst.msk [vmem:[%s457_s11 + $0x18] sm:$0xff] %vm776_vm6, %v2837_v5  ;;  %v2106_v6 = vpop.f32.mrb[19].mxu1 }
 0x285   : > { %2117 = vst.msk [vmem:[%s457_s11 + $0x10] sm:$0xff] %vm776_vm6, %v2106_v6 }
 0x29f   : > { %v2875_v27 = vpop.f32.mrb[20].mxu1 }
 0x2a0   : > { %2207 = vst.msk [vmem:[%s467_s22 + $0x18] sm:$0xff] %vm776_vm6, %v2875_v27  ;;  %v2195_v40 = vpop.f32.mrb[21].mxu1 }
 0x2a1   : > { %2206 = vst.msk [vmem:[%s467_s22 + $0x10] sm:$0xff] %vm776_vm6, %v2195_v40 }
 0x2a2 PF: > { %s18_s28 = sadd.s32 1, %s3183_s28   ;;  %s3999_s24 = smov %s3175_s26 }
 0x2a3   : > { %p15_p13 = scmp.ge.s32.totalorder %s18_s28, 6   ;;  %s4000_s25 = smov %s3179_s27 }
 0x2a4   : > { %s4001_s26 = smov %s4004_s29  ;;  %s4002_s27 = smov %s4008_s30 }
 0x2a5   :  { %17 = sbr.rel (!%p15_p13) target bundleno = 3 (0x3), region = 92 }

// kernel: style_encoder_forward.9
= control target key start
LH: loop header
LB: loop body
LE: loop exit
PB: predicated region body
PF: predicated region fallthrough
CT: control target
= control target key end

     0   :  { %s2411_s24 = smov 0   ;;  %s2413_s1 = smov 0   ;;  %s2768_s0 = inlined_call_operand.vmem [shape: f32[2,8,8,32], index: 0, kind: input, shape index: {}, may-alias: {0,1,2}]   ;;  %s2769_s1 = inlined_call_operand.vmem [shape: f32[2,8,8,32], index: 1, kind: input, shape index: {}, may-alias: {0,1,2}]   ;;  %s2770_s2 = inlined_call_operand.vmem [shape: f32[2,8,8,32], index: 2, kind: input, shape index: {}, may-alias: {0,1,2}]   ;;  %s2771_s3 = inlined_call_operand.vmem [shape: bf16[3,3,32,32], index: 3, kind: input, shape index: {}]   ;;  %s2772_s4 = inlined_call_operand.vmem [shape: f32[1,32], index: 4, kind: input, shape index: {}]   ;;  %s2773_s5 = inlined_call_operand.vmem [shape: f32[16,64], index: 5, kind: input, shape index: {}]   ;;  %s2774_s6 = inlined_call_operand.vmem [shape: f32[2,16,32], index: 6, kind: output, shape index: {0}]   ;;  %s2775_s7 = inlined_call_operand.vmem [shape: f32[2,16,32], index: 7, kind: output, shape index: {1}]  }
   0x1   :  { %s2415_s2 = smov 0  }
   0x2 LB: > { %s30_s25 = sadd.s32 1, %s2364_s1  ;;  %p1909_p0 = scmp.ge.s32.totalorder %s2368_s2, 1  ;;  %s2368_s2 = sphi %s2415_s2, %s18_s2   ;;  %s2364_s1 = sphi %s2413_s1, %s2777_s1   ;;  %s2360_s24 = sphi %s2411_s24, %s2776_s24  }
   0x3   : > { %p32_p1 = scmp.ge.s32.totalorder %s30_s25, 2  ;;  %p325_p2 = scmp.lt.s32.totalorder %s2368_s2, 3 }
   0x5   : > { %s2779_s25 = smov (%p32_p1, %s30_s25), 0  ;;  %p326_p3 = pnand %p1909_p0, %p325_p2 }
   0x6   : > { %v2328_v0 = vld [vmem:[%s2771_s3 + $0x40] sm:$0xff] (!%p326_p3)   ;;  %p399_p4 = scmp.lt.s32.totalorder (!%p326_p3), %s2360_s24, 1  ;;  %v2329_v1 = vld [vmem:[%s2771_s3 + $0x10] sm:$0xff] (!%p326_p3)   ;;  %v2330_v2 = vld [vmem:[%s2771_s3 + $0x48] sm:$0xff] (!%p326_p3)   ;;  %v2370_v4 = vmov (!%p326_p3), 0.0   ;;  %vm537_vm0 = vcmask (!%p326_p3), 1040384  }
   0x7   : > { %329 = sbr.rel (%p326_p3) target bundleno = 568 (0x238), region = 44  ;;  %2109 = vmatprep.subr.bf16.mxu0 (!%p326_p3), %v2328_v0  ;;  %2061 = vmatprep.subr.bf16.mxu1 (!%p326_p3), %v2329_v1  ;;  %v2331_v3 = vld [vmem:[%s2771_s3 + $0x18] sm:$0xff] (!%p326_p3)   ;;  %v517_v5 = vrot.slane (!%p326_p3), %v2370_v4, 7  ;;  %v2452_v6 = vld [vmem:[%s2771_s3 + $0x50] sm:$0xff] (!%p326_p3)   ;;  %vm614_vm4 = vcmask (!%p326_p3), 1046528   ;;  %v2491_v21 = vld [vmem:[%s2771_s3] sm:$0xff] (!%p326_p3)  }
   0x8   : > { %2110 = vmatpush3.bf16.msra.mxu0 (!%p326_p3), %v2328_v0  ;;  %2062 = vmatpush3.bf16.msra.mxu1 (!%p326_p3), %v2329_v1  ;;  %vm663_vm6 = vcmask (!%p326_p3), 261120   ;;  %vm830_vm11 = vcmask (!%p326_p3), 1045504   ;;  %vm1571_vm12 = vcmask (!%p326_p3), 523264  }
   0x9   : > { %2111 = vmatprep.subr.bf16.mxu0 (!%p326_p3), %v2330_v2  ;;  %2063 = vmatprep.subr.bf16.mxu1 (!%p326_p3), %v2331_v3  ;;  %v2464_v10 = vsel (!%p326_p3), %vm537_vm0, 0.0, %v517_v5  ;;  %v2467_v11 = vsel (!%p326_p3), %vm537_vm0, %v517_v5, 0.0  ;;  %v2333_v5 = vld [vmem:[%s2771_s3 + $0x58] sm:$0xff] (!%p326_p3)  }
   0xa   : > { %v615_v18 = vrot.slane (!%p326_p3), %v2464_v10, 1  ;;  %v616_v19 = vrot.slane (!%p326_p3), %v2467_v11, 1 }
   0xc   : > { %2112 = vmatpush3.bf16.msra.mxu0 (!%p326_p3), %v2330_v2  ;;  %2064 = vmatpush3.bf16.msra.mxu1 (!%p326_p3), %v2331_v3  ;;  %v2512_v33 = vsel (!%p326_p3), %vm614_vm4, %v615_v18, %v616_v19  ;;  %v2335_v18 = vld [vmem:[%s2771_s3 + $0x8] sm:$0xff] (!%p326_p3)  }
   0xd   : > { %2121 = vmatprep.subr.bf16.mxu0 (!%p326_p3), %v2452_v6  ;;  %2073 = vmatprep.subr.bf16.mxu1 (!%p326_p3), %v2491_v21 }
   0xe   : > { %s2781_s24 = smov (!%p399_p4, %s2360_s24), 1 }
   0xf   : > { %s1981_s11 = sshll.u32 %s2781_s24, 6  ;;  %s1985_s30 = sshll.u32 %s2781_s24, 4 }
  0x10   : > { %s2447_s14 = scalar_lea.vmem %s2768_s0, %s1981_s11  ;;  %s448_s10 = scalar_lea.vmem %s2774_s6, %s1985_s30 }
  0x11   : > { %v2455_v7 = vld [vmem:[%s2447_s14] sm:$0xff]  ;;  %v2458_v8 = vld [vmem:[%s2447_s14 + $0x30] sm:$0xff]  ;;  %v2461_v9 = vld [vmem:[%s2447_s14 + $0x38] sm:$0xff]  ;;  %s458_s13 = scalar_lea.vmem %s2775_s7, %s1985_s30 }
  0x12   : > { %vm478_vm1 = vcmp.ge.f32.partialorder %v2455_v7, 0.0  ;;  %vm484_vm2 = vcmp.ge.f32.partialorder %v2458_v8, 0.0  ;;  %vm485_vm3 = vcmp.ge.f32.partialorder %v2461_v9, 0.0  ;;  %v488_v12 = vmul.f32 0.2, %v2455_v7  ;;  %v2474_v13 = vld [vmem:[%s2447_s14 + $0x8] sm:$0xff] }
  0x13   : > { %v494_v14 = vmul.f32 0.2, %v2458_v8  ;;  %v495_v15 = vmul.f32 0.2, %v2461_v9  ;;  %v2479_v16 = vld [vmem:[%s2447_s14 + $0x10] sm:$0xff]  ;;  %v2486_v20 = vld [vmem:[%s2447_s14 + $0x18] sm:$0xff] }
  0x14   : > { %v498_v17 = vsel %vm478_vm1, %v2455_v7, %v488_v12  ;;  %v489_v25 = vmul.f32 0.2, %v2474_v13  ;;  %vm479_vm5 = vcmp.ge.f32.partialorder %v2474_v13, 0.0  ;;  %v490_v28 = vmul.f32 0.2, %v2479_v16  ;;  %v2499_v29 = vld [vmem:[%s2447_s14 + $0x20] sm:$0xff] }
  0x15   : > { %v504_v22 = vsel %vm484_vm2, %v2458_v8, %v494_v14  ;;  %v505_v23 = vsel %vm485_vm3, %v2461_v9, %v495_v15  ;;  %v518_v24 = vrot.slane %v498_v17, 7  ;;  %v491_v32 = vmul.f32 0.2, %v2486_v20  ;;  %v2562_v1 = vld [vmem:[%s2447_s14 + $0x28] sm:$0xff] }
  0x16   : > { %v524_v26 = vrot.slane %v504_v22, 7  ;;  %v525_v27 = vrot.slane %v505_v23, 7  ;;  %vm480_vm7 = vcmp.ge.f32.partialorder %v2479_v16, 0.0  ;;  %vm481_vm8 = vcmp.ge.f32.partialorder %v2486_v20, 0.0 }
  0x17   : > { %v2503_v30 = vsel %vm537_vm0, 0.0, %v518_v24  ;;  %v2506_v31 = vsel %vm537_vm0, %v518_v24, 0.0  ;;  %v499_v36 = vsel %vm479_vm5, %v2474_v13, %v489_v25  ;;  %vm482_vm9 = vcmp.ge.f32.partialorder %v2499_v29, 0.0 }
  0x18   : > { %v618_v34 = vrot.slane %v2503_v30, 1  ;;  %v619_v35 = vrot.slane %v2506_v31, 1  ;;  %v2518_v37 = vsel %vm537_vm0, 0.0, %v524_v26  ;;  %v2521_v38 = vsel %vm537_vm0, 0.0, %v525_v27 }
  0x19   : > { %v2524_v39 = vsel %vm537_vm0, %v524_v26, 0.0  ;;  %v500_v41 = vsel %vm480_vm7, %v2479_v16, %v490_v28  ;;  %v501_v42 = vsel %vm481_vm8, %v2486_v20, %v491_v32  ;;  %v519_v44 = vrot.slane %v499_v36, 7  ;;  %v2336_v36 = vld [vmem:[%s2771_s3 + $0x60] sm:$0xff]  }
  0x1a   : > { %v620_v40 = vsel %vm614_vm4, %v618_v34, %v619_v35  ;;  %v520_v45 = vrot.slane %v500_v41, 7  ;;  %v2532_v46 = vsel %vm537_vm0, %v525_v27, 0.0  ;;  %v521_v47 = vrot.slane %v501_v42, 7 }
  0x1b   : > { %v647_v43 = vpack.c.bf16 %v620_v40, %v2512_v33  ;;  %v492_v48 = vmul.f32 0.2, %v2499_v29  ;;  %v2537_v49 = vsel %vm537_vm0, 0.0, %v519_v44  ;;  %v550_v51 = vsel %vm537_vm0, %v519_v44, 0.0 }
  0x1c   : > { %v2540_v50 = vsel %vm537_vm0, 0.0, %v520_v45  ;;  %v2544_v52 = vsel %vm537_vm0, %v520_v45, 0.0  ;;  %v636_v53 = vrot.slane %v2518_v37, 1  ;;  %v2548_v54 = vsel %vm537_vm0, 0.0, %v521_v47 }
  0x1d   : > { %2065 = vmatprep.mubr.msk.bf16.mxu1 %vm663_vm6, %v647_v43  ;;  %v2551_v55 = vsel %vm537_vm0, %v521_v47, 0.0  ;;  %v621_v56 = vrot.slane %v2537_v49, 1  ;;  %v622_v57 = vrot.slane %v550_v51, 1  ;;  %v624_v58 = vrot.slane %v2540_v50, 1 }
  0x1e   : > { %v625_v59 = vrot.slane %v2544_v52, 1  ;;  %v627_v60 = vrot.slane %v2548_v54, 1  ;;  %v637_v61 = vrot.slane %v2524_v39, 1  ;;  %v835_v62 = vrot.slane %v2506_v31, 2 }
  0x1f   : > { %v1067_v63 = vrot.slane %v2521_v38, 1  ;;  %v628_v0 = vrot.slane %v2551_v55, 1  ;;  %v623_v2 = vsel %vm614_vm4, %v621_v56, %v622_v57  ;;  %v502_v4 = vsel %vm482_vm9, %v2499_v29, %v492_v48 }
  0x20   : > { %v626_v3 = vsel %vm614_vm4, %v624_v58, %v625_v59  ;;  %v1071_v15 = vpack.c.bf16 %v623_v2, %v620_v40  ;;  %v522_v17 = vrot.slane %v502_v4, 7  ;;  %v1068_v19 = vrot.slane %v2532_v46, 1 }
  0x21   : > { %v629_v12 = vsel %vm614_vm4, %v627_v60, %v628_v0  ;;  %v2573_v14 = vpack.c.bf16 %v626_v3, %v623_v2  ;;  %vm483_vm10 = vcmp.ge.f32.partialorder %v2562_v1, 0.0  ;;  %v493_v23 = vmul.f32 0.2, %v2562_v1 }
  0x22   : > { %v1072_v22 = vpack.c.bf16 %v629_v12, %v626_v3  ;;  %v838_v24 = vrot.slane %v550_v51, 2  ;;  %2113 = vmatprep.mubr.msk.bf16.mxu0 %vm663_vm6, %v1071_v15  ;;  %v2585_v25 = vsel %vm537_vm0, 0.0, %v522_v17  ;;  %v553_v26 = vsel %vm537_vm0, %v522_v17, 0.0 }
  0x23   : > { %2066 = vmatmul.mubr.msk.bf16.vlgmr.msra.gmra.mrb[0].mxu1 %vm663_vm6, %v2573_v14  ;;  %v834_v27 = vrot.slane %v2503_v30, 2  ;;  %v630_v28 = vrot.slane %v2585_v25, 1  ;;  %v631_v31 = vrot.slane %v553_v26, 1  ;;  %v503_v32 = vsel %vm483_vm10, %v2562_v1, %v493_v23 }
  0x24   : > { %2114 = vmatmul.mubr.msk.bf16.vlgmr.msra.gmra.mrb[0].mxu0 %vm663_vm6, %v1072_v22  ;;  %2074 = vmatpush3.bf16.msra.mxu1 %v2491_v21  ;;  %v837_v34 = vrot.slane %v2537_v49, 2  ;;  %v523_v35 = vrot.slane %v503_v32, 7  ;;  %v638_v40 = vsel %vm614_vm4, %v636_v53, %v637_v61  ;;  %v2600_v41 = vsel %vm614_vm4, %v1067_v63, %v1068_v19  ;;  %v2338_v21 = vld [vmem:[%s2771_s3 + $0x20] sm:$0xff]  }
  0x25   : > { %2122 = vmatpush3.bf16.msra.mxu0 %v2452_v6  ;;  %2075 = vmatprep.subr.bf16.mxu1 %v2335_v18  ;;  %v632_v42 = vsel %vm614_vm4, %v630_v28, %v631_v31  ;;  %v2614_v48 = vsel %vm830_vm11, %v834_v27, %v835_v62  ;;  %v1074_v53 = vpack.c.bf16 %v2600_v41, %v638_v40  ;;  %v841_v56 = vrot.slane %v2544_v52, 2 }
  0x26   : > { %2123 = vmatprep.subr.bf16.mxu0 %v2333_v5  ;;  %v2606_v6 = vpack.c.bf16 %v632_v42, %v629_v12  ;;  %v2609_v43 = vsel %vm537_vm0, 0.0, %v523_v35  ;;  %v554_v44 = vsel %vm537_vm0, %v523_v35, 0.0  ;;  %v2617_v51 = vsel %vm830_vm11, %v837_v34, %v838_v24  ;;  %v2340_v35 = vld [vmem:[%s2771_s3 + $0x70] sm:$0xff]  }
  0x27   : > { %v633_v45 = vrot.slane %v2609_v43, 1  ;;  %v634_v47 = vrot.slane %v554_v44, 1  ;;  %v844_v57 = vrot.slane %v2551_v55, 2  ;;  %v594_v59 = vpack.c.bf16 %v2503_v30, %v2464_v10 }
  0x28   : > { %2076 = vmatpush3.bf16.msra.mxu1 %v2335_v18  ;;  %2069 = vmatprep.mubr.msk.bf16.mxu1 %vm663_vm6, %v2606_v6  ;;  %v840_v60 = vrot.slane %v2540_v50, 2  ;;  %v843_v52 = vrot.slane %v2548_v54, 2  ;;  %v1176_v63 = vpack.c.bf16 %v2617_v51, %v2614_v48  ;;  %v846_v0 = vrot.slane %v2585_v25, 2 }
  0x29   : > { %2124 = vmatpush3.bf16.msra.mxu0 %v2333_v5  ;;  %v635_v58 = vsel %vm614_vm4, %v633_v45, %v634_v47  ;;  %2085 = vmatprep.subr.bf16.mxu1 %v2338_v21  ;;  %v847_v55 = vrot.slane %v553_v26, 2  ;;  %v849_v2 = vrot.slane %v2609_v43, 2  ;;  %v850_v3 = vrot.slane %v554_v44, 2  ;;  %v2341_v47 = vld [vmem:[%s2771_s3 + $0x78] sm:$0xff]  }
  0x2a   : > { %2133 = vmatprep.subr.bf16.mxu0 %v2336_v36  ;;  %v1073_v61 = vpack.c.bf16 %v635_v58, %v632_v42  ;;  %v2628_v62 = vpack.c.bf16 %v638_v40, %v635_v58  ;;  %v842_v4 = vsel %vm830_vm11, %v840_v60, %v841_v56  ;;  %v845_v5 = vsel %vm830_vm11, %v843_v52, %v844_v57  ;;  %v1974_v52 = vld [vmem:[%s2772_s4] ss:$0 sm:$0xff] }
  0x2b   : > { %v848_v12 = vsel %vm830_vm11, %v846_v0, %v847_v55  ;;  %v851_v15 = vsel %vm830_vm11, %v849_v2, %v850_v3  ;;  %v832_v17 = vrot.slane %v2467_v11, 2  ;;  %v595_v18 = vpack.c.bf16 %v2540_v50, %v2537_v49  ;;  %v2337_v11 = vld [vmem:[%s2771_s3 + $0x68] sm:$0xff]  }
  0x2c   : > { %2117 = vmatprep.mubr.msk.bf16.mxu0 %vm663_vm6, %v1073_v61  ;;  %2070 = vmatmul.mubr.msk.bf16.gmra.mrb[4].mxu1 %vm663_vm6, %v2628_v62  ;;  %v1173_v19 = vrot.slane %v2532_v46, 2  ;;  %v1177_v22 = vpack.c.bf16 %v845_v5, %v842_v4  ;;  %v596_v23 = vpack.c.bf16 %v2585_v25, %v2548_v54  ;;  %v852_v24 = vrot.slane %v2518_v37, 2  ;;  %v2339_v46 = vld [vmem:[%s2771_s3 + $0x28] sm:$0xff]  }
  0x2d   : > { %2118 = vmatmul.mubr.msk.bf16.gmra.mrb[4].mxu0 %vm663_vm6, %v1074_v53  ;;  %2077 = vmatprep.mubr.msk.bf16.mxu1 %vm663_vm6, %v594_v59  ;;  %v1178_v26 = vpack.c.bf16 %v851_v15, %v848_v12  ;;  %v853_v27 = vrot.slane %v2524_v39, 2  ;;  %v1172_v28 = vrot.slane %v2521_v38, 2  ;;  %v831_v31 = vrot.slane %v2464_v10, 2 }
  0x2e   : > { %2125 = vmatprep.mubr.msk.bf16.mxu0 %vm663_vm6, %v1176_v63  ;;  %v597_v40 = vpack.c.bf16 %v2518_v37, %v2609_v43  ;;  %v865_v45 = vpack.c.bf16 %v848_v12, %v845_v5  ;;  %v1277_v56 = vpack.c.bf16 %v2464_v10, %v2521_v38  ;;  %v964_v57 = vpack.c.bf16 %v2537_v49, %v2503_v30  ;;  %v2345_v30 = vld [vmem:[%s2771_s3 + $0x88] sm:$0xff]  }
  0x2f   : > { %v854_v39 = vsel %vm830_vm11, %v852_v24, %v853_v27  ;;  %v1174_v32 = vsel %vm830_vm11, %v1172_v28, %v1173_v19  ;;  %v833_v34 = vsel %vm830_vm11, %v831_v31, %v832_v17  ;;  %v965_v58 = vpack.c.bf16 %v2548_v54, %v2540_v50 }
  0x30   : > { %v1179_v42 = vpack.c.bf16 %v1174_v32, %v854_v39  ;;  %v863_v44 = vpack.c.bf16 %v2614_v48, %v833_v34  ;;  %v2343_v48 = vld [vmem:[%s2771_s3 + $0x38] sm:$0xff]   ;;  %v866_v53 = vpack.c.bf16 %v854_v39, %v851_v15  ;;  %v966_v10 = vpack.c.bf16 %v2609_v43, %v2585_v25 }
  0x31   : > { %v967_v49 = vpack.c.bf16 %v2521_v38, %v2518_v37  ;;  %v1372_v50 = vpack.c.bf16 %v2512_v33, %v2600_v41  ;;  %v1465_v54 = vpack.c.bf16 %v833_v34, %v1174_v32  ;;  %v1569_v37 = vld [vmem:[%s2773_s5] sm:$0xff] }
  0x34   : > { %2078 = vmatmul.mubr.msk.bf16.vlgmr.msra.gmra.mrb[0].mxu1 %vm663_vm6, %v595_v18 }
  0x35   : > { %2126 = vmatmul.mubr.msk.bf16.vlgmr.msra.gmra.mrb[0].mxu0 %vm663_vm6, %v1177_v22  ;;  %2081 = vmatprep.mubr.msk.bf16.mxu1 %vm663_vm6, %v596_v23 }
  0x36   : > { %2134 = vmatpush3.bf16.msra.mxu0 %v2336_v36  ;;  %2129 = vmatprep.mubr.msk.bf16.mxu0 %vm663_vm6, %v1178_v26  ;;  %v2342_v36 = vld [vmem:[%s2771_s3 + $0x30] sm:$0xff]  }
  0x37   : > { %2135 = vmatprep.subr.bf16.mxu0 %v2337_v11  ;;  %2086 = vmatpush3.bf16.msra.mxu1 %v2338_v21  ;;  %v864_v21 = vpack.c.bf16 %v842_v4, %v2617_v51  ;;  %v2344_v51 = vld [vmem:[%s2771_s3 + $0x80] sm:$0xff]  }
  0x38   : > { %2087 = vmatprep.subr.bf16.mxu1 %v2339_v46 }
  0x3a   : > { %2136 = vmatpush3.bf16.msra.mxu0 %v2337_v11 }
  0x3b   : > { %2088 = vmatpush3.bf16.msra.mxu1 %v2339_v46  ;;  %2145 = vmatprep.subr.bf16.mxu0 %v2340_v35 }
  0x3c   : > { %2082 = vmatmul.mubr.msk.bf16.gmra.mrb[4].mxu1 %vm663_vm6, %v597_v40  ;;  %2097 = vmatprep.subr.bf16.mxu1 %v2342_v36 }
  0x3d   : > { %2130 = vmatmul.mubr.msk.bf16.gmra.mrb[4].mxu0 %vm663_vm6, %v1179_v42  ;;  %2089 = vmatprep.mubr.msk.bf16.mxu1 %vm663_vm6, %v863_v44  ;;  %v2227_v42 = vpack.c.bf16 %v2486_v20, %v2479_v16  ;;  %v2231_v44 = vpack.c.bf16 %v2562_v1, %v2499_v29 }
  0x3e   : > { %2137 = vmatprep.mubr.msk.bf16.mxu0 %vm663_vm6, %v595_v18 }
  0x44   : > { %2090 = vmatmul.mubr.msk.bf16.vlgmr.msra.gmra.mrb[0].mxu1 %vm663_vm6, %v864_v21 }
  0x45   : > { %2138 = vmatmul.mubr.msk.bf16.vlgmr.msra.gmra.mrb[0].mxu0 %vm663_vm6, %v596_v23  ;;  %2093 = vmatprep.mubr.msk.bf16.mxu1 %vm663_vm6, %v865_v45 }
  0x46   : > { %2146 = vmatpush3.bf16.msra.mxu0 %v2340_v35  ;;  %2141 = vmatprep.mubr.msk.bf16.mxu0 %vm663_vm6, %v597_v40  ;;  %v2223_v40 = vpack.c.bf16 %v2474_v13, %v2455_v7  ;;  %v2235_v7 = vpack.c.bf16 %v2461_v9, %v2458_v8 }
  0x47   : > { %2147 = vmatprep.subr.bf16.mxu0 %v2341_v47  ;;  %2098 = vmatpush3.bf16.msra.mxu1 %v2342_v36  ;;  %v1570_v36 = vld [vmem:[%s2773_s5 + $0x8] sm:$0xff] }
  0x48   : > { %2099 = vmatprep.subr.bf16.mxu1 %v2343_v48 }
  0x4a   : > { %2148 = vmatpush3.bf16.msra.mxu0 %v2341_v47 }
  0x4b   : > { %2100 = vmatpush3.bf16.msra.mxu1 %v2343_v48  ;;  %2157 = vmatprep.subr.bf16.mxu0 %v2344_v51 }
  0x4c   : > { %2094 = vmatmul.mubr.msk.bf16.gmra.mrb[4].mxu1 %vm663_vm6, %v866_v53 }
  0x4d   : > { %2142 = vmatmul.mubr.msk.bf16.gmra.mrb[4].mxu0 %vm663_vm6, %v1277_v56  ;;  %2101 = vmatprep.mubr.msk.bf16.mxu1 %vm663_vm6, %v964_v57 }
  0x4e   : > { %2149 = vmatprep.mubr.msk.bf16.mxu0 %vm663_vm6, %v2573_v14 }
  0x54   : > { %2102 = vmatmul.mubr.msk.bf16.vlgmr.msra.gmra.mrb[0].mxu1 %vm663_vm6, %v965_v58 }
  0x55   : > { %2150 = vmatmul.mubr.msk.bf16.vlgmr.msra.gmra.mrb[0].mxu0 %vm663_vm6, %v2606_v6  ;;  %2105 = vmatprep.mubr.msk.bf16.mxu1 %vm663_vm6, %v966_v10 }
  0x56   : > { %2158 = vmatpush3.bf16.msra.mxu0 %v2344_v51  ;;  %2153 = vmatprep.mubr.msk.bf16.mxu0 %vm663_vm6, %v2628_v62 }
  0x57   : > { %2159 = vmatprep.subr.bf16.mxu0 %v2345_v30 }
  0x5a   : > { %2160 = vmatpush3.bf16.msra.mxu0 %v2345_v30 }
  0x5c   : > { %2106 = vmatmul.mubr.msk.bf16.gmra.mrb[4].mxu1 %vm663_vm6, %v967_v49 }
  0x5d   : > { %2154 = vmatmul.mubr.msk.bf16.gmra.mrb[4].mxu0 %vm663_vm6, %v1372_v50  ;;  %2185 = vmatprep.mubr.msk.f32.mxu1 %vm1571_vm12, %v1569_v37 }
  0x5e   : > { %2161 = vmatprep.mubr.msk.bf16.mxu0 %vm663_vm6, %v864_v21 }
  0x65   : > { %2162 = vmatmul.mubr.msk.bf16.vlgmr.msra.gmra.mrb[0].mxu0 %vm663_vm6, %v865_v45 }
  0x66   : > { %2165 = vmatprep.mubr.msk.bf16.mxu0 %vm663_vm6, %v866_v53 }
  0x6d   : > { %2166 = vmatmul.mubr.msk.bf16.gmra.mrb[4].mxu0 %vm663_vm6, %v1465_v54 }
 0x127   : > { %v2103_v33 = vpop.f32.mrb[0].mxu1 }
 0x128   : > { %v1026_v38 = vpop.f32.mrb[1].mxu1 }
 0x129   : > { %v2104_v14 = vpop.f32.mrb[2].mxu1 }
 0x12a   : > { %v1029_v25 = vpop.f32.mrb[3].mxu1 }
 0x12f   : > { %v2107_v41 = vpop.f32.mrb[4].mxu1 }
 0x130   : > { %v1042_v6 = vpop.f32.mrb[5].mxu1 }
 0x131   : > { %v2108_v43 = vpop.f32.mrb[6].mxu1 }
 0x132   : > { %v1045_v59 = vpop.f32.mrb[7].mxu1 }
 0x138   : > { %v2163_v60 = vpop.f32.mrb[0].mxu0 }
 0x139   : > { %v2239_v61 = vadd.f32 %v2163_v60, %v2103_v33  ;;  %v1515_v62 = vpop.f32.mrb[1].mxu0 }
 0x13a   : > { %v2240_v63 = vadd.f32 %v1515_v62, %v1026_v38  ;;  %v2164_v0 = vpop.f32.mrb[2].mxu0 }
 0x13b   : > { %v2241_v55 = vadd.f32 %v2164_v0, %v2104_v14  ;;  %v1518_v2 = vpop.f32.mrb[3].mxu0  ;;  %v1563_v4 = vadd.f32 %v2239_v61, %v1974_v52 }
 0x13c   : > { %v2242_v3 = vadd.f32 %v1518_v2, %v1029_v25  ;;  %v1561_v12 = vadd.f32 %v2240_v63, %v1974_v52 }
 0x13d   : > { %v1564_v5 = vadd.f32 %v2241_v55, %v1974_v52 }
 0x13e   : > { %v1562_v15 = vadd.f32 %v2242_v3, %v1974_v52 }
 0x13f   : > { %v2211_v17 = vpack.c.bf16 %v1564_v5, %v1563_v4 }
 0x140   : > { %v2167_v18 = vpop.f32.mrb[4].mxu0  ;;  %v2207_v19 = vpack.c.bf16 %v1562_v15, %v1561_v12 }
 0x141   : > { %v2243_v22 = vadd.f32 %v2167_v18, %v2107_v41  ;;  %v1531_v23 = vpop.f32.mrb[5].mxu0 }
 0x142   : > { %v2244_v24 = vadd.f32 %v1531_v23, %v1042_v6  ;;  %v2168_v26 = vpop.f32.mrb[6].mxu0  ;;  %2208 = vmatprep.subr.bf16.mxu1 %v2207_v19 }
 0x143   : > { %v2245_v27 = vadd.f32 %v2168_v26, %v2108_v43  ;;  %v1534_v28 = vpop.f32.mrb[7].mxu0  ;;  %2210 = vmatpush3.bf16.msra.mxu1 %v2207_v19  ;;  %v1567_v11 = vadd.f32 %v2243_v22, %v1974_v52 }
 0x144   : > { %v2246_v31 = vadd.f32 %v1534_v28, %v1045_v59  ;;  %2212 = vmatprep.subr.bf16.mxu1 %v2211_v17  ;;  %v1565_v39 = vadd.f32 %v2244_v24, %v1974_v52 }
 0x145   : > { %v1568_v46 = vadd.f32 %v2245_v27, %v1974_v52 }
 0x146   : > { %v1566_v32 = vadd.f32 %v2246_v31, %v1974_v52 }
 0x147   : > { %2214 = vmatpush3.bf16.msra.mxu1 %v2211_v17  ;;  %v2219_v34 = vpack.c.bf16 %v1568_v46, %v1567_v11 }
 0x148   : > { %v2215_v35 = vpack.c.bf16 %v1566_v32, %v1565_v39 }
 0x14a   : > { %2216 = vmatprep.subr.bf16.mxu1 %v2215_v35 }
 0x14b   : > { %2218 = vmatpush3.bf16.msra.mxu1 %v2215_v35 }
 0x14c   : > { %2220 = vmatprep.subr.bf16.mxu1 %v2219_v34 }
 0x14f   : > { %2222 = vmatpush3.bf16.msra.mxu1 %v2219_v34 }
 0x150   : > { %2224 = vmatprep.subr.bf16.mxu1 %v2223_v40 }
 0x152   : > { %2186 = vmatmul.mubr.msk.f32.vlgmr.msra.gmra.mrb[8].mxu1 %vm1571_vm12, %v1570_v36 }
 0x153   : > { %2226 = vmatpush3.bf16.msra.mxu1 %v2223_v40  ;;  %2204 = vmatprep.mubr.msk.f32.mxu1 %vm1571_vm12, %v1569_v37 }
 0x154   : > { %2228 = vmatprep.subr.bf16.mxu1 %v2227_v42 }
 0x157   : > { %2230 = vmatpush3.bf16.msra.mxu1 %v2227_v42 }
 0x158   : > { %2232 = vmatprep.subr.bf16.mxu1 %v2231_v44 }
 0x15b   : > { %2234 = vmatpush3.bf16.msra.mxu1 %v2231_v44 }
 0x15c   : > { %2236 = vmatprep.subr.bf16.mxu1 %v2235_v7 }
 0x15f   : > { %2238 = vmatpush3.bf16.msra.mxu1 %v2235_v7 }
 0x162   : > { %2205 = vmatmul.mubr.msk.f32.vlgmr.msra.gmra.mrb[10].mxu1 %vm1571_vm12, %v1570_v36 }
 0x225   : > { %v2187_v13 = vpop.f32.mrb[8].mxu1 }
 0x226   : > { %1654 = vst.msk [vmem:[%s448_s10 + $0x8] sm:$0xff] %vm663_vm6, %v2187_v13  ;;  %v1644_v16 = vpop.f32.mrb[9].mxu1 }
 0x227   : > { %1653 = vst.msk [vmem:[%s448_s10] sm:$0xff] %vm663_vm6, %v1644_v16 }
 0x235   : > { %v2206_v8 = vpop.f32.mrb[10].mxu1 }
 0x236   : > { %1731 = vst.msk [vmem:[%s458_s13 + $0x8] sm:$0xff] %vm663_vm6, %v2206_v8  ;;  %v1721_v9 = vpop.f32.mrb[11].mxu1 }
 0x237   : > { %1730 = vst.msk [vmem:[%s458_s13] sm:$0xff] %vm663_vm6, %v1721_v9 }
 0x238 PF: > { %s18_s2 = sadd.s32 1, %s2368_s2   ;;  %s2776_s24 = smov %s2364_s1 }
 0x239   : > { %p15_p5 = scmp.ge.s32.totalorder %s18_s2, 4   ;;  %s2777_s1 = smov %s2779_s25 }
 0x23b   :  { %17 = sbr.rel (!%p15_p5) target bundleno = 2 (0x2), region = 92 }

// kernel: style_encoder_forward.10
= control target key start
LH: loop header
LB: loop body
LE: loop exit
PB: predicated region body
PF: predicated region fallthrough
CT: control target
= control target key end

     0   :  { %s1837_s24 = smov 0   ;;  %s1839_s1 = smov 0   ;;  %s2046_s0 = inlined_call_operand.vmem [shape: f32[2,4,4,32], index: 0, kind: input, shape index: {}, may-alias: {0,1,2}]   ;;  %s2047_s1 = inlined_call_operand.vmem [shape: f32[2,4,4,32], index: 1, kind: input, shape index: {}, may-alias: {0,1,2}]   ;;  %s2048_s2 = inlined_call_operand.vmem [shape: f32[2,4,4,32], index: 2, kind: input, shape index: {}, may-alias: {0,1,2}]   ;;  %s2049_s3 = inlined_call_operand.vmem [shape: bf16[3,3,32,64], index: 3, kind: input, shape index: {}]   ;;  %s2050_s4 = inlined_call_operand.vmem [shape: f32[1,64], index: 4, kind: input, shape index: {}]   ;;  %s2051_s5 = inlined_call_operand.vmem [shape: f32[2,4,4,32], index: 5, kind: input, shape index: {}]   ;;  %s2052_s6 = inlined_call_operand.vmem [shape: bf16[32,64], index: 6, kind: input, shape index: {}]   ;;  %s2053_s7 = inlined_call_operand.vmem [shape: f32[2,4,4,64], index: 7, kind: output, shape index: {}]  }
   0x1   :  { %s1841_s2 = smov 0  }
   0x2 LB: > { %s29_s25 = sadd.s32 1, %s1790_s1  ;;  %p1507_p0 = scmp.ge.s32.totalorder %s1794_s2, 1  ;;  %s1794_s2 = sphi %s1841_s2, %s17_s2   ;;  %s1790_s1 = sphi %s1839_s1, %s2055_s1   ;;  %s1786_s24 = sphi %s1837_s24, %s2054_s24  }
   0x3   : > { %p31_p1 = scmp.ge.s32.totalorder %s29_s25, 2  ;;  %p337_p2 = scmp.lt.s32.totalorder %s1794_s2, 3 }
   0x5   : > { %s2057_s25 = smov (%p31_p1, %s29_s25), 0  ;;  %p338_p3 = pnand %p1507_p0, %p337_p2 }
   0x6   : > { %v1752_v0 = vld [vmem:[%s2049_s3 + $0x10] sm:$0xff] (!%p338_p3)   ;;  %p411_p4 = scmp.lt.s32.totalorder (!%p338_p3), %s1786_s24, 1  ;;  %v1754_v2 = vld [vmem:[%s2049_s3 + $0x18] sm:$0xff] (!%p338_p3)   ;;  %v1796_v4 = vmov (!%p338_p3), 0.0   ;;  %vm521_vm0 = vcmask (!%p338_p3), 1040384   ;;  %vm528_vm1 = vcmask (!%p338_p3), 1044480  }
   0x7   : > { %341 = sbr.rel (%p338_p3) target bundleno = 302 (0x12e), region = 48  ;;  %v1753_v1 = vld [vmem:[%s2049_s3 + $0x50] sm:$0xff] (!%p338_p3)   ;;  %1607 = vmatprep.subr.bf16.mxu1 (!%p338_p3), %v1752_v0  ;;  %v1755_v3 = vld [vmem:[%s2049_s3 + $0x58] sm:$0xff] (!%p338_p3)   ;;  %v509_v5 = vrot.slane (!%p338_p3), %v1796_v4, 7  ;;  %v1872_v6 = vld [vmem:[%s2049_s3] sm:$0xff] (!%p338_p3)   ;;  %v1884_v18 = vrot.slane (!%p338_p3), %v1796_v4, 1 }
   0x8   : > { %1608 = vmatpush3.bf16.msra.mxu1 (!%p338_p3), %v1752_v0  ;;  %1647 = vmatprep.subr.bf16.mxu0 (!%p338_p3), %v1753_v1  ;;  %vm578_vm6 = vcmask (!%p338_p3), 1046528   ;;  %v1757_v21 = vld [vmem:[%s2049_s3 + $0x60] sm:$0xff] (!%p338_p3)   ;;  %vm606_vm7 = vcmask (!%p338_p3), 261120   ;;  %v731_v28 = vrot.slane (!%p338_p3), %v1796_v4, 2  ;;  %vm729_vm8 = vcmask (!%p338_p3), 1045504   ;;  %v1758_v51 = vld [vmem:[%s2049_s3 + $0x8] sm:$0xff] (!%p338_p3)  }
   0x9   : > { %1648 = vmatpush3.bf16.msra.mxu0 (!%p338_p3), %v1753_v1  ;;  %1609 = vmatprep.subr.bf16.mxu1 (!%p338_p3), %v1754_v2  ;;  %v522_v7 = vsel (!%p338_p3), %vm521_vm0, 0.0, %v509_v5  ;;  %v1759_v57 = vld [vmem:[%s2049_s3 + $0x68] sm:$0xff] (!%p338_p3)   ;;  %v1760_v61 = vld [vmem:[%s2049_s3 + $0x20] sm:$0xff] (!%p338_p3)   ;;  %v1761_v62 = vld [vmem:[%s2049_s3 + $0x70] sm:$0xff] (!%p338_p3)   ;;  %vm1271_vm9 = vcmask (!%p338_p3), 1043456   ;;  %vm1357_vm10 = vcmask (!%p338_p3), 519168  }
   0xa   : > { %1649 = vmatprep.subr.bf16.mxu0 (!%p338_p3), %v1755_v3  ;;  %v1880_v12 = vsel (!%p338_p3), %vm528_vm1, %v522_v7, 0.0  ;;  %v1762_v1 = vld [vmem:[%s2049_s3 + $0x28] sm:$0xff] (!%p338_p3)   ;;  %v1764_v4 = vld [vmem:[%s2049_s3 + $0x30] sm:$0xff] (!%p338_p3)  }
   0xb   : > { %v579_v17 = vrot.slane (!%p338_p3), %v1880_v12, 1  ;;  %v730_v60 = vrot.slane (!%p338_p3), %v1880_v12, 2 }
   0xc   : > { %1610 = vmatpush3.bf16.msra.mxu1 (!%p338_p3), %v1754_v2 }
   0xd   : > { %1650 = vmatpush3.bf16.msra.mxu0 (!%p338_p3), %v1755_v3  ;;  %1615 = vmatprep.subr.bf16.mxu1 (!%p338_p3), %v1872_v6  ;;  %v1893_v31 = vsel (!%p338_p3), %vm578_vm6, %v579_v17, %v1884_v18  ;;  %v732_v63 = vsel (!%p338_p3), %vm729_vm8, %v730_v60, %v731_v28  ;;  %v1763_v3 = vld [vmem:[%s2049_s3 + $0x78] sm:$0xff] (!%p338_p3)  }
   0xe   : > { %s2059_s24 = smov (!%p411_p4, %s1786_s24), 1  ;;  %1655 = vmatprep.subr.bf16.mxu0 %v1757_v21 }
   0xf   : > { %s1867_s11 = sshll.u32 %s2059_s24, 4 }
  0x10   : > { %s418_s16 = scalar_lea.vmem %s2046_s0, %s1867_s11  ;;  %s460_s22 = scalar_lea.vmem %s2051_s5, %s1867_s11 }
  0x11   : > { %v473_v8 = vld [vmem:[%s418_s16] sm:$0xf]  ;;  %v474_v9 = vld [vmem:[%s418_s16 + $0x4] sm:$0xf]  ;;  %v475_v10 = vld [vmem:[%s418_s16 + $0x8] sm:$0xf]  ;;  %s470_s12 = scalar_lea.vmem %s2053_s7, %s1867_s11 }
  0x12   : > { %v476_v11 = vld [vmem:[%s418_s16 + $0xc] sm:$0xf]  ;;  %vm486_vm2 = vcmp.ge.f32.partialorder %v473_v8, 0.0  ;;  %vm487_vm3 = vcmp.ge.f32.partialorder %v474_v9, 0.0  ;;  %vm488_vm4 = vcmp.ge.f32.partialorder %v475_v10, 0.0 }
  0x13   : > { %vm489_vm5 = vcmp.ge.f32.partialorder %v476_v11, 0.0  ;;  %v492_v13 = vmul.f32 0.2, %v473_v8  ;;  %v493_v14 = vmul.f32 0.2, %v474_v9 }
  0x14   : > { %v494_v15 = vmul.f32 0.2, %v475_v10  ;;  %v495_v16 = vmul.f32 0.2, %v476_v11 }
  0x15   : > { %v498_v19 = vsel %vm486_vm2, %v473_v8, %v492_v13  ;;  %v499_v20 = vsel %vm487_vm3, %v474_v9, %v493_v14  ;;  %v1768_v13 = vld [vmem:[%s2049_s3 + $0x40] sm:$0xff]  }
  0x16   : > { %v500_v22 = vsel %vm488_vm4, %v475_v10, %v494_v15  ;;  %v501_v23 = vsel %vm489_vm5, %v476_v11, %v495_v16  ;;  %v510_v24 = vrot.slane %v498_v19, 7  ;;  %v511_v25 = vrot.slane %v499_v20, 7  ;;  %v1766_v10 = vld [vmem:[%s2049_s3 + $0x38] sm:$0xff]   ;;  %v1769_v14 = vld [vmem:[%s2052_s6] sm:$0xff]  }
  0x17   : > { %v512_v26 = vrot.slane %v500_v22, 7  ;;  %v513_v27 = vrot.slane %v501_v23, 7  ;;  %v1267_v15 = vld [vmem:[%s460_s22] sm:$0xf]  ;;  %v1268_v16 = vld [vmem:[%s460_s22 + $0x4] sm:$0xf] }
  0x18   : > { %v523_v29 = vsel %vm521_vm0, 0.0, %v510_v24  ;;  %v524_v30 = vsel %vm521_vm0, 0.0, %v511_v25  ;;  %v1272_v19 = vsel %vm1271_vm9, %v1267_v15, 0.0  ;;  %v1273_v20 = vsel %vm1271_vm9, %v1268_v16, 0.0  ;;  %v1771_v24 = vld [vmem:[%s2052_s6 + $0x8] sm:$0xff]  }
  0x19   : > { %v525_v32 = vsel %vm521_vm0, 0.0, %v512_v26  ;;  %v526_v33 = vsel %vm521_vm0, 0.0, %v513_v27  ;;  %v1898_v34 = vsel %vm528_vm1, %v523_v29, 0.0  ;;  %v1901_v35 = vsel %vm528_vm1, %v524_v30, 0.0  ;;  %v1269_v25 = vld [vmem:[%s460_s22 + $0x8] sm:$0xf] }
  0x1a   : > { %v1904_v36 = vsel %vm528_vm1, %v525_v32, 0.0  ;;  %v1907_v37 = vsel %vm528_vm1, %v526_v33, 0.0  ;;  %v582_v38 = vrot.slane %v1898_v34, 1  ;;  %v584_v39 = vrot.slane %v1901_v35, 1  ;;  %v1270_v26 = vld [vmem:[%s460_s22 + $0xc] sm:$0xf] }
  0x1b   : > { %v586_v40 = vrot.slane %v1904_v36, 1  ;;  %v733_v41 = vrot.slane %v1898_v34, 2  ;;  %v735_v42 = vrot.slane %v1901_v35, 2  ;;  %v737_v45 = vrot.slane %v1904_v36, 2 }
  0x1c   : > { %v1916_v43 = vsel %vm578_vm6, %v582_v38, %v1884_v18  ;;  %v1920_v44 = vsel %vm578_vm6, %v584_v39, %v1884_v18  ;;  %v966_v46 = vrot.slane %v1907_v37, 2  ;;  %v571_v58 = vpack.c.bf16 %v1898_v34, %v1880_v12 }
  0x1d   : > { %v1926_v47 = vsel %vm578_vm6, %v586_v40, %v1884_v18  ;;  %v592_v48 = vpack.c.bf16 %v1916_v43, %v1893_v31  ;;  %v734_v50 = vsel %vm729_vm8, %v733_v41, %v731_v28  ;;  %v736_v52 = vsel %vm729_vm8, %v735_v42, %v731_v28 }
  0x1e   : > { %v593_v49 = vpack.c.bf16 %v1926_v47, %v1920_v44  ;;  %v738_v53 = vsel %vm729_vm8, %v737_v45, %v731_v28  ;;  %v1940_v54 = vsel %vm729_vm8, %v966_v46, %v731_v28  ;;  %v969_v55 = vpack.c.bf16 %v736_v52, %v734_v50 }
  0x1f   : > { %1611 = vmatprep.mubr.msk.bf16.mxu1 %vm606_vm7, %v592_v48  ;;  %v970_v56 = vpack.c.bf16 %v1940_v54, %v738_v53  ;;  %v572_v59 = vpack.c.bf16 %v1904_v36, %v1901_v35  ;;  %v743_v0 = vpack.c.bf16 %v734_v50, %v732_v63  ;;  %v1042_v2 = vpack.c.bf16 %v1880_v12, %v1907_v37  ;;  %v1767_v12 = vld [vmem:[%s2049_s3 + $0x88] sm:$0xff]  }
  0x20   : > { %1612 = vmatmul.mubr.msk.bf16.vlgmr.msra.gmra.mrb[0].mxu1 %vm606_vm7, %v593_v49  ;;  %1651 = vmatprep.mubr.msk.bf16.mxu0 %vm606_vm7, %v969_v55  ;;  %v890_v5 = vrot.slane %v1907_v37, 1  ;;  %v744_v8 = vpack.c.bf16 %v738_v53, %v736_v52  ;;  %v816_v9 = vpack.c.bf16 %v1901_v35, %v1898_v34  ;;  %v817_v17 = vpack.c.bf16 %v1907_v37, %v1904_v36 }
  0x21   : > { %1616 = vmatpush3.bf16.msra.mxu1 %v1872_v6  ;;  %1652 = vmatmul.mubr.msk.bf16.vlgmr.msra.gmra.mrb[0].mxu0 %vm606_vm7, %v970_v56  ;;  %v1765_v6 = vld [vmem:[%s2049_s3 + $0x80] sm:$0xff]   ;;  %v1187_v22 = vpack.c.bf16 %v732_v63, %v1940_v54  ;;  %v1276_v23 = vpack.c.bf16 %v1273_v20, %v1272_v19  ;;  %v1274_v28 = vsel %vm1271_vm9, %v1269_v25, 0.0  ;;  %v1275_v29 = vsel %vm1271_vm9, %v1270_v26, 0.0 }
  0x22   : > { %1617 = vmatprep.subr.bf16.mxu1 %v1758_v51  ;;  %1619 = vmatprep.mubr.msk.bf16.mxu1 %vm606_vm7, %v571_v58  ;;  %v891_v7 = vsel %vm578_vm6, %v890_v5, %v1884_v18  ;;  %v893_v18 = vpack.c.bf16 %v1920_v44, %v1916_v43  ;;  %v1277_v30 = vpack.c.bf16 %v1275_v29, %v1274_v28 }
  0x23   : > { %1656 = vmatpush3.bf16.msra.mxu0 %v1757_v21  ;;  %1659 = vmatprep.mubr.msk.bf16.mxu0 %vm606_vm7, %v572_v59  ;;  %v1115_v11 = vpack.c.bf16 %v1893_v31, %v891_v7  ;;  %v1770_v21 = vld [vmem:[%s2049_s3 + $0x48] sm:$0xff]   ;;  %v894_v27 = vpack.c.bf16 %v891_v7, %v1926_v47  ;;  %v1554_v31 = vld [vmem:[%s2050_s4] ss:$0 sm:$0xff] }
  0x24   : > { %1657 = vmatprep.subr.bf16.mxu0 %v1759_v57 }
  0x25   : > { %1618 = vmatpush3.bf16.msra.mxu1 %v1758_v51 }
  0x26   : > { %1623 = vmatprep.subr.bf16.mxu1 %v1760_v61 }
  0x27   : > { %1658 = vmatpush3.bf16.msra.mxu0 %v1759_v57 }
  0x28   : > { %1663 = vmatprep.subr.bf16.mxu0 %v1761_v62 }
  0x2c   : > { %1620 = vmatmul.mubr.msk.bf16.vlgmr.msra.gmra.mrb[0].mxu1 %vm606_vm7, %v572_v59 }
  0x2d   : > { %1624 = vmatpush3.bf16.msra.mxu1 %v1760_v61  ;;  %1627 = vmatprep.mubr.msk.bf16.mxu1 %vm606_vm7, %v743_v0 }
  0x2e   : > { %1625 = vmatprep.subr.bf16.mxu1 %v1762_v1  ;;  %1660 = vmatmul.mubr.msk.bf16.vlgmr.msra.gmra.mrb[0].mxu0 %vm606_vm7, %v1042_v2 }
  0x2f   : > { %1664 = vmatpush3.bf16.msra.mxu0 %v1761_v62  ;;  %1667 = vmatprep.mubr.msk.bf16.mxu0 %vm606_vm7, %v593_v49 }
  0x30   : > { %1665 = vmatprep.subr.bf16.mxu0 %v1763_v3 }
  0x31   : > { %1626 = vmatpush3.bf16.msra.mxu1 %v1762_v1 }
  0x32   : > { %1631 = vmatprep.subr.bf16.mxu1 %v1764_v4 }
  0x33   : > { %1666 = vmatpush3.bf16.msra.mxu0 %v1763_v3 }
  0x34   : > { %1671 = vmatprep.subr.bf16.mxu0 %v1765_v6 }
  0x38   : > { %1628 = vmatmul.mubr.msk.bf16.vlgmr.msra.gmra.mrb[0].mxu1 %vm606_vm7, %v744_v8 }
  0x39   : > { %1632 = vmatpush3.bf16.msra.mxu1 %v1764_v4  ;;  %1635 = vmatprep.mubr.msk.bf16.mxu1 %vm606_vm7, %v816_v9 }
  0x3a   : > { %1633 = vmatprep.subr.bf16.mxu1 %v1766_v10  ;;  %1668 = vmatmul.mubr.msk.bf16.vlgmr.msra.gmra.mrb[0].mxu0 %vm606_vm7, %v1115_v11 }
  0x3b   : > { %1672 = vmatpush3.bf16.msra.mxu0 %v1765_v6  ;;  %1675 = vmatprep.mubr.msk.bf16.mxu0 %vm606_vm7, %v744_v8 }
  0x3c   : > { %1673 = vmatprep.subr.bf16.mxu0 %v1767_v12 }
  0x3d   : > { %1634 = vmatpush3.bf16.msra.mxu1 %v1766_v10 }
  0x3e   : > { %1639 = vmatprep.subr.bf16.mxu1 %v1768_v13 }
  0x3f   : > { %1674 = vmatpush3.bf16.msra.mxu0 %v1767_v12 }
  0x40   : > { %1679 = vmatprep.subr.bf16.mxu0 %v1769_v14 }
  0x44   : > { %1636 = vmatmul.mubr.msk.bf16.vlgmr.msra.gmra.mrb[0].mxu1 %vm606_vm7, %v817_v17 }
  0x45   : > { %1640 = vmatpush3.bf16.msra.mxu1 %v1768_v13  ;;  %1643 = vmatprep.mubr.msk.bf16.mxu1 %vm606_vm7, %v893_v18 }
  0x46   : > { %1641 = vmatprep.subr.bf16.mxu1 %v1770_v21  ;;  %1676 = vmatmul.mubr.msk.bf16.vlgmr.msra.gmra.mrb[0].mxu0 %vm606_vm7, %v1187_v22 }
  0x47   : > { %1680 = vmatpush3.bf16.msra.mxu0 %v1769_v14  ;;  %1683 = vmatprep.mubr.msk.bf16.mxu0 %vm606_vm7, %v1276_v23 }
  0x48   : > { %1681 = vmatprep.subr.bf16.mxu0 %v1771_v24 }
  0x49   : > { %1642 = vmatpush3.bf16.msra.mxu1 %v1770_v21 }
  0x4b   : > { %1682 = vmatpush3.bf16.msra.mxu0 %v1771_v24 }
  0x50   : > { %1644 = vmatmul.mubr.msk.bf16.vlgmr.msra.gmra.mrb[0].mxu1 %vm606_vm7, %v894_v27 }
  0x52   : > { %1684 = vmatmul.mubr.msk.bf16.vlgmr.msra.gmra.mrb[0].mxu0 %vm606_vm7, %v1277_v30 }
 0x123   : > { %v1645_v32 = vpop.f32.mrb[0].mxu1 }
 0x124   : > { %v1687_v33 = vadd.f32 %v1645_v32, %v1554_v31  ;;  %v947_v34 = vpop.f32.mrb[1].mxu1 }
 0x125   : > { %v1689_v35 = vadd.f32 %v1554_v31, %v947_v34  ;;  %v1646_v36 = vpop.f32.mrb[2].mxu1  ;;  %v1685_v37 = vpop.f32.mrb[0].mxu0 }
 0x126   : > { %v1691_v38 = vadd.f32 %v1646_v36, %v1554_v31  ;;  %v950_v39 = vpop.f32.mrb[3].mxu1  ;;  %v1688_v40 = vadd.f32 %v1687_v33, %v1685_v37  ;;  %v1334_v41 = vpop.f32.mrb[1].mxu0 }
 0x127   : > { %v1693_v42 = vadd.f32 %v1554_v31, %v950_v39  ;;  %v1690_v43 = vadd.f32 %v1689_v35, %v1334_v41  ;;  %v1686_v44 = vpop.f32.mrb[2].mxu0 }
 0x128   : > { %v1355_v45 = vmul.f32 0.70710677, %v1688_v40  ;;  %v1692_v46 = vadd.f32 %v1691_v38, %v1686_v44  ;;  %v1337_v47 = vpop.f32.mrb[3].mxu0 }
 0x129   : > { %v1353_v48 = vmul.f32 0.70710677, %v1690_v43  ;;  %v1694_v49 = vadd.f32 %v1693_v42, %v1337_v47 }
 0x12a   : > { %1360 = vst.msk [vmem:[%s470_s12 + $0x8] sm:$0xf] %vm1357_vm10, %v1355_v45  ;;  %v1356_v50 = vmul.f32 0.70710677, %v1692_v46 }
 0x12b   : > { %1358 = vst.msk [vmem:[%s470_s12] sm:$0xf] %vm1357_vm10, %v1353_v48  ;;  %v1354_v51 = vmul.f32 0.70710677, %v1694_v49 }
 0x12c   : > { %1361 = vst.msk [vmem:[%s470_s12 + $0xc] sm:$0xf] %vm1357_vm10, %v1356_v50 }
 0x12d   : > { %1359 = vst.msk [vmem:[%s470_s12 + $0x4] sm:$0xf] %vm1357_vm10, %v1354_v51 }
 0x12e PF: > { %s17_s2 = sadd.s32 1, %s1794_s2   ;;  %s2054_s24 = smov %s1790_s1 }
 0x12f   : > { %p14_p5 = scmp.ge.s32.totalorder %s17_s2, 4   ;;  %s2055_s1 = smov %s2057_s25 }
 0x131   :  { %16 = sbr.rel (!%p14_p5) target bundleno = 2 (0x2), region = 87 }

// kernel: style_encoder_forward.11
= control target key start
LH: loop header
LB: loop body
LE: loop exit
PB: predicated region body
PF: predicated region fallthrough
CT: control target
= control target key end

     0   :  { %s1911_s0 = inlined_call_operand.vmem [shape: s32[2], index: 0, kind: input, shape index: {}]   ;;  %s1912_s1 = inlined_call_operand.vmem [shape: f32[2,1,1024], index: 1, kind: input, shape index: {}]   ;;  %s1913_s2 = inlined_call_operand.vmem [shape: bf16[1024,64], index: 2, kind: input, shape index: {}]   ;;  %s1914_s3 = inlined_call_operand.vmem [shape: f32[1,64], index: 3, kind: input, shape index: {}]   ;;  %s1915_s4 = inlined_call_operand.vmem [shape: bf16[2,64,64], index: 4, kind: input, shape index: {}]   ;;  %s1916_s5 = inlined_call_operand.vmem [shape: f32[2,1,64], index: 5, kind: input, shape index: {}]   ;;  %s1917_s6 = inlined_call_operand.hbm [shape: f32[2,1,64], index: 6, kind: output, shape index: {}]  }
   0x1   :  { %s11_s23 = sshll.u32 %s1911_s0, 4  ;;  %s12_s23 = int_to_ptr.vmem [resolvable:$true] %s11_s23 }
   0x2   :  { %s1468_s24 = scalar_lea.vmem %s12_s23, 16  ;;  %p1473_p1 = scmp.lt.s32.totalorder %s12_s23, %s12_s23 }
   0x3   :  { %p1469_p0 = scmp.ne.s32.totalorder %s12_s23, %s1468_s24  ;;  %p1474_p2 = scmp.lt.s32.totalorder %s1468_s24, %s1468_s24 }
   0x5   :  { %p1475_p3 = por %p1474_p2, %p1473_p1 }
   0x7   :  { %p1476_p4 = pnand %p1475_p3, %p1469_p0 }
   0x9   :  { %1479 = shalt.err (!%p1476_p4)  }
   0xa   :  { %s1546_s25 = smov [#allocation3]  }
   0xb   :  { %14 = dma.vmem_to_smem %s12_s23, 16, %s1546_s25, [#allocation2] }
   0xc   :  { %1524 = dma.done.wait [#allocation2], 16 }
   0xd   :  { %1525 = vsyncadd [#allocation2], 4294967280 }
   0xe   :  { %16 = sfence }
   0xf   :  { %17 = vsyncpa [#allocation5], 0 }
  0x10   :  { %19 = vsyncpa [#allocation5 + $0x1], 0  ;;  %s1588_s26 = smov 0   ;;  %s1590_s27 = smov 0  }
  0x11   :  { %s1592_s0 = smov 0   ;;  %s1594_s28 = smov 0  }
  0x12 LB: > { %s1609_s29 = sadd.s32 4294967295, %s1544_s28   ;;  %s1173_s30 = sadd.s32 4294967294, %s1544_s28   ;;  %s1544_s28 = sphi %s1594_s28, %s1923_s28   ;;  %s1540_s0 = sphi %s1592_s0, %s1922_s0   ;;  %s1536_s27 = sphi %s1590_s27, %s1921_s27   ;;  %s1532_s26 = sphi %s1588_s26, %s1920_s26  }
  0x13   : > { %s1613_s7 = sadd.s32 1, %s1544_s28   ;;  %s156_s8 = sadd.s32 1, %s1540_s0 }
  0x14   : > { %s153_s9 = ssub.s32 %s1544_s28, %s1613_s7  ;;  %p166_p5 = scmp.ne.s32.totalorder %s1540_s0, %s1536_s27 }
  0x15   : > { %p154_p6 = scmp.eq.s32.totalorder %s153_s9, 0  ;;  %p167_p7 = scmp.eq.s32.totalorder %s1609_s29, 1 }
  0x16   : > { %p172_p8 = scmp.ne.s32.totalorder %s1536_s27, %s1532_s26  ;;  %p173_p9 = scmp.eq.s32.totalorder %s1173_s30, 1 }
  0x17   : > { %s1624_s10 = scalar_select %p154_p6, %s1540_s0, %s156_s8  }
  0x18   : > { %p1626_p10 = por %p167_p7, %p166_p5  ;;  %p1630_p11 = por %p173_p9, %p172_p8 }
  0x19   : > { %p1176_p12 = scmp.ge.s32.totalorder %s1544_s28, 1  ;;  %p222_p13 = scmp.lt.s32.totalorder %s1544_s28, 3 }
  0x1b   : > { %p223_p0 = pnand %p1176_p12, %p222_p13 }
  0x1c   : > { %v1400_v0 = vld [vmem:[%s1913_s2 + $0x40] sm:$0xff] (!%p223_p0)   ;;  %v1404_v4 = vld [vmem:[%s1913_s2 + $0x48] sm:$0xff] (!%p223_p0)   ;;  %v1408_v8 = vld [vmem:[%s1913_s2 + $0x50] sm:$0xff] (!%p223_p0)   ;;  %p258_p1 = scmp.lt.s32.totalorder (!%p223_p0), %s1609_s29, 1  ;;  %v280_v20 = vlaneseq (!%p223_p0)  ;;  %s262_s18 = sld [smem:[#allocation3 + %s1609_s29]] (!%p223_p0)  ;;  %vm1548_vm1 = vmmov (!%p223_p0), 0  }
  0x1d   : > { %226 = sbr.rel (%p223_p0) target bundleno = 546 (0x222), region = 40  ;;  %v1401_v1 = vld [vmem:[%s1913_s2 + $0xc0] sm:$0xff] (!%p223_p0)   ;;  %1253 = vmatprep.subr.bf16.mxu0 (!%p223_p0), %v1400_v0  ;;  %v1405_v5 = vld [vmem:[%s1913_s2 + $0xc8] sm:$0xff] (!%p223_p0)   ;;  %v1409_v9 = vld [vmem:[%s1913_s2 + $0xd0] sm:$0xff] (!%p223_p0)   ;;  %vm1038_vm3 = vcmask (!%p223_p0), 523264   ;;  %s269_s25 = sld [smem:[#allocation3 + %s1609_s29]] (!%p223_p0) }
  0x1e   : > { %v1402_v2 = vld [vmem:[%s1913_s2] sm:$0xff] (!%p223_p0)   ;;  %1275 = vmatprep.subr.bf16.mxu1 (!%p223_p0), %v1401_v1  ;;  %v1406_v6 = vld [vmem:[%s1913_s2 + $0x8] sm:$0xff] (!%p223_p0)   ;;  %v1410_v10 = vld [vmem:[%s1913_s2 + $0x10] sm:$0xff] (!%p223_p0)   ;;  %v1710_v25 = vshrl.u32 (!%p223_p0), %v280_v20, 7  ;;  %s256_s30 = sand.u32 (!%p223_p0), 1, %s1536_s27   ;;  %s1249_s14 = sshll.u32 (!%p223_p0), %s1609_s29, 4 }
  0x1f   : > { %v1403_v3 = vld [vmem:[%s1913_s2 + $0x80] sm:$0xff] (!%p223_p0)   ;;  %1254 = vmatpush3.bf16.msra.mxu0 (!%p223_p0), %v1402_v2  ;;  %v1407_v7 = vld [vmem:[%s1913_s2 + $0x88] sm:$0xff] (!%p223_p0)   ;;  %v1411_v11 = vld [vmem:[%s1913_s2 + $0x90] sm:$0xff] (!%p223_p0)   ;;  %s257_s15 = scalar_lea.vmem (!%p223_p0), [#allocation4], %s256_s30  ;;  %vm1082_vm4 = vcmask (!%p223_p0), 516096   ;;  %s1549_s21 = smov (!%p223_p0), [#allocation4]  }
  0x20   : > { %1276 = vmatpush3.bf16.msra.mxu1 (!%p223_p0), %v1403_v3  ;;  %1255 = vmatprep.subr.bf16.mxu0 (!%p223_p0), %v1404_v4  ;;  %v1412_v12 = vld [vmem:[%s1913_s2 + $0x58] sm:$0xff] (!%p223_p0)   ;;  %v1416_v16 = vld [vmem:[%s1913_s2 + $0x60] sm:$0xff] (!%p223_p0)   ;;  %v1420_v21 = vld [vmem:[%s1913_s2 + $0x68] sm:$0xff] (!%p223_p0)   ;;  %v286_v30 = vsub.s32 (!%p223_p0), 1, %v1710_v25  ;;  %v294_v32 = vsub.s32 (!%p223_p0), 3, %v1710_v25  ;;  %v282_v34 = vsub.s32 (!%p223_p0), 0, %v1710_v25 }
  0x21   : > { %1277 = vmatprep.subr.bf16.mxu1 (!%p223_p0), %v1405_v5  ;;  %v1413_v13 = vld [vmem:[%s1913_s2 + $0xd8] sm:$0xff] (!%p223_p0)   ;;  %v1417_v17 = vld [vmem:[%s1913_s2 + $0xe0] sm:$0xff] (!%p223_p0)   ;;  %v1421_v22 = vld [vmem:[%s1913_s2 + $0xe8] sm:$0xff] (!%p223_p0)   ;;  %v290_v36 = vsub.s32 (!%p223_p0), 2, %v1710_v25  ;;  %v302_v38 = vsub.s32 (!%p223_p0), 5, %v1710_v25  ;;  %v310_v40 = vsub.s32 (!%p223_p0), 7, %v1710_v25 }
  0x22   : > { %v1414_v14 = vld [vmem:[%s1913_s2 + $0x18] sm:$0xff] (!%p223_p0)   ;;  %v1418_v18 = vld [vmem:[%s1913_s2 + $0x20] sm:$0xff] (!%p223_p0)   ;;  %v1422_v23 = vld [vmem:[%s1913_s2 + $0x28] sm:$0xff] (!%p223_p0)   ;;  %v306_v20 = vsub.s32 (!%p223_p0), 6, %v1710_v25  ;;  %p263_p2 = scmp.lt.s32.totalorder (!%p223_p0), %s262_s18, 1  ;;  %s1097_s16 = sshll.u32 (!%p223_p0), %s257_s15, 4  ;;  %s1871_s16 = int_to_ptr.vmem [resolvable:$true] %s1097_s16 }
  0x23   : > { %1256 = vmatpush3.bf16.msra.mxu0 (!%p223_p0), %v1406_v6  ;;  %v1415_v15 = vld [vmem:[%s1913_s2 + $0x98] sm:$0xff] (!%p223_p0)   ;;  %v1419_v19 = vld [vmem:[%s1913_s2 + $0xa0] sm:$0xff] (!%p223_p0)   ;;  %v1423_v24 = vld [vmem:[%s1913_s2 + $0xa8] sm:$0xff] (!%p223_p0)   ;;  %p270_p3 = scmp.lt.s32.totalorder (!%p223_p0), %s269_s25, 1 }
  0x24   : > { %1278 = vmatpush3.bf16.msra.mxu1 %v1407_v7  ;;  %1257 = vmatprep.subr.bf16.mxu0 %v1408_v8  ;;  %s259_s8 = scalar_select %p258_p1, %s1609_s29, 1  ;;  %v1424_v26 = vld [vmem:[%s1913_s2 + $0x70] sm:$0xff]   ;;  %v1428_v31 = vld [vmem:[%s1913_s2 + $0x78] sm:$0xff]   ;;  %v1432_v42 = vld [vmem:[%s1913_s2 + $0x140] sm:$0xff]  }
  0x25   : > { %1279 = vmatprep.subr.bf16.mxu1 %v1409_v9  ;;  %v1425_v27 = vld [vmem:[%s1913_s2 + $0xf0] sm:$0xff]   ;;  %v1429_v33 = vld [vmem:[%s1913_s2 + $0xf8] sm:$0xff]   ;;  %v1433_v43 = vld [vmem:[%s1913_s2 + $0x1c0] sm:$0xff]   ;;  %s1925_s18 = smov (!%p263_p2, %s262_s18), 1  ;;  %s1927_s25 = smov (!%p270_p3, %s269_s25), 1 }
  0x26   : > { %v1426_v28 = vld [vmem:[%s1913_s2 + $0x30] sm:$0xff]   ;;  %s1177_s20 = sshll.u32 %s259_s8, 3  ;;  %v1430_v35 = vld [vmem:[%s1913_s2 + $0x38] sm:$0xff]   ;;  %v1434_v49 = vld [vmem:[%s1913_s2 + $0x100] sm:$0xff]   ;;  %s1252_s19 = sshll.u32 %s1925_s18, 5 }
  0x27   : > { %1258 = vmatpush3.bf16.msra.mxu0 %v1410_v10  ;;  %v1427_v29 = vld [vmem:[%s1913_s2 + $0xb0] sm:$0xff]   ;;  %s261_s13 = scalar_lea.vmem %s1912_s1, %s1177_s20  ;;  %v1431_v37 = vld [vmem:[%s1913_s2 + $0xb8] sm:$0xff]   ;;  %v1435_v50 = vld [vmem:[%s1913_s2 + $0x180] sm:$0xff]   ;;  %s267_s22 = scalar_lea.vmem %s1915_s4, %s1252_s19 }
  0x28   : > { %1280 = vmatpush3.bf16.msra.mxu1 %v1411_v11  ;;  %1259 = vmatprep.subr.bf16.mxu0 %v1412_v12  ;;  %v275_v39 = vld [vmem:[%s261_s13] sm:$0xff]  ;;  %v1436_v57 = vld [vmem:[%s1913_s2 + $0x148] sm:$0xff]   ;;  %v1440_v63 = vld [vmem:[%s1913_s2 + $0x150] sm:$0xff]   ;;  %s272_s13 = scalar_lea.vmem %s1916_s5, %s1927_s25  ;;  %s1869_s19 = scalar_lea.hbm %s1917_s6, %s1249_s14 }
  0x29   : > { %1281 = vmatprep.subr.bf16.mxu1 %v1413_v13  ;;  %vm276_vm0 = vcmp.ge.f32.partialorder %v275_v39, 0.0  ;;  %v277_v41 = vmul.f32 0.2, %v275_v39  ;;  %v1437_v58 = vld [vmem:[%s1913_s2 + $0x1c8] sm:$0xff]   ;;  %v1441_v0 = vld [vmem:[%s1913_s2 + $0x1d0] sm:$0xff]   ;;  %v1444_v3 = vld [vmem:[%s1913_s2 + $0x158] sm:$0xff]  }
  0x2a   : > { %v1438_v59 = vld [vmem:[%s1913_s2 + $0x108] sm:$0xff]   ;;  %v1442_v1 = vld [vmem:[%s1913_s2 + $0x110] sm:$0xff]   ;;  %v1445_v4 = vld [vmem:[%s1913_s2 + $0x1d8] sm:$0xff]   ;;  %s1085_s29 = scalar_lea.sflag [#allocation5], %s256_s30  ;;  %s1480_s20 = scalar_lea.vmem %s1871_s16, 16 }
  0x2b   : > { %1260 = vmatpush3.bf16.msra.mxu0 %v1414_v14  ;;  %v1751_v44 = vsel %vm276_vm0, %v275_v39, %v277_v41  ;;  %v1439_v62 = vld [vmem:[%s1913_s2 + $0x188] sm:$0xff]   ;;  %v1443_v2 = vld [vmem:[%s1913_s2 + $0x190] sm:$0xff]   ;;  %v1446_v5 = vld [vmem:[%s1913_s2 + $0x118] sm:$0xff]   ;;  %p1481_p4 = scmp.ne.s32.totalorder %s1871_s16, %s1480_s20 }
  0x2c   : > { %1282 = vmatpush3.bf16.msra.mxu1 %v1415_v15  ;;  %1261 = vmatprep.subr.bf16.mxu0 %v1416_v16  ;;  %v287_v45 = vrot.slane %v1751_v44, %v286_v30  ;;  %v295_v46 = vrot.slane %v1751_v44, %v294_v32  ;;  %v283_v47 = vrot.slane %v1751_v44, %v282_v34  ;;  %v1447_v6 = vld [vmem:[%s1913_s2 + $0x198] sm:$0xff]   ;;  %v1448_v7 = vld [vmem:[%s1913_s2 + $0x160] sm:$0xff]   ;;  %v1452_v11 = vld [vmem:[%s1913_s2 + $0x168] sm:$0xff]  }
  0x2d   : > { %1283 = vmatprep.subr.bf16.mxu1 %v1417_v17  ;;  %v291_v48 = vrot.slane %v1751_v44, %v290_v36  ;;  %v303_v51 = vrot.slane %v1751_v44, %v302_v38  ;;  %v311_v52 = vrot.slane %v1751_v44, %v310_v40  ;;  %v1449_v8 = vld [vmem:[%s1913_s2 + $0x1e0] sm:$0xff]   ;;  %v1453_v12 = vld [vmem:[%s1913_s2 + $0x1e8] sm:$0xff]   ;;  %v1456_v15 = vld [vmem:[%s1913_s2 + $0x170] sm:$0xff]   ;;  %p1482_p5 = pnand %p1481_p4, %p1626_p10 }
  0x2e   : > { %v321_v53 = vpack.c.bf16 %v287_v45, %v287_v45  ;;  %v323_v54 = vpack.c.bf16 %v295_v46, %v295_v46  ;;  %v320_v55 = vpack.c.bf16 %v283_v47, %v283_v47  ;;  %v1450_v9 = vld [vmem:[%s1913_s2 + $0x120] sm:$0xff]   ;;  %v1454_v13 = vld [vmem:[%s1913_s2 + $0x128] sm:$0xff]   ;;  %v1457_v16 = vld [vmem:[%s1913_s2 + $0x1f0] sm:$0xff]  }
  0x2f   : > { %1262 = vmatpush3.bf16.msra.mxu0 %v1418_v18  ;;  %v322_v56 = vpack.c.bf16 %v291_v48, %v291_v48  ;;  %v325_v60 = vpack.c.bf16 %v303_v51, %v303_v51  ;;  %v327_v61 = vpack.c.bf16 %v311_v52, %v311_v52  ;;  %v1451_v10 = vld [vmem:[%s1913_s2 + $0x1a0] sm:$0xff]   ;;  %v1455_v14 = vld [vmem:[%s1913_s2 + $0x1a8] sm:$0xff]   ;;  %v1458_v17 = vld [vmem:[%s1913_s2 + $0x130] sm:$0xff]   ;;  %v298_v18 = vsub.s32 4, %v1710_v25  ;;  %p1483_p6 = pneg %p1482_p5 }
  0x30   : > { %1284 = vmatpush3.bf16.msra.mxu1 %v1419_v19  ;;  %1263 = vmatprep.subr.bf16.mxu0 %v1420_v21  ;;  %v1459_v19 = vld [vmem:[%s1913_s2 + $0x1b0] sm:$0xff]   ;;  %v1460_v21 = vld [vmem:[%s1913_s2 + $0x178] sm:$0xff]   ;;  %v1464_v30 = vld [vmem:[%s267_s22] sm:$0xff]  }
  0x31   : > { %1285 = vmatprep.subr.bf16.mxu1 %v1421_v22  ;;  %873 = vmatprep.mubr.bf16.mxu0 %v321_v53  ;;  %v1461_v22 = vld [vmem:[%s1913_s2 + $0x1f8] sm:$0xff]   ;;  %v1466_v32 = vld [vmem:[%s267_s22 + $0x10] sm:$0xff]   ;;  %v456_v36 = vld [vmem:[%s1914_s3] sm:$0x1] }
  0x32   : > { %913 = vmatprep.mubr.bf16.mxu1 %v323_v54  ;;  %v1462_v25 = vld [vmem:[%s1913_s2 + $0x138] sm:$0xff]  }
  0x33   : > { %1264 = vmatpush3.bf16.msra.mxu0 %v1422_v23  ;;  %v299_v23 = vrot.slane %v1751_v44, %v298_v18 }
  0x34   : > { %1286 = vmatpush3.bf16.msra.mxu1 %v1423_v24  ;;  %1265 = vmatprep.subr.bf16.mxu0 %v1424_v26  ;;  %v307_v24 = vrot.slane %v1751_v44, %v306_v20  ;;  %v1463_v26 = vld [vmem:[%s1913_s2 + $0x1b8] sm:$0xff]  }
  0x35   : > { %1287 = vmatprep.subr.bf16.mxu1 %v1425_v27  ;;  %v324_v27 = vpack.c.bf16 %v299_v23, %v299_v23 }
  0x37   : > { %1266 = vmatpush3.bf16.msra.mxu0 %v1426_v28  ;;  %v326_v28 = vpack.c.bf16 %v307_v24, %v307_v24 }
  0x38   : > { %1288 = vmatpush3.bf16.msra.mxu1 %v1427_v29  ;;  %1267 = vmatprep.subr.bf16.mxu0 %v1428_v31  ;;  %v1547_v29 = vmov 0.0   ;;  %v1465_v31 = vld [vmem:[%s267_s22 + $0x8] sm:$0xff]  }
  0x39   : > { %1289 = vmatprep.subr.bf16.mxu1 %v1429_v33  ;;  %v1467_v33 = vld [vmem:[%s267_s22 + $0x18] sm:$0xff]   ;;  %s1484_s22 = sshll.u32 %s1549_s21, 4  ;;  %s1485_s22 = int_to_ptr.vmem [resolvable:$false] %s1484_s22 }
  0x3a   : > { %s1486_s23 = scalar_lea.vmem %s1485_s22, 32  ;;  %p1487_p7 = scmp.lt.s32.totalorder %s1871_s16, %s1485_s22 }
  0x3b   : > { %1268 = vmatpush3.bf16.msra.mxu0 %v1430_v35  ;;  %p1488_p8 = scmp.lt.s32.totalorder %s1486_s23, %s1480_s20 }
  0x3c   : > { %1290 = vmatpush3.bf16.msra.mxu1 %v1431_v37  ;;  %1297 = vmatprep.subr.bf16.mxu0 %v1432_v42 }
  0x3d   : > { %1319 = vmatprep.subr.bf16.mxu1 %v1433_v43  ;;  %p1489_p9 = por %p1488_p8, %p1487_p7 }
  0x3e   : > { %874 = vmatmul.mubr.bf16.vlgmr.msra.gmra.mrb[0].mxu0 %v320_v55 }
  0x3f   : > { %914 = vmatmul.mubr.bf16.vlgmr.msra.gmra.mrb[0].mxu1 %v322_v56  ;;  %1298 = vmatpush3.bf16.msra.mxu0 %v1434_v49  ;;  %p1490_p12 = pnand %p1489_p9, %p1483_p6 }
  0x40   : > { %1320 = vmatpush3.bf16.msra.mxu1 %v1435_v50  ;;  %1299 = vmatprep.subr.bf16.mxu0 %v1436_v57 }
  0x41   : > { %1321 = vmatprep.subr.bf16.mxu1 %v1437_v58  ;;  %953 = vmatprep.mubr.bf16.mxu0 %v325_v60 }
  0x42   : > { %993 = vmatprep.mubr.bf16.mxu1 %v327_v61 }
  0x43   : > { %1300 = vmatpush3.bf16.msra.mxu0 %v1438_v59 }
  0x44   : > { %1322 = vmatpush3.bf16.msra.mxu1 %v1439_v62  ;;  %1301 = vmatprep.subr.bf16.mxu0 %v1440_v63  ;;  %v1013_v62 = vld [vmem:[%s272_s13] sm:$0x1] }
  0x45   : > { %1323 = vmatprep.subr.bf16.mxu1 %v1441_v0 }
  0x47   : > { %1302 = vmatpush3.bf16.msra.mxu0 %v1442_v1 }
  0x48   : > { %1324 = vmatpush3.bf16.msra.mxu1 %v1443_v2  ;;  %1303 = vmatprep.subr.bf16.mxu0 %v1444_v3 }
  0x49   : > { %1325 = vmatprep.subr.bf16.mxu1 %v1445_v4 }
  0x4b   : > { %1304 = vmatpush3.bf16.msra.mxu0 %v1446_v5 }
  0x4c   : > { %1326 = vmatpush3.bf16.msra.mxu1 %v1447_v6  ;;  %1305 = vmatprep.subr.bf16.mxu0 %v1448_v7 }
  0x4d   : > { %1327 = vmatprep.subr.bf16.mxu1 %v1449_v8 }
  0x4f   : > { %1306 = vmatpush3.bf16.msra.mxu0 %v1450_v9 }
  0x50   : > { %1328 = vmatpush3.bf16.msra.mxu1 %v1451_v10  ;;  %1307 = vmatprep.subr.bf16.mxu0 %v1452_v11 }
  0x51   : > { %1329 = vmatprep.subr.bf16.mxu1 %v1453_v12 }
  0x53   : > { %1308 = vmatpush3.bf16.msra.mxu0 %v1454_v13 }
  0x54   : > { %1330 = vmatpush3.bf16.msra.mxu1 %v1455_v14  ;;  %1309 = vmatprep.subr.bf16.mxu0 %v1456_v15 }
  0x55   : > { %1331 = vmatprep.subr.bf16.mxu1 %v1457_v16 }
  0x57   : > { %1310 = vmatpush3.bf16.msra.mxu0 %v1458_v17 }
  0x58   : > { %1332 = vmatpush3.bf16.msra.mxu1 %v1459_v19  ;;  %1311 = vmatprep.subr.bf16.mxu0 %v1460_v21 }
  0x59   : > { %1333 = vmatprep.subr.bf16.mxu1 %v1461_v22 }
  0x5b   : > { %1312 = vmatpush3.bf16.msra.mxu0 %v1462_v25 }
  0x5c   : > { %1334 = vmatpush3.bf16.msra.mxu1 %v1463_v26  ;;  %1346 = vmatprep.subr.bf16.mxu0 %v1547_v29 }
  0x5e   : > { %954 = vmatmul.mubr.bf16.vlgmr.msra.gmra.mrb[4].mxu0 %v324_v27 }
  0x5f   : > { %994 = vmatmul.mubr.bf16.vlgmr.msra.gmra.mrb[4].mxu1 %v326_v28  ;;  %1347 = vmatpush3.bf16.msra.mxu0 %v1464_v30 }
  0x60   : > { %1348 = vmatprep.subr.bf16.mxu0 %v1547_v29  ;;  %1354 = vmatprep.mubr.msk.bf16.mxu0 %vm1548_vm1, %v1547_v29 }
  0x63   : > { %1349 = vmatpush3.bf16.msra.mxu0 %v1465_v31 }
  0x64   : > { %1350 = vmatprep.subr.bf16.mxu0 %v1547_v29 }
  0x67   : > { %1351 = vmatpush3.bf16.msra.mxu0 %v1466_v32 }
  0x68   : > { %1352 = vmatprep.subr.bf16.mxu0 %v1547_v29 }
  0x6b   : > { %1353 = vmatpush3.bf16.msra.mxu0 %v1467_v33 }
 0x111   : > { %v1269_v34 = vpop.f32.mrb[0].mxu0 }
 0x112   : > { %v1291_v35 = vpop.f32.mrb[0].mxu1  ;;  %v1270_v37 = vpop.f32.mrb[1].mxu0 }
 0x113   : > { %v1292_v38 = vpop.f32.mrb[1].mxu1  ;;  %v1271_v39 = vadd.f32 %v1270_v37, %v1269_v34  ;;  %v1272_v41 = vpop.f32.mrb[2].mxu0 }
 0x114   : > { %v1293_v40 = vadd.f32 %v1292_v38, %v1291_v35  ;;  %v1294_v42 = vpop.f32.mrb[2].mxu1  ;;  %v1273_v43 = vpop.f32.mrb[3].mxu0 }
 0x115   : > { %v1295_v44 = vpop.f32.mrb[3].mxu1  ;;  %v876_v45 = vadd.f32 %v1271_v39, %v456_v36 }
 0x117   : > { %v916_v46 = vadd.f32 %v1293_v40, %v876_v45 }
 0x131   : > { %v1313_v47 = vpop.f32.mrb[4].mxu0 }
 0x132   : > { %v1335_v48 = vpop.f32.mrb[4].mxu1  ;;  %v1314_v49 = vpop.f32.mrb[5].mxu0 }
 0x133   : > { %v1336_v50 = vpop.f32.mrb[5].mxu1  ;;  %v1315_v51 = vadd.f32 %v1314_v49, %v1313_v47  ;;  %v1316_v53 = vpop.f32.mrb[6].mxu0 }
 0x134   : > { %v1337_v52 = vadd.f32 %v1336_v50, %v1335_v48  ;;  %v1338_v54 = vpop.f32.mrb[6].mxu1  ;;  %v1317_v55 = vpop.f32.mrb[7].mxu0 }
 0x135   : > { %v1339_v56 = vpop.f32.mrb[7].mxu1  ;;  %v956_v57 = vadd.f32 %v1315_v51, %v916_v46 }
 0x137   : > { %v996_v58 = vadd.f32 %v1337_v52, %v956_v57 }
 0x139   : > { %vm1001_vm2 = vcmp.ge.f32.partialorder %v996_v58, 0.0  ;;  %v1002_v59 = vmul.f32 0.2, %v996_v58 }
 0x13b   : > { %v1003_v60 = vsel %vm1001_vm2, %v996_v58, %v1002_v59 }
 0x13c   : > { %v1004_v61 = vpack.c.bf16 %v1003_v60, %v1003_v60 }
 0x13e   : > { %1355 = vmatmul.mubr.msk.bf16.vlgmr.msra.gmra.mrb[8].mxu0 %vm1038_vm3, %v1004_v61 }
 0x211   : > { %v1076_v63 = vpop.f32.mrb[8].mxu0 }
 0x212   : > { %v1077_v0 = vadd.f32 %v1076_v63, %v1013_v62  ;;  %v1356_v1 = vpop.f32.mrb[9].mxu0 }
 0x213   : > { %v1079_v2 = vpop.f32.mrb[10].mxu0 }
 0x214   : > { %v1357_v3 = vpop.f32.mrb[11].mxu0  ;;  %1083 = vst.msk [vmem:[%s257_s15] sm:$0x1] %vm1082_vm4, %v1077_v0 }
 0x215   : > { %1493 = shalt.err (!%p1490_p12)
}
 0x216   : > { %s1494_s24 = scalar_lea.hbm %s1869_s19, 16  ;;  %s1498_s8 = scalar_lea.hbm %s1917_s6, 32 }
 0x217   : > { %p1495_p13 = scmp.ne.s32.totalorder %s1869_s19, %s1494_s24  ;;  %p1499_p2 = scmp.lt.u32.totalorder %s1869_s19, %s1917_s6 }
 0x218   : > { %p1500_p3 = scmp.lt.u32.totalorder %s1498_s8, %s1494_s24  ;;  %p1502_p5 = scmp.lt.u32.totalorder %s1494_s24, %s1869_s19 }
 0x219   : > { %p1496_p0 = pnand %p1495_p13, %p1626_p10 }
 0x21a   : > { %p1501_p4 = por %p1500_p3, %p1499_p2 }
 0x21b   : > { %p1497_p1 = pneg %p1496_p0 }
 0x21c   : > { %p1503_p6 = por %p1502_p5, %p1501_p4 }
 0x21e   : > { %p1504_p7 = pnand %p1503_p6, %p1497_p1 }
 0x220   : > { %1507 = shalt.err (!%p1504_p7)
}
 0x221   : > { %1358 = dma.vmem_to_hbm [thread:$0]  (%p1626_p10), %s1871_s16, 16, %s1869_s19, %s1085_s29  }
 0x222 PF: > { %p1364_p8 = scmp.ge.s32.totalorder %s1544_s28, 2  ;;  %s1109_s14 = sand.u32 1, %s1532_s26  }
 0x223   : > { %s1110_s15 = scalar_lea.sflag [#allocation5], %s1109_s14 }
 0x224   : > { %p1361_p9 = pnand %p1364_p8, %p1630_p11 }
 0x226   : > { %1527 = dma.done.wait (!%p1361_p9), %s1110_s15, 16  }
 0x227   : > { %1529 = vsyncadd (!%p1361_p9), %s1110_s15, 4294967280  ;;  %p22_p12 = scmp.ge.s32.totalorder %s1613_s7, 4   ;;  %s1920_s26 = smov %s1536_s27 }
 0x228   : > { %s1921_s27 = smov %s1540_s0  ;;  %s1922_s0 = smov %s1624_s10 }
 0x229   : > { %s1923_s28 = smov %s1613_s7  ;;  %24 = sbr.rel (!%p22_p12) target bundleno = 18 (0x12), region = 81 }
 0x230   :  { %1114 = vsyncpa [#allocation5], 1 }
 0x231   :  { %1116 = vsyncpa [#allocation5 + $0x1], 1 }

</bundles_post_ra>
